<compile_context>
chip_gen: v6e
topology: v6e:2x2x1
jax: 0.10.0
libtpu: 0.0.40
codegen_flags: <defaults>
</compile_context>

<pallas_src>
import jax
import jax.numpy as jnp
from jax.experimental import pallas as pl
from jax.experimental.pallas import tpu as pltpu


# ----------------------------------------------------------------------------
# Fused Seq forward kernel factory (n_layers / shapes are static).
# PyTorch LSTM gate order: i, f, g, o.
# ----------------------------------------------------------------------------
def _make_seq_kernel(n_layers, T, B, H, E, V, mxu_dtype):
    def kernel(*refs):
        ids_ref, emb_hbm, h0_ref, c0_ref, fcw_ref, fcb_ref = refs[:6]
        w_refs = refs[6:6 + 3 * n_layers]
        p_ref, hT_ref, cT_ref = refs[6 + 3 * n_layers:9 + 3 * n_layers]
        emb_buf, gather_sem = refs[9 + 3 * n_layers:]

        # ---- Embedding row gather: ids (SMEM) index the HBM table; rows are DMA'd
        # into VMEM scratch.  All T*B copies are started before any wait so the DMA
        # engine pipelines them (scalar id reads happen before any .wait()).
        copies = []
        for r in range(T * B):                              # static unroll, small T*B
            row = ids_ref[r]
            cp = pltpu.make_async_copy(
                emb_hbm.at[pl.ds(row, 1), :],
                emb_buf.at[pl.ds(r, 1), :],
                gather_sem.at[r])
            cp.start()
            copies.append(cp)
        for cp in copies:
            cp.wait()

        w_ih = [w_refs[3 * l][...] for l in range(n_layers)]        # (in, 4H)
        w_hh = [w_refs[3 * l + 1][...] for l in range(n_layers)]    # (H, 4H)
        bias = [w_refs[3 * l + 2][...] for l in range(n_layers)]    # (1, 4H) f32

        # Hoisted layer-0 input projection (+ combined bias) for ALL timesteps.
        gx0 = jnp.dot(emb_buf[...].astype(mxu_dtype), w_ih[0],
                      preferred_element_type=jnp.float32) + bias[0]  # (T*B, 4H)

        h_st = [h0_ref[l].astype(jnp.float32) for l in range(n_layers)]   # (B, H)
        c_st = [c0_ref[l].astype(jnp.float32) for l in range(n_layers)]   # (B, H)
        outs = [[None] * T for _ in range(n_layers)]

        def lstm_cell(gates, c_prev):
            # TODO(synk): pad H to a multiple of 128 at production sizes so these
            # gate slices become free lane-group views instead of masked selects.
            i_g = jax.nn.sigmoid(gates[:, 0 * H:1 * H])
            f_g = jax.nn.sigmoid(gates[:, 1 * H:2 * H])
            g_g = jnp.tanh(gates[:, 2 * H:3 * H])
            o_g = jax.nn.sigmoid(gates[:, 3 * H:4 * H])
            c_new = f_g * c_prev + i_g * g_g
            h_new = o_g * jnp.tanh(c_new)
            return h_new, c_new

        # ---- Wavefront over (layer, time).  Cells of the same wave are independent,
        # so their h@W_hh / x@W_ih pushes overlap in the MXU pipeline; the dependency
        # chain is T + L - 1 waves instead of T * L serial cells.
        for s in range(T + n_layers - 1):                   # static unroll
            for l in range(n_layers):
                t = s - l
                if not (0 <= t < T):
                    continue
                if l == 0:
                    gates_x = gx0[t * B:(t + 1) * B, :]
                else:
                    # Input = layer l-1's output at time t (produced in wave s-1).
                    # Inter-layer dropout == identity (eval mode).
                    gates_x = jnp.dot(outs[l - 1][t].astype(mxu_dtype), w_ih[l],
                                      preferred_element_type=jnp.float32) + bias[l]
                gates = gates_x + jnp.dot(h_st[l].astype(mxu_dtype), w_hh[l],
                                          preferred_element_type=jnp.float32)
                h_st[l], c_st[l] = lstm_cell(gates, c_st[l])
                outs[l][t] = h_st[l]

        # Final (h, c) written exactly once per layer.
        for l in range(n_layers):
            hT_ref[l] = h_st[l]
            cT_ref[l] = c_st[l]

        # ---- Final FC over all (b, t) rows at once, directly in (B, T, V) layout.
        # Output dropout == identity (eval mode).
        h_top = jnp.stack(outs[n_layers - 1], axis=1)                # (B, T, H)
        logits = jnp.dot(h_top.reshape(B * T, H).astype(mxu_dtype), fcw_ref[...],
                         preferred_element_type=jnp.float32) + fcb_ref[...]
        p_ref[...] = logits.reshape(B, T, V).astype(p_ref.dtype)

    return kernel


# ----------------------------------------------------------------------------
# Optional one-time cast of the matmul weights (embedding, w_ih, w_hh, fc_w) so
# bf16 is stored in HBM (halves weight DMA) instead of casting inside the kernel.
# ----------------------------------------------------------------------------
def cast_weights(params, dtype):
    out = dict(params)
    out["embedding"] = params["embedding"].astype(dtype)
    out["fc_w"] = params["fc_w"].astype(dtype)
    for l in range(params["n_layers"]):
        out[f"w_ih_{l}"] = params[f"w_ih_{l}"].astype(dtype)
        out[f"w_hh_{l}"] = params[f"w_hh_{l}"].astype(dtype)
    return out


# ----------------------------------------------------------------------------
# Full Seq forward:  p, h, c = Seq(x, h, c)
# x: (B, T) int32 tokens ; h, c: (n_layers, B, H)
# ----------------------------------------------------------------------------
def seq_forward(params, x, h, c, mxu_dtype=jnp.float32):
    B, T = x.shape
    L = params["n_layers"]
    emb = params["embedding"]
    vocab, E = emb.shape
    H, V = params["fc_w"].shape

    # Time-major flat token ids (row t*B + b  <->  x[b, t]); lands in SMEM.
    ids_tm = x.T.reshape(T * B).astype(jnp.int32)

    layer_w = []
    for l in range(L):
        layer_w += [params[f"w_ih_{l}"], params[f"w_hh_{l}"], params[f"b_{l}"]]

    kernel = _make_seq_kernel(L, T, B, H, E, V, mxu_dtype)

    vmem = pltpu.MemorySpace.VMEM
    in_specs = (
        [pl.BlockSpec(memory_space=pltpu.MemorySpace.SMEM),   # token ids
         pl.BlockSpec(memory_space=pl.ANY),                   # embedding table (HBM)
         pl.BlockSpec(memory_space=vmem),                     # h0
         pl.BlockSpec(memory_space=vmem),                     # c0
         pl.BlockSpec(memory_space=vmem),                     # fc_w
         pl.BlockSpec(memory_space=vmem)]                     # fc_b
        + [pl.BlockSpec(memory_space=vmem)] * (3 * L)         # per-layer LSTM weights
    )

    p, h_out, c_out = pl.pallas_call(
        kernel,
        out_shape=(
            jax.ShapeDtypeStruct((B, T, V), jnp.float32),   # logits, batch_first
            jax.ShapeDtypeStruct((L, B, H), jnp.float32),   # final h
            jax.ShapeDtypeStruct((L, B, H), jnp.float32),   # final c
        ),
        in_specs=in_specs,
        out_specs=(
            pl.BlockSpec(memory_space=vmem),
            pl.BlockSpec(memory_space=vmem),
            pl.BlockSpec(memory_space=vmem),
        ),
        scratch_shapes=[
            pltpu.VMEM((T * B, E), emb.dtype),      # gathered embedding rows
            pltpu.SemaphoreType.DMA((T * B,)),      # one DMA sem per gathered row
        ],
        compiler_params=pltpu.CompilerParams(vmem_limit_bytes=64 * 1024 * 1024),
    )(ids_tm, emb, h, c, params["fc_w"], params["fc_b"].reshape(1, V), *layer_w)

    return p, h_out, c_out


# ----------------------------------------------------------------------------
# Pure-JAX reference (lax.scan) for correctness checking.
# ----------------------------------------------------------------------------
def seq_reference(params, x, h, c):
    e = jnp.take(params["embedding"].astype(jnp.float32), x, axis=0)
    layer_in = jnp.transpose(e, (1, 0, 2))
    h_fin, c_fin = [], []
    for l in range(params["n_layers"]):
        w_ih = params[f"w_ih_{l}"].astype(jnp.float32)
        w_hh = params[f"w_hh_{l}"].astype(jnp.float32)
        b_l = params[f"b_{l}"]
        H = w_hh.shape[0]

        def step(carry, x_t):
            h_t, c_t = carry
            g = x_t @ w_ih + h_t @ w_hh + b_l
            i_g = jax.nn.sigmoid(g[:, 0 * H:1 * H])
            f_g = jax.nn.sigmoid(g[:, 1 * H:2 * H])
            g_g = jnp.tanh(g[:, 2 * H:3 * H])
            o_g = jax.nn.sigmoid(g[:, 3 * H:4 * H])
            c_n = f_g * c_t + i_g * g_g
            h_n = o_g * jnp.tanh(c_n)
            return (h_n, c_n), h_n

        (hT, cT), o = jax.lax.scan(step, (h[l], c[l]), layer_in)
        h_fin.append(hT)
        c_fin.append(cT)
        layer_in = o
    o_bt = jnp.transpose(layer_in, (1, 0, 2))
    p = o_bt @ params["fc_w"].astype(jnp.float32) + params["fc_b"]
    return p, jnp.stack(h_fin, 0), jnp.stack(c_fin, 0)


# ----------------------------------------------------------------------------
# Deterministic parameter init (PyTorch-style uniform(-1/sqrt(H), 1/sqrt(H))).
# ----------------------------------------------------------------------------
def init_params(key, vocab_size, embed_dim, hidden_dim, n_layers):
    params = {"n_layers": n_layers}
    keys = jax.random.split(key, 3 + 4 * n_layers)
    params["embedding"] = jax.random.normal(keys[0], (vocab_size, embed_dim),
                                            jnp.float32) * 0.1
    bound = 1.0 / jnp.sqrt(hidden_dim)
    ki = 1
    for l in range(n_layers):
        in_dim = embed_dim if l == 0 else hidden_dim
        params[f"w_ih_{l}"] = jax.random.uniform(
            keys[ki], (in_dim, 4 * hidden_dim), jnp.float32, -bound, bound); ki += 1
        params[f"w_hh_{l}"] = jax.random.uniform(
            keys[ki], (hidden_dim, 4 * hidden_dim), jnp.float32, -bound, bound); ki += 1
        b_ih = jax.random.uniform(
            keys[ki], (4 * hidden_dim,), jnp.float32, -bound, bound); ki += 1
        b_hh = jax.random.uniform(
            keys[ki], (4 * hidden_dim,), jnp.float32, -bound, bound); ki += 1
        params[f"b_{l}"] = (b_ih + b_hh).reshape(1, 4 * hidden_dim)
    params["fc_w"] = jax.random.uniform(
        keys[-2], (hidden_dim, vocab_size), jnp.float32, -bound, bound)
    params["fc_b"] = jax.random.uniform(
        keys[-1], (vocab_size,), jnp.float32, -bound, bound)
    return params


if __name__ == "__main__":
    # Small shapes consistent with the module's forward.
    vocab_size, embed_dim, hidden_dim, n_layers = 64, 32, 32, 2
    B, T = 2, 8

    key = jax.random.PRNGKey(0)
    k_p, k_x, k_h, k_c = jax.random.split(key, 4)

    params = init_params(k_p, vocab_size, embed_dim, hidden_dim, n_layers)
    x = jax.random.randint(k_x, (B, T), 0, vocab_size, dtype=jnp.int32)
    h = jax.random.normal(k_h, (n_layers, B, hidden_dim), jnp.float32) * 0.1
    c = jax.random.normal(k_c, (n_layers, B, hidden_dim), jnp.float32) * 0.1

    # f32 path: directly comparable to the XLA reference.
    p, h_out, c_out = seq_forward(params, x, h, c, mxu_dtype=jnp.float32)
    jax.block_until_ready((p, h_out, c_out))

    p_ref, h_ref, c_ref = seq_reference(params, x, h, c)
    assert p.shape == (B, T, vocab_size)
    assert h_out.shape == (n_layers, B, hidden_dim)
    assert c_out.shape == (n_layers, B, hidden_dim)
    # Tolerance cushions MXU default-precision differences vs. the XLA reference.
    assert jnp.allclose(p, p_ref, atol=1e-3, rtol=1e-3)
    assert jnp.allclose(h_out, h_ref, atol=1e-3, rtol=1e-3)
    assert jnp.allclose(c_out, c_ref, atol=1e-3, rtol=1e-3)

    # bf16 weight-storage path (v6e/v7x MXU fast path); loose sanity check only,
    # since the f32 reference does not round weights/operands to bf16.
    params_bf16 = cast_weights(params, jnp.bfloat16)
    p16, h16, c16 = seq_forward(params_bf16, x, h, c, mxu_dtype=jnp.bfloat16)
    jax.block_until_ready((p16, h16, c16))
    assert bool(jnp.all(jnp.isfinite(p16)))
    assert jnp.allclose(p16, p_ref, atol=1e-1, rtol=1e-1)

    print("KERNEL_OK")
</pallas_src>

<mosaic_0001>
module attributes {stable_mosaic.version = 11 : i64} {
  func.func @kernel(%arg0: memref<16xi32, #tpu.memory_space<smem>>, %arg1: memref<64x32xf32, #tpu.memory_space<any>>, %arg2: memref<2x2x32xf32, #tpu.memory_space<vmem>>, %arg3: memref<2x2x32xf32, #tpu.memory_space<vmem>>, %arg4: memref<32x64xf32, #tpu.memory_space<vmem>>, %arg5: memref<1x64xf32, #tpu.memory_space<vmem>>, %arg6: memref<32x128xf32, #tpu.memory_space<vmem>>, %arg7: memref<32x128xf32, #tpu.memory_space<vmem>>, %arg8: memref<1x128xf32, #tpu.memory_space<vmem>>, %arg9: memref<32x128xf32, #tpu.memory_space<vmem>>, %arg10: memref<32x128xf32, #tpu.memory_space<vmem>>, %arg11: memref<1x128xf32, #tpu.memory_space<vmem>>, %arg12: memref<2x8x64xf32, #tpu.memory_space<vmem>>, %arg13: memref<2x2x32xf32, #tpu.memory_space<vmem>>, %arg14: memref<2x2x32xf32, #tpu.memory_space<vmem>>, %arg15: memref<16x32xf32, #tpu.memory_space<vmem>>, %arg16: memref<16x!tpu.dma_semaphore, #tpu.memory_space<semaphore_mem>>) attributes {dimension_semantics = [], scalar_prefetch = 0 : i64, scratch_operands = 2 : i64, tpu.core_type = #tpu.core_type<tc>} {
    %c0 = arith.constant 0 : index
    %0 = memref.load %arg0[%c0] : memref<16xi32, #tpu.memory_space<smem>>
    %c0_i32 = arith.constant 0 : i32
    %c0_i32_0 = arith.constant 0 : i32
    %1 = tpu.memref_slice %arg1[%0, %c0_i32_0] : memref<64x32xf32, #tpu.memory_space<any>> -> memref<1x32xf32, #tpu.memory_space<any>>
    %c0_i32_1 = arith.constant 0 : i32
    %c0_i32_2 = arith.constant 0 : i32
    %2 = tpu.memref_slice %arg15[%c0_i32_1, %c0_i32_2] : memref<16x32xf32, #tpu.memory_space<vmem>> -> memref<1x32xf32, #tpu.memory_space<vmem>>
    %3 = tpu.memref_slice %arg16[%c0_i32] : memref<16x!tpu.dma_semaphore, #tpu.memory_space<semaphore_mem>> -> memref<1x!tpu.dma_semaphore, #tpu.memory_space<semaphore_mem>>
    %4 = tpu.memref_squeeze %3 : memref<1x!tpu.dma_semaphore, #tpu.memory_space<semaphore_mem>> -> memref<!tpu.dma_semaphore, #tpu.memory_space<semaphore_mem>>
    tpu.enqueue_dma source(%1 : memref<1x32xf32, #tpu.memory_space<any>>) target(%2 : memref<1x32xf32, #tpu.memory_space<vmem>>) target_semaphore(%4 : memref<!tpu.dma_semaphore, #tpu.memory_space<semaphore_mem>>)
    %c1 = arith.constant 1 : index
    %5 = memref.load %arg0[%c1] : memref<16xi32, #tpu.memory_space<smem>>
    %c1_i32 = arith.constant 1 : i32
    %c0_i32_3 = arith.constant 0 : i32
    %6 = tpu.memref_slice %arg1[%5, %c0_i32_3] : memref<64x32xf32, #tpu.memory_space<any>> -> memref<1x32xf32, #tpu.memory_space<any>>
    %c1_i32_4 = arith.constant 1 : i32
    %c0_i32_5 = arith.constant 0 : i32
    %7 = tpu.memref_slice %arg15[%c1_i32_4, %c0_i32_5] : memref<16x32xf32, #tpu.memory_space<vmem>> -> memref<1x32xf32, #tpu.memory_space<vmem>>
    %8 = tpu.memref_slice %arg16[%c1_i32] : memref<16x!tpu.dma_semaphore, #tpu.memory_space<semaphore_mem>> -> memref<1x!tpu.dma_semaphore, #tpu.memory_space<semaphore_mem>>
    %9 = tpu.memref_squeeze %8 : memref<1x!tpu.dma_semaphore, #tpu.memory_space<semaphore_mem>> -> memref<!tpu.dma_semaphore, #tpu.memory_space<semaphore_mem>>
    tpu.enqueue_dma source(%6 : memref<1x32xf32, #tpu.memory_space<any>>) target(%7 : memref<1x32xf32, #tpu.memory_space<vmem>>) target_semaphore(%9 : memref<!tpu.dma_semaphore, #tpu.memory_space<semaphore_mem>>)
    %c2 = arith.constant 2 : index
    %10 = memref.load %arg0[%c2] : memref<16xi32, #tpu.memory_space<smem>>
    %c2_i32 = arith.constant 2 : i32
    %c0_i32_6 = arith.constant 0 : i32
    %11 = tpu.memref_slice %arg1[%10, %c0_i32_6] : memref<64x32xf32, #tpu.memory_space<any>> -> memref<1x32xf32, #tpu.memory_space<any>>
    %c2_i32_7 = arith.constant 2 : i32
    %c0_i32_8 = arith.constant 0 : i32
    %12 = tpu.memref_slice %arg15[%c2_i32_7, %c0_i32_8] : memref<16x32xf32, #tpu.memory_space<vmem>> -> memref<1x32xf32, #tpu.memory_space<vmem>>
    %13 = tpu.memref_slice %arg16[%c2_i32] : memref<16x!tpu.dma_semaphore, #tpu.memory_space<semaphore_mem>> -> memref<1x!tpu.dma_semaphore, #tpu.memory_space<semaphore_mem>>
    %14 = tpu.memref_squeeze %13 : memref<1x!tpu.dma_semaphore, #tpu.memory_space<semaphore_mem>> -> memref<!tpu.dma_semaphore, #tpu.memory_space<semaphore_mem>>
    tpu.enqueue_dma source(%11 : memref<1x32xf32, #tpu.memory_space<any>>) target(%12 : memref<1x32xf32, #tpu.memory_space<vmem>>) target_semaphore(%14 : memref<!tpu.dma_semaphore, #tpu.memory_space<semaphore_mem>>)
    %c3 = arith.constant 3 : index
    %15 = memref.load %arg0[%c3] : memref<16xi32, #tpu.memory_space<smem>>
    %c3_i32 = arith.constant 3 : i32
    %c0_i32_9 = arith.constant 0 : i32
    %16 = tpu.memref_slice %arg1[%15, %c0_i32_9] : memref<64x32xf32, #tpu.memory_space<any>> -> memref<1x32xf32, #tpu.memory_space<any>>
    %c3_i32_10 = arith.constant 3 : i32
    %c0_i32_11 = arith.constant 0 : i32
    %17 = tpu.memref_slice %arg15[%c3_i32_10, %c0_i32_11] : memref<16x32xf32, #tpu.memory_space<vmem>> -> memref<1x32xf32, #tpu.memory_space<vmem>>
    %18 = tpu.memref_slice %arg16[%c3_i32] : memref<16x!tpu.dma_semaphore, #tpu.memory_space<semaphore_mem>> -> memref<1x!tpu.dma_semaphore, #tpu.memory_space<semaphore_mem>>
    %19 = tpu.memref_squeeze %18 : memref<1x!tpu.dma_semaphore, #tpu.memory_space<semaphore_mem>> -> memref<!tpu.dma_semaphore, #tpu.memory_space<semaphore_mem>>
    tpu.enqueue_dma source(%16 : memref<1x32xf32, #tpu.memory_space<any>>) target(%17 : memref<1x32xf32, #tpu.memory_space<vmem>>) target_semaphore(%19 : memref<!tpu.dma_semaphore, #tpu.memory_space<semaphore_mem>>)
    %c4 = arith.constant 4 : index
    %20 = memref.load %arg0[%c4] : memref<16xi32, #tpu.memory_space<smem>>
    %c4_i32 = arith.constant 4 : i32
    %c0_i32_12 = arith.constant 0 : i32
    %21 = tpu.memref_slice %arg1[%20, %c0_i32_12] : memref<64x32xf32, #tpu.memory_space<any>> -> memref<1x32xf32, #tpu.memory_space<any>>
    %c4_i32_13 = arith.constant 4 : i32
    %c0_i32_14 = arith.constant 0 : i32
    %22 = tpu.memref_slice %arg15[%c4_i32_13, %c0_i32_14] : memref<16x32xf32, #tpu.memory_space<vmem>> -> memref<1x32xf32, #tpu.memory_space<vmem>>
    %23 = tpu.memref_slice %arg16[%c4_i32] : memref<16x!tpu.dma_semaphore, #tpu.memory_space<semaphore_mem>> -> memref<1x!tpu.dma_semaphore, #tpu.memory_space<semaphore_mem>>
    %24 = tpu.memref_squeeze %23 : memref<1x!tpu.dma_semaphore, #tpu.memory_space<semaphore_mem>> -> memref<!tpu.dma_semaphore, #tpu.memory_space<semaphore_mem>>
    tpu.enqueue_dma source(%21 : memref<1x32xf32, #tpu.memory_space<any>>) target(%22 : memref<1x32xf32, #tpu.memory_space<vmem>>) target_semaphore(%24 : memref<!tpu.dma_semaphore, #tpu.memory_space<semaphore_mem>>)
    %c5 = arith.constant 5 : index
    %25 = memref.load %arg0[%c5] : memref<16xi32, #tpu.memory_space<smem>>
    %c5_i32 = arith.constant 5 : i32
    %c0_i32_15 = arith.constant 0 : i32
    %26 = tpu.memref_slice %arg1[%25, %c0_i32_15] : memref<64x32xf32, #tpu.memory_space<any>> -> memref<1x32xf32, #tpu.memory_space<any>>
    %c5_i32_16 = arith.constant 5 : i32
    %c0_i32_17 = arith.constant 0 : i32
    %27 = tpu.memref_slice %arg15[%c5_i32_16, %c0_i32_17] : memref<16x32xf32, #tpu.memory_space<vmem>> -> memref<1x32xf32, #tpu.memory_space<vmem>>
    %28 = tpu.memref_slice %arg16[%c5_i32] : memref<16x!tpu.dma_semaphore, #tpu.memory_space<semaphore_mem>> -> memref<1x!tpu.dma_semaphore, #tpu.memory_space<semaphore_mem>>
    %29 = tpu.memref_squeeze %28 : memref<1x!tpu.dma_semaphore, #tpu.memory_space<semaphore_mem>> -> memref<!tpu.dma_semaphore, #tpu.memory_space<semaphore_mem>>
    tpu.enqueue_dma source(%26 : memref<1x32xf32, #tpu.memory_space<any>>) target(%27 : memref<1x32xf32, #tpu.memory_space<vmem>>) target_semaphore(%29 : memref<!tpu.dma_semaphore, #tpu.memory_space<semaphore_mem>>)
    %c6 = arith.constant 6 : index
    %30 = memref.load %arg0[%c6] : memref<16xi32, #tpu.memory_space<smem>>
    %c6_i32 = arith.constant 6 : i32
    %c0_i32_18 = arith.constant 0 : i32
    %31 = tpu.memref_slice %arg1[%30, %c0_i32_18] : memref<64x32xf32, #tpu.memory_space<any>> -> memref<1x32xf32, #tpu.memory_space<any>>
    %c6_i32_19 = arith.constant 6 : i32
    %c0_i32_20 = arith.constant 0 : i32
    %32 = tpu.memref_slice %arg15[%c6_i32_19, %c0_i32_20] : memref<16x32xf32, #tpu.memory_space<vmem>> -> memref<1x32xf32, #tpu.memory_space<vmem>>
    %33 = tpu.memref_slice %arg16[%c6_i32] : memref<16x!tpu.dma_semaphore, #tpu.memory_space<semaphore_mem>> -> memref<1x!tpu.dma_semaphore, #tpu.memory_space<semaphore_mem>>
    %34 = tpu.memref_squeeze %33 : memref<1x!tpu.dma_semaphore, #tpu.memory_space<semaphore_mem>> -> memref<!tpu.dma_semaphore, #tpu.memory_space<semaphore_mem>>
    tpu.enqueue_dma source(%31 : memref<1x32xf32, #tpu.memory_space<any>>) target(%32 : memref<1x32xf32, #tpu.memory_space<vmem>>) target_semaphore(%34 : memref<!tpu.dma_semaphore, #tpu.memory_space<semaphore_mem>>)
    %c7 = arith.constant 7 : index
    %35 = memref.load %arg0[%c7] : memref<16xi32, #tpu.memory_space<smem>>
    %c7_i32 = arith.constant 7 : i32
    %c0_i32_21 = arith.constant 0 : i32
    %36 = tpu.memref_slice %arg1[%35, %c0_i32_21] : memref<64x32xf32, #tpu.memory_space<any>> -> memref<1x32xf32, #tpu.memory_space<any>>
    %c7_i32_22 = arith.constant 7 : i32
    %c0_i32_23 = arith.constant 0 : i32
    %37 = tpu.memref_slice %arg15[%c7_i32_22, %c0_i32_23] : memref<16x32xf32, #tpu.memory_space<vmem>> -> memref<1x32xf32, #tpu.memory_space<vmem>>
    %38 = tpu.memref_slice %arg16[%c7_i32] : memref<16x!tpu.dma_semaphore, #tpu.memory_space<semaphore_mem>> -> memref<1x!tpu.dma_semaphore, #tpu.memory_space<semaphore_mem>>
    %39 = tpu.memref_squeeze %38 : memref<1x!tpu.dma_semaphore, #tpu.memory_space<semaphore_mem>> -> memref<!tpu.dma_semaphore, #tpu.memory_space<semaphore_mem>>
    tpu.enqueue_dma source(%36 : memref<1x32xf32, #tpu.memory_space<any>>) target(%37 : memref<1x32xf32, #tpu.memory_space<vmem>>) target_semaphore(%39 : memref<!tpu.dma_semaphore, #tpu.memory_space<semaphore_mem>>)
    %c8 = arith.constant 8 : index
    %40 = memref.load %arg0[%c8] : memref<16xi32, #tpu.memory_space<smem>>
    %c8_i32 = arith.constant 8 : i32
    %c0_i32_24 = arith.constant 0 : i32
    %41 = tpu.memref_slice %arg1[%40, %c0_i32_24] : memref<64x32xf32, #tpu.memory_space<any>> -> memref<1x32xf32, #tpu.memory_space<any>>
    %c8_i32_25 = arith.constant 8 : i32
    %c0_i32_26 = arith.constant 0 : i32
    %42 = tpu.memref_slice %arg15[%c8_i32_25, %c0_i32_26] : memref<16x32xf32, #tpu.memory_space<vmem>> -> memref<1x32xf32, #tpu.memory_space<vmem>>
    %43 = tpu.memref_slice %arg16[%c8_i32] : memref<16x!tpu.dma_semaphore, #tpu.memory_space<semaphore_mem>> -> memref<1x!tpu.dma_semaphore, #tpu.memory_space<semaphore_mem>>
    %44 = tpu.memref_squeeze %43 : memref<1x!tpu.dma_semaphore, #tpu.memory_space<semaphore_mem>> -> memref<!tpu.dma_semaphore, #tpu.memory_space<semaphore_mem>>
    tpu.enqueue_dma source(%41 : memref<1x32xf32, #tpu.memory_space<any>>) target(%42 : memref<1x32xf32, #tpu.memory_space<vmem>>) target_semaphore(%44 : memref<!tpu.dma_semaphore, #tpu.memory_space<semaphore_mem>>)
    %c9 = arith.constant 9 : index
    %45 = memref.load %arg0[%c9] : memref<16xi32, #tpu.memory_space<smem>>
    %c9_i32 = arith.constant 9 : i32
    %c0_i32_27 = arith.constant 0 : i32
    %46 = tpu.memref_slice %arg1[%45, %c0_i32_27] : memref<64x32xf32, #tpu.memory_space<any>> -> memref<1x32xf32, #tpu.memory_space<any>>
    %c9_i32_28 = arith.constant 9 : i32
    %c0_i32_29 = arith.constant 0 : i32
    %47 = tpu.memref_slice %arg15[%c9_i32_28, %c0_i32_29] : memref<16x32xf32, #tpu.memory_space<vmem>> -> memref<1x32xf32, #tpu.memory_space<vmem>>
    %48 = tpu.memref_slice %arg16[%c9_i32] : memref<16x!tpu.dma_semaphore, #tpu.memory_space<semaphore_mem>> -> memref<1x!tpu.dma_semaphore, #tpu.memory_space<semaphore_mem>>
    %49 = tpu.memref_squeeze %48 : memref<1x!tpu.dma_semaphore, #tpu.memory_space<semaphore_mem>> -> memref<!tpu.dma_semaphore, #tpu.memory_space<semaphore_mem>>
    tpu.enqueue_dma source(%46 : memref<1x32xf32, #tpu.memory_space<any>>) target(%47 : memref<1x32xf32, #tpu.memory_space<vmem>>) target_semaphore(%49 : memref<!tpu.dma_semaphore, #tpu.memory_space<semaphore_mem>>)
    %c10 = arith.constant 10 : index
    %50 = memref.load %arg0[%c10] : memref<16xi32, #tpu.memory_space<smem>>
    %c10_i32 = arith.constant 10 : i32
    %c0_i32_30 = arith.constant 0 : i32
    %51 = tpu.memref_slice %arg1[%50, %c0_i32_30] : memref<64x32xf32, #tpu.memory_space<any>> -> memref<1x32xf32, #tpu.memory_space<any>>
    %c10_i32_31 = arith.constant 10 : i32
    %c0_i32_32 = arith.constant 0 : i32
    %52 = tpu.memref_slice %arg15[%c10_i32_31, %c0_i32_32] : memref<16x32xf32, #tpu.memory_space<vmem>> -> memref<1x32xf32, #tpu.memory_space<vmem>>
    %53 = tpu.memref_slice %arg16[%c10_i32] : memref<16x!tpu.dma_semaphore, #tpu.memory_space<semaphore_mem>> -> memref<1x!tpu.dma_semaphore, #tpu.memory_space<semaphore_mem>>
    %54 = tpu.memref_squeeze %53 : memref<1x!tpu.dma_semaphore, #tpu.memory_space<semaphore_mem>> -> memref<!tpu.dma_semaphore, #tpu.memory_space<semaphore_mem>>
    tpu.enqueue_dma source(%51 : memref<1x32xf32, #tpu.memory_space<any>>) target(%52 : memref<1x32xf32, #tpu.memory_space<vmem>>) target_semaphore(%54 : memref<!tpu.dma_semaphore, #tpu.memory_space<semaphore_mem>>)
    %c11 = arith.constant 11 : index
    %55 = memref.load %arg0[%c11] : memref<16xi32, #tpu.memory_space<smem>>
    %c11_i32 = arith.constant 11 : i32
    %c0_i32_33 = arith.constant 0 : i32
    %56 = tpu.memref_slice %arg1[%55, %c0_i32_33] : memref<64x32xf32, #tpu.memory_space<any>> -> memref<1x32xf32, #tpu.memory_space<any>>
    %c11_i32_34 = arith.constant 11 : i32
    %c0_i32_35 = arith.constant 0 : i32
    %57 = tpu.memref_slice %arg15[%c11_i32_34, %c0_i32_35] : memref<16x32xf32, #tpu.memory_space<vmem>> -> memref<1x32xf32, #tpu.memory_space<vmem>>
    %58 = tpu.memref_slice %arg16[%c11_i32] : memref<16x!tpu.dma_semaphore, #tpu.memory_space<semaphore_mem>> -> memref<1x!tpu.dma_semaphore, #tpu.memory_space<semaphore_mem>>
    %59 = tpu.memref_squeeze %58 : memref<1x!tpu.dma_semaphore, #tpu.memory_space<semaphore_mem>> -> memref<!tpu.dma_semaphore, #tpu.memory_space<semaphore_mem>>
    tpu.enqueue_dma source(%56 : memref<1x32xf32, #tpu.memory_space<any>>) target(%57 : memref<1x32xf32, #tpu.memory_space<vmem>>) target_semaphore(%59 : memref<!tpu.dma_semaphore, #tpu.memory_space<semaphore_mem>>)
    %c12 = arith.constant 12 : index
    %60 = memref.load %arg0[%c12] : memref<16xi32, #tpu.memory_space<smem>>
    %c12_i32 = arith.constant 12 : i32
    %c0_i32_36 = arith.constant 0 : i32
    %61 = tpu.memref_slice %arg1[%60, %c0_i32_36] : memref<64x32xf32, #tpu.memory_space<any>> -> memref<1x32xf32, #tpu.memory_space<any>>
    %c12_i32_37 = arith.constant 12 : i32
    %c0_i32_38 = arith.constant 0 : i32
    %62 = tpu.memref_slice %arg15[%c12_i32_37, %c0_i32_38] : memref<16x32xf32, #tpu.memory_space<vmem>> -> memref<1x32xf32, #tpu.memory_space<vmem>>
    %63 = tpu.memref_slice %arg16[%c12_i32] : memref<16x!tpu.dma_semaphore, #tpu.memory_space<semaphore_mem>> -> memref<1x!tpu.dma_semaphore, #tpu.memory_space<semaphore_mem>>
    %64 = tpu.memref_squeeze %63 : memref<1x!tpu.dma_semaphore, #tpu.memory_space<semaphore_mem>> -> memref<!tpu.dma_semaphore, #tpu.memory_space<semaphore_mem>>
    tpu.enqueue_dma source(%61 : memref<1x32xf32, #tpu.memory_space<any>>) target(%62 : memref<1x32xf32, #tpu.memory_space<vmem>>) target_semaphore(%64 : memref<!tpu.dma_semaphore, #tpu.memory_space<semaphore_mem>>)
    %c13 = arith.constant 13 : index
    %65 = memref.load %arg0[%c13] : memref<16xi32, #tpu.memory_space<smem>>
    %c13_i32 = arith.constant 13 : i32
    %c0_i32_39 = arith.constant 0 : i32
    %66 = tpu.memref_slice %arg1[%65, %c0_i32_39] : memref<64x32xf32, #tpu.memory_space<any>> -> memref<1x32xf32, #tpu.memory_space<any>>
    %c13_i32_40 = arith.constant 13 : i32
    %c0_i32_41 = arith.constant 0 : i32
    %67 = tpu.memref_slice %arg15[%c13_i32_40, %c0_i32_41] : memref<16x32xf32, #tpu.memory_space<vmem>> -> memref<1x32xf32, #tpu.memory_space<vmem>>
    %68 = tpu.memref_slice %arg16[%c13_i32] : memref<16x!tpu.dma_semaphore, #tpu.memory_space<semaphore_mem>> -> memref<1x!tpu.dma_semaphore, #tpu.memory_space<semaphore_mem>>
    %69 = tpu.memref_squeeze %68 : memref<1x!tpu.dma_semaphore, #tpu.memory_space<semaphore_mem>> -> memref<!tpu.dma_semaphore, #tpu.memory_space<semaphore_mem>>
    tpu.enqueue_dma source(%66 : memref<1x32xf32, #tpu.memory_space<any>>) target(%67 : memref<1x32xf32, #tpu.memory_space<vmem>>) target_semaphore(%69 : memref<!tpu.dma_semaphore, #tpu.memory_space<semaphore_mem>>)
    %c14 = arith.constant 14 : index
    %70 = memref.load %arg0[%c14] : memref<16xi32, #tpu.memory_space<smem>>
    %c14_i32 = arith.constant 14 : i32
    %c0_i32_42 = arith.constant 0 : i32
    %71 = tpu.memref_slice %arg1[%70, %c0_i32_42] : memref<64x32xf32, #tpu.memory_space<any>> -> memref<1x32xf32, #tpu.memory_space<any>>
    %c14_i32_43 = arith.constant 14 : i32
    %c0_i32_44 = arith.constant 0 : i32
    %72 = tpu.memref_slice %arg15[%c14_i32_43, %c0_i32_44] : memref<16x32xf32, #tpu.memory_space<vmem>> -> memref<1x32xf32, #tpu.memory_space<vmem>>
    %73 = tpu.memref_slice %arg16[%c14_i32] : memref<16x!tpu.dma_semaphore, #tpu.memory_space<semaphore_mem>> -> memref<1x!tpu.dma_semaphore, #tpu.memory_space<semaphore_mem>>
    %74 = tpu.memref_squeeze %73 : memref<1x!tpu.dma_semaphore, #tpu.memory_space<semaphore_mem>> -> memref<!tpu.dma_semaphore, #tpu.memory_space<semaphore_mem>>
    tpu.enqueue_dma source(%71 : memref<1x32xf32, #tpu.memory_space<any>>) target(%72 : memref<1x32xf32, #tpu.memory_space<vmem>>) target_semaphore(%74 : memref<!tpu.dma_semaphore, #tpu.memory_space<semaphore_mem>>)
    %c15 = arith.constant 15 : index
    %75 = memref.load %arg0[%c15] : memref<16xi32, #tpu.memory_space<smem>>
    %c15_i32 = arith.constant 15 : i32
    %c0_i32_45 = arith.constant 0 : i32
    %76 = tpu.memref_slice %arg1[%75, %c0_i32_45] : memref<64x32xf32, #tpu.memory_space<any>> -> memref<1x32xf32, #tpu.memory_space<any>>
    %c15_i32_46 = arith.constant 15 : i32
    %c0_i32_47 = arith.constant 0 : i32
    %77 = tpu.memref_slice %arg15[%c15_i32_46, %c0_i32_47] : memref<16x32xf32, #tpu.memory_space<vmem>> -> memref<1x32xf32, #tpu.memory_space<vmem>>
    %78 = tpu.memref_slice %arg16[%c15_i32] : memref<16x!tpu.dma_semaphore, #tpu.memory_space<semaphore_mem>> -> memref<1x!tpu.dma_semaphore, #tpu.memory_space<semaphore_mem>>
    %79 = tpu.memref_squeeze %78 : memref<1x!tpu.dma_semaphore, #tpu.memory_space<semaphore_mem>> -> memref<!tpu.dma_semaphore, #tpu.memory_space<semaphore_mem>>
    tpu.enqueue_dma source(%76 : memref<1x32xf32, #tpu.memory_space<any>>) target(%77 : memref<1x32xf32, #tpu.memory_space<vmem>>) target_semaphore(%79 : memref<!tpu.dma_semaphore, #tpu.memory_space<semaphore_mem>>)
    %c0_i32_48 = arith.constant 0 : i32
    %c0_i32_49 = arith.constant 0 : i32
    %80 = tpu.memref_slice %arg1[%0, %c0_i32_49] : memref<64x32xf32, #tpu.memory_space<any>> -> memref<1x32xf32, #tpu.memory_space<any>>
    %c0_i32_50 = arith.constant 0 : i32
    %c0_i32_51 = arith.constant 0 : i32
    %81 = tpu.memref_slice %arg15[%c0_i32_50, %c0_i32_51] : memref<16x32xf32, #tpu.memory_space<vmem>> -> memref<1x32xf32, #tpu.memory_space<vmem>>
    %82 = tpu.memref_slice %arg16[%c0_i32_48] : memref<16x!tpu.dma_semaphore, #tpu.memory_space<semaphore_mem>> -> memref<1x!tpu.dma_semaphore, #tpu.memory_space<semaphore_mem>>
    %83 = tpu.memref_squeeze %82 : memref<1x!tpu.dma_semaphore, #tpu.memory_space<semaphore_mem>> -> memref<!tpu.dma_semaphore, #tpu.memory_space<semaphore_mem>>
    tpu.wait_dma2 semaphore(%83 : memref<!tpu.dma_semaphore, #tpu.memory_space<semaphore_mem>>) src(%80 : memref<1x32xf32, #tpu.memory_space<any>>) dst(%81 : memref<1x32xf32, #tpu.memory_space<vmem>>)
    %c1_i32_52 = arith.constant 1 : i32
    %c0_i32_53 = arith.constant 0 : i32
    %84 = tpu.memref_slice %arg1[%5, %c0_i32_53] : memref<64x32xf32, #tpu.memory_space<any>> -> memref<1x32xf32, #tpu.memory_space<any>>
    %c1_i32_54 = arith.constant 1 : i32
    %c0_i32_55 = arith.constant 0 : i32
    %85 = tpu.memref_slice %arg15[%c1_i32_54, %c0_i32_55] : memref<16x32xf32, #tpu.memory_space<vmem>> -> memref<1x32xf32, #tpu.memory_space<vmem>>
    %86 = tpu.memref_slice %arg16[%c1_i32_52] : memref<16x!tpu.dma_semaphore, #tpu.memory_space<semaphore_mem>> -> memref<1x!tpu.dma_semaphore, #tpu.memory_space<semaphore_mem>>
    %87 = tpu.memref_squeeze %86 : memref<1x!tpu.dma_semaphore, #tpu.memory_space<semaphore_mem>> -> memref<!tpu.dma_semaphore, #tpu.memory_space<semaphore_mem>>
    tpu.wait_dma2 semaphore(%87 : memref<!tpu.dma_semaphore, #tpu.memory_space<semaphore_mem>>) src(%84 : memref<1x32xf32, #tpu.memory_space<any>>) dst(%85 : memref<1x32xf32, #tpu.memory_space<vmem>>)
    %c2_i32_56 = arith.constant 2 : i32
    %c0_i32_57 = arith.constant 0 : i32
    %88 = tpu.memref_slice %arg1[%10, %c0_i32_57] : memref<64x32xf32, #tpu.memory_space<any>> -> memref<1x32xf32, #tpu.memory_space<any>>
    %c2_i32_58 = arith.constant 2 : i32
    %c0_i32_59 = arith.constant 0 : i32
    %89 = tpu.memref_slice %arg15[%c2_i32_58, %c0_i32_59] : memref<16x32xf32, #tpu.memory_space<vmem>> -> memref<1x32xf32, #tpu.memory_space<vmem>>
    %90 = tpu.memref_slice %arg16[%c2_i32_56] : memref<16x!tpu.dma_semaphore, #tpu.memory_space<semaphore_mem>> -> memref<1x!tpu.dma_semaphore, #tpu.memory_space<semaphore_mem>>
    %91 = tpu.memref_squeeze %90 : memref<1x!tpu.dma_semaphore, #tpu.memory_space<semaphore_mem>> -> memref<!tpu.dma_semaphore, #tpu.memory_space<semaphore_mem>>
    tpu.wait_dma2 semaphore(%91 : memref<!tpu.dma_semaphore, #tpu.memory_space<semaphore_mem>>) src(%88 : memref<1x32xf32, #tpu.memory_space<any>>) dst(%89 : memref<1x32xf32, #tpu.memory_space<vmem>>)
    %c3_i32_60 = arith.constant 3 : i32
    %c0_i32_61 = arith.constant 0 : i32
    %92 = tpu.memref_slice %arg1[%15, %c0_i32_61] : memref<64x32xf32, #tpu.memory_space<any>> -> memref<1x32xf32, #tpu.memory_space<any>>
    %c3_i32_62 = arith.constant 3 : i32
    %c0_i32_63 = arith.constant 0 : i32
    %93 = tpu.memref_slice %arg15[%c3_i32_62, %c0_i32_63] : memref<16x32xf32, #tpu.memory_space<vmem>> -> memref<1x32xf32, #tpu.memory_space<vmem>>
    %94 = tpu.memref_slice %arg16[%c3_i32_60] : memref<16x!tpu.dma_semaphore, #tpu.memory_space<semaphore_mem>> -> memref<1x!tpu.dma_semaphore, #tpu.memory_space<semaphore_mem>>
    %95 = tpu.memref_squeeze %94 : memref<1x!tpu.dma_semaphore, #tpu.memory_space<semaphore_mem>> -> memref<!tpu.dma_semaphore, #tpu.memory_space<semaphore_mem>>
    tpu.wait_dma2 semaphore(%95 : memref<!tpu.dma_semaphore, #tpu.memory_space<semaphore_mem>>) src(%92 : memref<1x32xf32, #tpu.memory_space<any>>) dst(%93 : memref<1x32xf32, #tpu.memory_space<vmem>>)
    %c4_i32_64 = arith.constant 4 : i32
    %c0_i32_65 = arith.constant 0 : i32
    %96 = tpu.memref_slice %arg1[%20, %c0_i32_65] : memref<64x32xf32, #tpu.memory_space<any>> -> memref<1x32xf32, #tpu.memory_space<any>>
    %c4_i32_66 = arith.constant 4 : i32
    %c0_i32_67 = arith.constant 0 : i32
    %97 = tpu.memref_slice %arg15[%c4_i32_66, %c0_i32_67] : memref<16x32xf32, #tpu.memory_space<vmem>> -> memref<1x32xf32, #tpu.memory_space<vmem>>
    %98 = tpu.memref_slice %arg16[%c4_i32_64] : memref<16x!tpu.dma_semaphore, #tpu.memory_space<semaphore_mem>> -> memref<1x!tpu.dma_semaphore, #tpu.memory_space<semaphore_mem>>
    %99 = tpu.memref_squeeze %98 : memref<1x!tpu.dma_semaphore, #tpu.memory_space<semaphore_mem>> -> memref<!tpu.dma_semaphore, #tpu.memory_space<semaphore_mem>>
    tpu.wait_dma2 semaphore(%99 : memref<!tpu.dma_semaphore, #tpu.memory_space<semaphore_mem>>) src(%96 : memref<1x32xf32, #tpu.memory_space<any>>) dst(%97 : memref<1x32xf32, #tpu.memory_space<vmem>>)
    %c5_i32_68 = arith.constant 5 : i32
    %c0_i32_69 = arith.constant 0 : i32
    %100 = tpu.memref_slice %arg1[%25, %c0_i32_69] : memref<64x32xf32, #tpu.memory_space<any>> -> memref<1x32xf32, #tpu.memory_space<any>>
    %c5_i32_70 = arith.constant 5 : i32
    %c0_i32_71 = arith.constant 0 : i32
    %101 = tpu.memref_slice %arg15[%c5_i32_70, %c0_i32_71] : memref<16x32xf32, #tpu.memory_space<vmem>> -> memref<1x32xf32, #tpu.memory_space<vmem>>
    %102 = tpu.memref_slice %arg16[%c5_i32_68] : memref<16x!tpu.dma_semaphore, #tpu.memory_space<semaphore_mem>> -> memref<1x!tpu.dma_semaphore, #tpu.memory_space<semaphore_mem>>
    %103 = tpu.memref_squeeze %102 : memref<1x!tpu.dma_semaphore, #tpu.memory_space<semaphore_mem>> -> memref<!tpu.dma_semaphore, #tpu.memory_space<semaphore_mem>>
    tpu.wait_dma2 semaphore(%103 : memref<!tpu.dma_semaphore, #tpu.memory_space<semaphore_mem>>) src(%100 : memref<1x32xf32, #tpu.memory_space<any>>) dst(%101 : memref<1x32xf32, #tpu.memory_space<vmem>>)
    %c6_i32_72 = arith.constant 6 : i32
    %c0_i32_73 = arith.constant 0 : i32
    %104 = tpu.memref_slice %arg1[%30, %c0_i32_73] : memref<64x32xf32, #tpu.memory_space<any>> -> memref<1x32xf32, #tpu.memory_space<any>>
    %c6_i32_74 = arith.constant 6 : i32
    %c0_i32_75 = arith.constant 0 : i32
    %105 = tpu.memref_slice %arg15[%c6_i32_74, %c0_i32_75] : memref<16x32xf32, #tpu.memory_space<vmem>> -> memref<1x32xf32, #tpu.memory_space<vmem>>
    %106 = tpu.memref_slice %arg16[%c6_i32_72] : memref<16x!tpu.dma_semaphore, #tpu.memory_space<semaphore_mem>> -> memref<1x!tpu.dma_semaphore, #tpu.memory_space<semaphore_mem>>
    %107 = tpu.memref_squeeze %106 : memref<1x!tpu.dma_semaphore, #tpu.memory_space<semaphore_mem>> -> memref<!tpu.dma_semaphore, #tpu.memory_space<semaphore_mem>>
    tpu.wait_dma2 semaphore(%107 : memref<!tpu.dma_semaphore, #tpu.memory_space<semaphore_mem>>) src(%104 : memref<1x32xf32, #tpu.memory_space<any>>) dst(%105 : memref<1x32xf32, #tpu.memory_space<vmem>>)
    %c7_i32_76 = arith.constant 7 : i32
    %c0_i32_77 = arith.constant 0 : i32
    %108 = tpu.memref_slice %arg1[%35, %c0_i32_77] : memref<64x32xf32, #tpu.memory_space<any>> -> memref<1x32xf32, #tpu.memory_space<any>>
    %c7_i32_78 = arith.constant 7 : i32
    %c0_i32_79 = arith.constant 0 : i32
    %109 = tpu.memref_slice %arg15[%c7_i32_78, %c0_i32_79] : memref<16x32xf32, #tpu.memory_space<vmem>> -> memref<1x32xf32, #tpu.memory_space<vmem>>
    %110 = tpu.memref_slice %arg16[%c7_i32_76] : memref<16x!tpu.dma_semaphore, #tpu.memory_space<semaphore_mem>> -> memref<1x!tpu.dma_semaphore, #tpu.memory_space<semaphore_mem>>
    %111 = tpu.memref_squeeze %110 : memref<1x!tpu.dma_semaphore, #tpu.memory_space<semaphore_mem>> -> memref<!tpu.dma_semaphore, #tpu.memory_space<semaphore_mem>>
    tpu.wait_dma2 semaphore(%111 : memref<!tpu.dma_semaphore, #tpu.memory_space<semaphore_mem>>) src(%108 : memref<1x32xf32, #tpu.memory_space<any>>) dst(%109 : memref<1x32xf32, #tpu.memory_space<vmem>>)
    %c8_i32_80 = arith.constant 8 : i32
    %c0_i32_81 = arith.constant 0 : i32
    %112 = tpu.memref_slice %arg1[%40, %c0_i32_81] : memref<64x32xf32, #tpu.memory_space<any>> -> memref<1x32xf32, #tpu.memory_space<any>>
    %c8_i32_82 = arith.constant 8 : i32
    %c0_i32_83 = arith.constant 0 : i32
    %113 = tpu.memref_slice %arg15[%c8_i32_82, %c0_i32_83] : memref<16x32xf32, #tpu.memory_space<vmem>> -> memref<1x32xf32, #tpu.memory_space<vmem>>
    %114 = tpu.memref_slice %arg16[%c8_i32_80] : memref<16x!tpu.dma_semaphore, #tpu.memory_space<semaphore_mem>> -> memref<1x!tpu.dma_semaphore, #tpu.memory_space<semaphore_mem>>
    %115 = tpu.memref_squeeze %114 : memref<1x!tpu.dma_semaphore, #tpu.memory_space<semaphore_mem>> -> memref<!tpu.dma_semaphore, #tpu.memory_space<semaphore_mem>>
    tpu.wait_dma2 semaphore(%115 : memref<!tpu.dma_semaphore, #tpu.memory_space<semaphore_mem>>) src(%112 : memref<1x32xf32, #tpu.memory_space<any>>) dst(%113 : memref<1x32xf32, #tpu.memory_space<vmem>>)
    %c9_i32_84 = arith.constant 9 : i32
    %c0_i32_85 = arith.constant 0 : i32
    %116 = tpu.memref_slice %arg1[%45, %c0_i32_85] : memref<64x32xf32, #tpu.memory_space<any>> -> memref<1x32xf32, #tpu.memory_space<any>>
    %c9_i32_86 = arith.constant 9 : i32
    %c0_i32_87 = arith.constant 0 : i32
    %117 = tpu.memref_slice %arg15[%c9_i32_86, %c0_i32_87] : memref<16x32xf32, #tpu.memory_space<vmem>> -> memref<1x32xf32, #tpu.memory_space<vmem>>
    %118 = tpu.memref_slice %arg16[%c9_i32_84] : memref<16x!tpu.dma_semaphore, #tpu.memory_space<semaphore_mem>> -> memref<1x!tpu.dma_semaphore, #tpu.memory_space<semaphore_mem>>
    %119 = tpu.memref_squeeze %118 : memref<1x!tpu.dma_semaphore, #tpu.memory_space<semaphore_mem>> -> memref<!tpu.dma_semaphore, #tpu.memory_space<semaphore_mem>>
    tpu.wait_dma2 semaphore(%119 : memref<!tpu.dma_semaphore, #tpu.memory_space<semaphore_mem>>) src(%116 : memref<1x32xf32, #tpu.memory_space<any>>) dst(%117 : memref<1x32xf32, #tpu.memory_space<vmem>>)
    %c10_i32_88 = arith.constant 10 : i32
    %c0_i32_89 = arith.constant 0 : i32
    %120 = tpu.memref_slice %arg1[%50, %c0_i32_89] : memref<64x32xf32, #tpu.memory_space<any>> -> memref<1x32xf32, #tpu.memory_space<any>>
    %c10_i32_90 = arith.constant 10 : i32
    %c0_i32_91 = arith.constant 0 : i32
    %121 = tpu.memref_slice %arg15[%c10_i32_90, %c0_i32_91] : memref<16x32xf32, #tpu.memory_space<vmem>> -> memref<1x32xf32, #tpu.memory_space<vmem>>
    %122 = tpu.memref_slice %arg16[%c10_i32_88] : memref<16x!tpu.dma_semaphore, #tpu.memory_space<semaphore_mem>> -> memref<1x!tpu.dma_semaphore, #tpu.memory_space<semaphore_mem>>
    %123 = tpu.memref_squeeze %122 : memref<1x!tpu.dma_semaphore, #tpu.memory_space<semaphore_mem>> -> memref<!tpu.dma_semaphore, #tpu.memory_space<semaphore_mem>>
    tpu.wait_dma2 semaphore(%123 : memref<!tpu.dma_semaphore, #tpu.memory_space<semaphore_mem>>) src(%120 : memref<1x32xf32, #tpu.memory_space<any>>) dst(%121 : memref<1x32xf32, #tpu.memory_space<vmem>>)
    %c11_i32_92 = arith.constant 11 : i32
    %c0_i32_93 = arith.constant 0 : i32
    %124 = tpu.memref_slice %arg1[%55, %c0_i32_93] : memref<64x32xf32, #tpu.memory_space<any>> -> memref<1x32xf32, #tpu.memory_space<any>>
    %c11_i32_94 = arith.constant 11 : i32
    %c0_i32_95 = arith.constant 0 : i32
    %125 = tpu.memref_slice %arg15[%c11_i32_94, %c0_i32_95] : memref<16x32xf32, #tpu.memory_space<vmem>> -> memref<1x32xf32, #tpu.memory_space<vmem>>
    %126 = tpu.memref_slice %arg16[%c11_i32_92] : memref<16x!tpu.dma_semaphore, #tpu.memory_space<semaphore_mem>> -> memref<1x!tpu.dma_semaphore, #tpu.memory_space<semaphore_mem>>
    %127 = tpu.memref_squeeze %126 : memref<1x!tpu.dma_semaphore, #tpu.memory_space<semaphore_mem>> -> memref<!tpu.dma_semaphore, #tpu.memory_space<semaphore_mem>>
    tpu.wait_dma2 semaphore(%127 : memref<!tpu.dma_semaphore, #tpu.memory_space<semaphore_mem>>) src(%124 : memref<1x32xf32, #tpu.memory_space<any>>) dst(%125 : memref<1x32xf32, #tpu.memory_space<vmem>>)
    %c12_i32_96 = arith.constant 12 : i32
    %c0_i32_97 = arith.constant 0 : i32
    %128 = tpu.memref_slice %arg1[%60, %c0_i32_97] : memref<64x32xf32, #tpu.memory_space<any>> -> memref<1x32xf32, #tpu.memory_space<any>>
    %c12_i32_98 = arith.constant 12 : i32
    %c0_i32_99 = arith.constant 0 : i32
    %129 = tpu.memref_slice %arg15[%c12_i32_98, %c0_i32_99] : memref<16x32xf32, #tpu.memory_space<vmem>> -> memref<1x32xf32, #tpu.memory_space<vmem>>
    %130 = tpu.memref_slice %arg16[%c12_i32_96] : memref<16x!tpu.dma_semaphore, #tpu.memory_space<semaphore_mem>> -> memref<1x!tpu.dma_semaphore, #tpu.memory_space<semaphore_mem>>
    %131 = tpu.memref_squeeze %130 : memref<1x!tpu.dma_semaphore, #tpu.memory_space<semaphore_mem>> -> memref<!tpu.dma_semaphore, #tpu.memory_space<semaphore_mem>>
    tpu.wait_dma2 semaphore(%131 : memref<!tpu.dma_semaphore, #tpu.memory_space<semaphore_mem>>) src(%128 : memref<1x32xf32, #tpu.memory_space<any>>) dst(%129 : memref<1x32xf32, #tpu.memory_space<vmem>>)
    %c13_i32_100 = arith.constant 13 : i32
    %c0_i32_101 = arith.constant 0 : i32
    %132 = tpu.memref_slice %arg1[%65, %c0_i32_101] : memref<64x32xf32, #tpu.memory_space<any>> -> memref<1x32xf32, #tpu.memory_space<any>>
    %c13_i32_102 = arith.constant 13 : i32
    %c0_i32_103 = arith.constant 0 : i32
    %133 = tpu.memref_slice %arg15[%c13_i32_102, %c0_i32_103] : memref<16x32xf32, #tpu.memory_space<vmem>> -> memref<1x32xf32, #tpu.memory_space<vmem>>
    %134 = tpu.memref_slice %arg16[%c13_i32_100] : memref<16x!tpu.dma_semaphore, #tpu.memory_space<semaphore_mem>> -> memref<1x!tpu.dma_semaphore, #tpu.memory_space<semaphore_mem>>
    %135 = tpu.memref_squeeze %134 : memref<1x!tpu.dma_semaphore, #tpu.memory_space<semaphore_mem>> -> memref<!tpu.dma_semaphore, #tpu.memory_space<semaphore_mem>>
    tpu.wait_dma2 semaphore(%135 : memref<!tpu.dma_semaphore, #tpu.memory_space<semaphore_mem>>) src(%132 : memref<1x32xf32, #tpu.memory_space<any>>) dst(%133 : memref<1x32xf32, #tpu.memory_space<vmem>>)
    %c14_i32_104 = arith.constant 14 : i32
    %c0_i32_105 = arith.constant 0 : i32
    %136 = tpu.memref_slice %arg1[%70, %c0_i32_105] : memref<64x32xf32, #tpu.memory_space<any>> -> memref<1x32xf32, #tpu.memory_space<any>>
    %c14_i32_106 = arith.constant 14 : i32
    %c0_i32_107 = arith.constant 0 : i32
    %137 = tpu.memref_slice %arg15[%c14_i32_106, %c0_i32_107] : memref<16x32xf32, #tpu.memory_space<vmem>> -> memref<1x32xf32, #tpu.memory_space<vmem>>
    %138 = tpu.memref_slice %arg16[%c14_i32_104] : memref<16x!tpu.dma_semaphore, #tpu.memory_space<semaphore_mem>> -> memref<1x!tpu.dma_semaphore, #tpu.memory_space<semaphore_mem>>
    %139 = tpu.memref_squeeze %138 : memref<1x!tpu.dma_semaphore, #tpu.memory_space<semaphore_mem>> -> memref<!tpu.dma_semaphore, #tpu.memory_space<semaphore_mem>>
    tpu.wait_dma2 semaphore(%139 : memref<!tpu.dma_semaphore, #tpu.memory_space<semaphore_mem>>) src(%136 : memref<1x32xf32, #tpu.memory_space<any>>) dst(%137 : memref<1x32xf32, #tpu.memory_space<vmem>>)
    %c15_i32_108 = arith.constant 15 : i32
    %c0_i32_109 = arith.constant 0 : i32
    %140 = tpu.memref_slice %arg1[%75, %c0_i32_109] : memref<64x32xf32, #tpu.memory_space<any>> -> memref<1x32xf32, #tpu.memory_space<any>>
    %c15_i32_110 = arith.constant 15 : i32
    %c0_i32_111 = arith.constant 0 : i32
    %141 = tpu.memref_slice %arg15[%c15_i32_110, %c0_i32_111] : memref<16x32xf32, #tpu.memory_space<vmem>> -> memref<1x32xf32, #tpu.memory_space<vmem>>
    %142 = tpu.memref_slice %arg16[%c15_i32_108] : memref<16x!tpu.dma_semaphore, #tpu.memory_space<semaphore_mem>> -> memref<1x!tpu.dma_semaphore, #tpu.memory_space<semaphore_mem>>
    %143 = tpu.memref_squeeze %142 : memref<1x!tpu.dma_semaphore, #tpu.memory_space<semaphore_mem>> -> memref<!tpu.dma_semaphore, #tpu.memory_space<semaphore_mem>>
    tpu.wait_dma2 semaphore(%143 : memref<!tpu.dma_semaphore, #tpu.memory_space<semaphore_mem>>) src(%140 : memref<1x32xf32, #tpu.memory_space<any>>) dst(%141 : memref<1x32xf32, #tpu.memory_space<vmem>>)
    %c0_112 = arith.constant 0 : index
    %c0_113 = arith.constant 0 : index
    %144 = vector.load %arg6[%c0_112, %c0_113] : memref<32x128xf32, #tpu.memory_space<vmem>>, vector<32x128xf32>
    %c0_114 = arith.constant 0 : index
    %c0_115 = arith.constant 0 : index
    %145 = vector.load %arg9[%c0_114, %c0_115] : memref<32x128xf32, #tpu.memory_space<vmem>>, vector<32x128xf32>
    %c0_116 = arith.constant 0 : index
    %c0_117 = arith.constant 0 : index
    %146 = vector.load %arg7[%c0_116, %c0_117] : memref<32x128xf32, #tpu.memory_space<vmem>>, vector<32x128xf32>
    %c0_118 = arith.constant 0 : index
    %c0_119 = arith.constant 0 : index
    %147 = vector.load %arg10[%c0_118, %c0_119] : memref<32x128xf32, #tpu.memory_space<vmem>>, vector<32x128xf32>
    %c0_120 = arith.constant 0 : index
    %c0_121 = arith.constant 0 : index
    %148 = vector.load %arg8[%c0_120, %c0_121] : memref<1x128xf32, #tpu.memory_space<vmem>>, vector<1x128xf32>
    %c0_122 = arith.constant 0 : index
    %c0_123 = arith.constant 0 : index
    %149 = vector.load %arg11[%c0_122, %c0_123] : memref<1x128xf32, #tpu.memory_space<vmem>>, vector<1x128xf32>
    %c0_124 = arith.constant 0 : index
    %c0_125 = arith.constant 0 : index
    %150 = vector.load %arg15[%c0_124, %c0_125] : memref<16x32xf32, #tpu.memory_space<vmem>>, vector<16x32xf32>
    %cst = arith.constant dense<0.000000e+00> : vector<16x128xf32>
    %151 = tpu.matmul %150, %144, %cst {dimension_numbers = #tpu.dot_dimension_numbers<[1], [0], [0], [1], [0, 0, 1, 1], [], []>} : vector<16x32xf32>, vector<32x128xf32>, vector<16x128xf32> -> vector<16x128xf32>
    %152 = vector.broadcast %148 : vector<1x128xf32> to vector<16x128xf32>
    %153 = arith.addf %151, %152 : vector<16x128xf32>
    %c0_126 = arith.constant 0 : index
    %c0_127 = arith.constant 0 : index
    %c0_128 = arith.constant 0 : index
    %154 = vector.load %arg2[%c0_126, %c0_127, %c0_128] : memref<2x2x32xf32, #tpu.memory_space<vmem>>, vector<1x2x32xf32>
    %155 = vector.shape_cast %154 : vector<1x2x32xf32> to vector<2x32xf32>
    %c1_129 = arith.constant 1 : index
    %c0_130 = arith.constant 0 : index
    %c0_131 = arith.constant 0 : index
    %156 = vector.load %arg2[%c1_129, %c0_130, %c0_131] : memref<2x2x32xf32, #tpu.memory_space<vmem>>, vector<1x2x32xf32>
    %157 = vector.shape_cast %156 : vector<1x2x32xf32> to vector<2x32xf32>
    %c0_132 = arith.constant 0 : index
    %c0_133 = arith.constant 0 : index
    %c0_134 = arith.constant 0 : index
    %158 = vector.load %arg3[%c0_132, %c0_133, %c0_134] : memref<2x2x32xf32, #tpu.memory_space<vmem>>, vector<1x2x32xf32>
    %159 = vector.shape_cast %158 : vector<1x2x32xf32> to vector<2x32xf32>
    %c1_135 = arith.constant 1 : index
    %c0_136 = arith.constant 0 : index
    %c0_137 = arith.constant 0 : index
    %160 = vector.load %arg3[%c1_135, %c0_136, %c0_137] : memref<2x2x32xf32, #tpu.memory_space<vmem>>, vector<1x2x32xf32>
    %161 = vector.shape_cast %160 : vector<1x2x32xf32> to vector<2x32xf32>
    %162 = vector.extract_strided_slice %153 {offsets = [0, 0], sizes = [2, 128], strides = [1, 1]} : vector<16x128xf32> to vector<2x128xf32>
    %cst_138 = arith.constant dense<0.000000e+00> : vector<2x128xf32>
    %163 = tpu.matmul %155, %146, %cst_138 {dimension_numbers = #tpu.dot_dimension_numbers<[1], [0], [0], [1], [0, 0, 1, 1], [], []>} : vector<2x32xf32>, vector<32x128xf32>, vector<2x128xf32> -> vector<2x128xf32>
    %164 = arith.addf %162, %163 : vector<2x128xf32>
    %165 = vector.extract_strided_slice %164 {offsets = [0, 0], sizes = [2, 32], strides = [1, 1]} : vector<2x128xf32> to vector<2x32xf32>
    %166 = arith.negf %165 : vector<2x32xf32>
    %167 = math.exp %166 : vector<2x32xf32>
    %cst_139 = arith.constant 1.000000e+00 : f32
    %168 = vector.broadcast %cst_139 : f32 to vector<2x32xf32>
    %169 = arith.addf %168, %167 : vector<2x32xf32>
    %170 = arith.divf %168, %169 : vector<2x32xf32>
    %171 = vector.extract_strided_slice %164 {offsets = [0, 32], sizes = [2, 32], strides = [1, 1]} : vector<2x128xf32> to vector<2x32xf32>
    %172 = arith.negf %171 : vector<2x32xf32>
    %173 = math.exp %172 : vector<2x32xf32>
    %cst_140 = arith.constant 1.000000e+00 : f32
    %174 = vector.broadcast %cst_140 : f32 to vector<2x32xf32>
    %175 = arith.addf %174, %173 : vector<2x32xf32>
    %176 = arith.divf %174, %175 : vector<2x32xf32>
    %177 = vector.extract_strided_slice %164 {offsets = [0, 64], sizes = [2, 32], strides = [1, 1]} : vector<2x128xf32> to vector<2x32xf32>
    %178 = math.tanh %177 : vector<2x32xf32>
    %179 = vector.extract_strided_slice %164 {offsets = [0, 96], sizes = [2, 32], strides = [1, 1]} : vector<2x128xf32> to vector<2x32xf32>
    %180 = arith.negf %179 : vector<2x32xf32>
    %181 = math.exp %180 : vector<2x32xf32>
    %cst_141 = arith.constant 1.000000e+00 : f32
    %182 = vector.broadcast %cst_141 : f32 to vector<2x32xf32>
    %183 = arith.addf %182, %181 : vector<2x32xf32>
    %184 = arith.divf %182, %183 : vector<2x32xf32>
    %185 = arith.mulf %176, %159 : vector<2x32xf32>
    %186 = arith.mulf %170, %178 : vector<2x32xf32>
    %187 = arith.addf %185, %186 : vector<2x32xf32>
    %188 = math.tanh %187 : vector<2x32xf32>
    %189 = arith.mulf %184, %188 : vector<2x32xf32>
    %190 = vector.extract_strided_slice %153 {offsets = [2, 0], sizes = [2, 128], strides = [1, 1]} : vector<16x128xf32> to vector<2x128xf32>
    %cst_142 = arith.constant dense<0.000000e+00> : vector<2x128xf32>
    %191 = tpu.matmul %189, %146, %cst_142 {dimension_numbers = #tpu.dot_dimension_numbers<[1], [0], [0], [1], [0, 0, 1, 1], [], []>} : vector<2x32xf32>, vector<32x128xf32>, vector<2x128xf32> -> vector<2x128xf32>
    %192 = arith.addf %190, %191 : vector<2x128xf32>
    %193 = vector.extract_strided_slice %192 {offsets = [0, 0], sizes = [2, 32], strides = [1, 1]} : vector<2x128xf32> to vector<2x32xf32>
    %194 = arith.negf %193 : vector<2x32xf32>
    %195 = math.exp %194 : vector<2x32xf32>
    %cst_143 = arith.constant 1.000000e+00 : f32
    %196 = vector.broadcast %cst_143 : f32 to vector<2x32xf32>
    %197 = arith.addf %196, %195 : vector<2x32xf32>
    %198 = arith.divf %196, %197 : vector<2x32xf32>
    %199 = vector.extract_strided_slice %192 {offsets = [0, 32], sizes = [2, 32], strides = [1, 1]} : vector<2x128xf32> to vector<2x32xf32>
    %200 = arith.negf %199 : vector<2x32xf32>
    %201 = math.exp %200 : vector<2x32xf32>
    %cst_144 = arith.constant 1.000000e+00 : f32
    %202 = vector.broadcast %cst_144 : f32 to vector<2x32xf32>
    %203 = arith.addf %202, %201 : vector<2x32xf32>
    %204 = arith.divf %202, %203 : vector<2x32xf32>
    %205 = vector.extract_strided_slice %192 {offsets = [0, 64], sizes = [2, 32], strides = [1, 1]} : vector<2x128xf32> to vector<2x32xf32>
    %206 = math.tanh %205 : vector<2x32xf32>
    %207 = vector.extract_strided_slice %192 {offsets = [0, 96], sizes = [2, 32], strides = [1, 1]} : vector<2x128xf32> to vector<2x32xf32>
    %208 = arith.negf %207 : vector<2x32xf32>
    %209 = math.exp %208 : vector<2x32xf32>
    %cst_145 = arith.constant 1.000000e+00 : f32
    %210 = vector.broadcast %cst_145 : f32 to vector<2x32xf32>
    %211 = arith.addf %210, %209 : vector<2x32xf32>
    %212 = arith.divf %210, %211 : vector<2x32xf32>
    %213 = arith.mulf %204, %187 : vector<2x32xf32>
    %214 = arith.mulf %198, %206 : vector<2x32xf32>
    %215 = arith.addf %213, %214 : vector<2x32xf32>
    %216 = math.tanh %215 : vector<2x32xf32>
    %217 = arith.mulf %212, %216 : vector<2x32xf32>
    %cst_146 = arith.constant dense<0.000000e+00> : vector<2x128xf32>
    %218 = tpu.matmul %189, %145, %cst_146 {dimension_numbers = #tpu.dot_dimension_numbers<[1], [0], [0], [1], [0, 0, 1, 1], [], []>} : vector<2x32xf32>, vector<32x128xf32>, vector<2x128xf32> -> vector<2x128xf32>
    %219 = vector.broadcast %149 : vector<1x128xf32> to vector<2x128xf32>
    %220 = arith.addf %218, %219 : vector<2x128xf32>
    %cst_147 = arith.constant dense<0.000000e+00> : vector<2x128xf32>
    %221 = tpu.matmul %157, %147, %cst_147 {dimension_numbers = #tpu.dot_dimension_numbers<[1], [0], [0], [1], [0, 0, 1, 1], [], []>} : vector<2x32xf32>, vector<32x128xf32>, vector<2x128xf32> -> vector<2x128xf32>
    %222 = arith.addf %220, %221 : vector<2x128xf32>
    %223 = vector.extract_strided_slice %222 {offsets = [0, 0], sizes = [2, 32], strides = [1, 1]} : vector<2x128xf32> to vector<2x32xf32>
    %224 = arith.negf %223 : vector<2x32xf32>
    %225 = math.exp %224 : vector<2x32xf32>
    %cst_148 = arith.constant 1.000000e+00 : f32
    %226 = vector.broadcast %cst_148 : f32 to vector<2x32xf32>
    %227 = arith.addf %226, %225 : vector<2x32xf32>
    %228 = arith.divf %226, %227 : vector<2x32xf32>
    %229 = vector.extract_strided_slice %222 {offsets = [0, 32], sizes = [2, 32], strides = [1, 1]} : vector<2x128xf32> to vector<2x32xf32>
    %230 = arith.negf %229 : vector<2x32xf32>
    %231 = math.exp %230 : vector<2x32xf32>
    %cst_149 = arith.constant 1.000000e+00 : f32
    %232 = vector.broadcast %cst_149 : f32 to vector<2x32xf32>
    %233 = arith.addf %232, %231 : vector<2x32xf32>
    %234 = arith.divf %232, %233 : vector<2x32xf32>
    %235 = vector.extract_strided_slice %222 {offsets = [0, 64], sizes = [2, 32], strides = [1, 1]} : vector<2x128xf32> to vector<2x32xf32>
    %236 = math.tanh %235 : vector<2x32xf32>
    %237 = vector.extract_strided_slice %222 {offsets = [0, 96], sizes = [2, 32], strides = [1, 1]} : vector<2x128xf32> to vector<2x32xf32>
    %238 = arith.negf %237 : vector<2x32xf32>
    %239 = math.exp %238 : vector<2x32xf32>
    %cst_150 = arith.constant 1.000000e+00 : f32
    %240 = vector.broadcast %cst_150 : f32 to vector<2x32xf32>
    %241 = arith.addf %240, %239 : vector<2x32xf32>
    %242 = arith.divf %240, %241 : vector<2x32xf32>
    %243 = arith.mulf %234, %161 : vector<2x32xf32>
    %244 = arith.mulf %228, %236 : vector<2x32xf32>
    %245 = arith.addf %243, %244 : vector<2x32xf32>
    %246 = math.tanh %245 : vector<2x32xf32>
    %247 = arith.mulf %242, %246 : vector<2x32xf32>
    %248 = vector.extract_strided_slice %153 {offsets = [4, 0], sizes = [2, 128], strides = [1, 1]} : vector<16x128xf32> to vector<2x128xf32>
    %cst_151 = arith.constant dense<0.000000e+00> : vector<2x128xf32>
    %249 = tpu.matmul %217, %146, %cst_151 {dimension_numbers = #tpu.dot_dimension_numbers<[1], [0], [0], [1], [0, 0, 1, 1], [], []>} : vector<2x32xf32>, vector<32x128xf32>, vector<2x128xf32> -> vector<2x128xf32>
    %250 = arith.addf %248, %249 : vector<2x128xf32>
    %251 = vector.extract_strided_slice %250 {offsets = [0, 0], sizes = [2, 32], strides = [1, 1]} : vector<2x128xf32> to vector<2x32xf32>
    %252 = arith.negf %251 : vector<2x32xf32>
    %253 = math.exp %252 : vector<2x32xf32>
    %cst_152 = arith.constant 1.000000e+00 : f32
    %254 = vector.broadcast %cst_152 : f32 to vector<2x32xf32>
    %255 = arith.addf %254, %253 : vector<2x32xf32>
    %256 = arith.divf %254, %255 : vector<2x32xf32>
    %257 = vector.extract_strided_slice %250 {offsets = [0, 32], sizes = [2, 32], strides = [1, 1]} : vector<2x128xf32> to vector<2x32xf32>
    %258 = arith.negf %257 : vector<2x32xf32>
    %259 = math.exp %258 : vector<2x32xf32>
    %cst_153 = arith.constant 1.000000e+00 : f32
    %260 = vector.broadcast %cst_153 : f32 to vector<2x32xf32>
    %261 = arith.addf %260, %259 : vector<2x32xf32>
    %262 = arith.divf %260, %261 : vector<2x32xf32>
    %263 = vector.extract_strided_slice %250 {offsets = [0, 64], sizes = [2, 32], strides = [1, 1]} : vector<2x128xf32> to vector<2x32xf32>
    %264 = math.tanh %263 : vector<2x32xf32>
    %265 = vector.extract_strided_slice %250 {offsets = [0, 96], sizes = [2, 32], strides = [1, 1]} : vector<2x128xf32> to vector<2x32xf32>
    %266 = arith.negf %265 : vector<2x32xf32>
    %267 = math.exp %266 : vector<2x32xf32>
    %cst_154 = arith.constant 1.000000e+00 : f32
    %268 = vector.broadcast %cst_154 : f32 to vector<2x32xf32>
    %269 = arith.addf %268, %267 : vector<2x32xf32>
    %270 = arith.divf %268, %269 : vector<2x32xf32>
    %271 = arith.mulf %262, %215 : vector<2x32xf32>
    %272 = arith.mulf %256, %264 : vector<2x32xf32>
    %273 = arith.addf %271, %272 : vector<2x32xf32>
    %274 = math.tanh %273 : vector<2x32xf32>
    %275 = arith.mulf %270, %274 : vector<2x32xf32>
    %cst_155 = arith.constant dense<0.000000e+00> : vector<2x128xf32>
    %276 = tpu.matmul %217, %145, %cst_155 {dimension_numbers = #tpu.dot_dimension_numbers<[1], [0], [0], [1], [0, 0, 1, 1], [], []>} : vector<2x32xf32>, vector<32x128xf32>, vector<2x128xf32> -> vector<2x128xf32>
    %277 = vector.broadcast %149 : vector<1x128xf32> to vector<2x128xf32>
    %278 = arith.addf %276, %277 : vector<2x128xf32>
    %cst_156 = arith.constant dense<0.000000e+00> : vector<2x128xf32>
    %279 = tpu.matmul %247, %147, %cst_156 {dimension_numbers = #tpu.dot_dimension_numbers<[1], [0], [0], [1], [0, 0, 1, 1], [], []>} : vector<2x32xf32>, vector<32x128xf32>, vector<2x128xf32> -> vector<2x128xf32>
    %280 = arith.addf %278, %279 : vector<2x128xf32>
    %281 = vector.extract_strided_slice %280 {offsets = [0, 0], sizes = [2, 32], strides = [1, 1]} : vector<2x128xf32> to vector<2x32xf32>
    %282 = arith.negf %281 : vector<2x32xf32>
    %283 = math.exp %282 : vector<2x32xf32>
    %cst_157 = arith.constant 1.000000e+00 : f32
    %284 = vector.broadcast %cst_157 : f32 to vector<2x32xf32>
    %285 = arith.addf %284, %283 : vector<2x32xf32>
    %286 = arith.divf %284, %285 : vector<2x32xf32>
    %287 = vector.extract_strided_slice %280 {offsets = [0, 32], sizes = [2, 32], strides = [1, 1]} : vector<2x128xf32> to vector<2x32xf32>
    %288 = arith.negf %287 : vector<2x32xf32>
    %289 = math.exp %288 : vector<2x32xf32>
    %cst_158 = arith.constant 1.000000e+00 : f32
    %290 = vector.broadcast %cst_158 : f32 to vector<2x32xf32>
    %291 = arith.addf %290, %289 : vector<2x32xf32>
    %292 = arith.divf %290, %291 : vector<2x32xf32>
    %293 = vector.extract_strided_slice %280 {offsets = [0, 64], sizes = [2, 32], strides = [1, 1]} : vector<2x128xf32> to vector<2x32xf32>
    %294 = math.tanh %293 : vector<2x32xf32>
    %295 = vector.extract_strided_slice %280 {offsets = [0, 96], sizes = [2, 32], strides = [1, 1]} : vector<2x128xf32> to vector<2x32xf32>
    %296 = arith.negf %295 : vector<2x32xf32>
    %297 = math.exp %296 : vector<2x32xf32>
    %cst_159 = arith.constant 1.000000e+00 : f32
    %298 = vector.broadcast %cst_159 : f32 to vector<2x32xf32>
    %299 = arith.addf %298, %297 : vector<2x32xf32>
    %300 = arith.divf %298, %299 : vector<2x32xf32>
    %301 = arith.mulf %292, %245 : vector<2x32xf32>
    %302 = arith.mulf %286, %294 : vector<2x32xf32>
    %303 = arith.addf %301, %302 : vector<2x32xf32>
    %304 = math.tanh %303 : vector<2x32xf32>
    %305 = arith.mulf %300, %304 : vector<2x32xf32>
    %306 = vector.extract_strided_slice %153 {offsets = [6, 0], sizes = [2, 128], strides = [1, 1]} : vector<16x128xf32> to vector<2x128xf32>
    %cst_160 = arith.constant dense<0.000000e+00> : vector<2x128xf32>
    %307 = tpu.matmul %275, %146, %cst_160 {dimension_numbers = #tpu.dot_dimension_numbers<[1], [0], [0], [1], [0, 0, 1, 1], [], []>} : vector<2x32xf32>, vector<32x128xf32>, vector<2x128xf32> -> vector<2x128xf32>
    %308 = arith.addf %306, %307 : vector<2x128xf32>
    %309 = vector.extract_strided_slice %308 {offsets = [0, 0], sizes = [2, 32], strides = [1, 1]} : vector<2x128xf32> to vector<2x32xf32>
    %310 = arith.negf %309 : vector<2x32xf32>
    %311 = math.exp %310 : vector<2x32xf32>
    %cst_161 = arith.constant 1.000000e+00 : f32
    %312 = vector.broadcast %cst_161 : f32 to vector<2x32xf32>
    %313 = arith.addf %312, %311 : vector<2x32xf32>
    %314 = arith.divf %312, %313 : vector<2x32xf32>
    %315 = vector.extract_strided_slice %308 {offsets = [0, 32], sizes = [2, 32], strides = [1, 1]} : vector<2x128xf32> to vector<2x32xf32>
    %316 = arith.negf %315 : vector<2x32xf32>
    %317 = math.exp %316 : vector<2x32xf32>
    %cst_162 = arith.constant 1.000000e+00 : f32
    %318 = vector.broadcast %cst_162 : f32 to vector<2x32xf32>
    %319 = arith.addf %318, %317 : vector<2x32xf32>
    %320 = arith.divf %318, %319 : vector<2x32xf32>
    %321 = vector.extract_strided_slice %308 {offsets = [0, 64], sizes = [2, 32], strides = [1, 1]} : vector<2x128xf32> to vector<2x32xf32>
    %322 = math.tanh %321 : vector<2x32xf32>
    %323 = vector.extract_strided_slice %308 {offsets = [0, 96], sizes = [2, 32], strides = [1, 1]} : vector<2x128xf32> to vector<2x32xf32>
    %324 = arith.negf %323 : vector<2x32xf32>
    %325 = math.exp %324 : vector<2x32xf32>
    %cst_163 = arith.constant 1.000000e+00 : f32
    %326 = vector.broadcast %cst_163 : f32 to vector<2x32xf32>
    %327 = arith.addf %326, %325 : vector<2x32xf32>
    %328 = arith.divf %326, %327 : vector<2x32xf32>
    %329 = arith.mulf %320, %273 : vector<2x32xf32>
    %330 = arith.mulf %314, %322 : vector<2x32xf32>
    %331 = arith.addf %329, %330 : vector<2x32xf32>
    %332 = math.tanh %331 : vector<2x32xf32>
    %333 = arith.mulf %328, %332 : vector<2x32xf32>
    %cst_164 = arith.constant dense<0.000000e+00> : vector<2x128xf32>
    %334 = tpu.matmul %275, %145, %cst_164 {dimension_numbers = #tpu.dot_dimension_numbers<[1], [0], [0], [1], [0, 0, 1, 1], [], []>} : vector<2x32xf32>, vector<32x128xf32>, vector<2x128xf32> -> vector<2x128xf32>
    %335 = vector.broadcast %149 : vector<1x128xf32> to vector<2x128xf32>
    %336 = arith.addf %334, %335 : vector<2x128xf32>
    %cst_165 = arith.constant dense<0.000000e+00> : vector<2x128xf32>
    %337 = tpu.matmul %305, %147, %cst_165 {dimension_numbers = #tpu.dot_dimension_numbers<[1], [0], [0], [1], [0, 0, 1, 1], [], []>} : vector<2x32xf32>, vector<32x128xf32>, vector<2x128xf32> -> vector<2x128xf32>
    %338 = arith.addf %336, %337 : vector<2x128xf32>
    %339 = vector.extract_strided_slice %338 {offsets = [0, 0], sizes = [2, 32], strides = [1, 1]} : vector<2x128xf32> to vector<2x32xf32>
    %340 = arith.negf %339 : vector<2x32xf32>
    %341 = math.exp %340 : vector<2x32xf32>
    %cst_166 = arith.constant 1.000000e+00 : f32
    %342 = vector.broadcast %cst_166 : f32 to vector<2x32xf32>
    %343 = arith.addf %342, %341 : vector<2x32xf32>
    %344 = arith.divf %342, %343 : vector<2x32xf32>
    %345 = vector.extract_strided_slice %338 {offsets = [0, 32], sizes = [2, 32], strides = [1, 1]} : vector<2x128xf32> to vector<2x32xf32>
    %346 = arith.negf %345 : vector<2x32xf32>
    %347 = math.exp %346 : vector<2x32xf32>
    %cst_167 = arith.constant 1.000000e+00 : f32
    %348 = vector.broadcast %cst_167 : f32 to vector<2x32xf32>
    %349 = arith.addf %348, %347 : vector<2x32xf32>
    %350 = arith.divf %348, %349 : vector<2x32xf32>
    %351 = vector.extract_strided_slice %338 {offsets = [0, 64], sizes = [2, 32], strides = [1, 1]} : vector<2x128xf32> to vector<2x32xf32>
    %352 = math.tanh %351 : vector<2x32xf32>
    %353 = vector.extract_strided_slice %338 {offsets = [0, 96], sizes = [2, 32], strides = [1, 1]} : vector<2x128xf32> to vector<2x32xf32>
    %354 = arith.negf %353 : vector<2x32xf32>
    %355 = math.exp %354 : vector<2x32xf32>
    %cst_168 = arith.constant 1.000000e+00 : f32
    %356 = vector.broadcast %cst_168 : f32 to vector<2x32xf32>
    %357 = arith.addf %356, %355 : vector<2x32xf32>
    %358 = arith.divf %356, %357 : vector<2x32xf32>
    %359 = arith.mulf %350, %303 : vector<2x32xf32>
    %360 = arith.mulf %344, %352 : vector<2x32xf32>
    %361 = arith.addf %359, %360 : vector<2x32xf32>
    %362 = math.tanh %361 : vector<2x32xf32>
    %363 = arith.mulf %358, %362 : vector<2x32xf32>
    %364 = vector.extract_strided_slice %153 {offsets = [8, 0], sizes = [2, 128], strides = [1, 1]} : vector<16x128xf32> to vector<2x128xf32>
    %cst_169 = arith.constant dense<0.000000e+00> : vector<2x128xf32>
    %365 = tpu.matmul %333, %146, %cst_169 {dimension_numbers = #tpu.dot_dimension_numbers<[1], [0], [0], [1], [0, 0, 1, 1], [], []>} : vector<2x32xf32>, vector<32x128xf32>, vector<2x128xf32> -> vector<2x128xf32>
    %366 = arith.addf %364, %365 : vector<2x128xf32>
    %367 = vector.extract_strided_slice %366 {offsets = [0, 0], sizes = [2, 32], strides = [1, 1]} : vector<2x128xf32> to vector<2x32xf32>
    %368 = arith.negf %367 : vector<2x32xf32>
    %369 = math.exp %368 : vector<2x32xf32>
    %cst_170 = arith.constant 1.000000e+00 : f32
    %370 = vector.broadcast %cst_170 : f32 to vector<2x32xf32>
    %371 = arith.addf %370, %369 : vector<2x32xf32>
    %372 = arith.divf %370, %371 : vector<2x32xf32>
    %373 = vector.extract_strided_slice %366 {offsets = [0, 32], sizes = [2, 32], strides = [1, 1]} : vector<2x128xf32> to vector<2x32xf32>
    %374 = arith.negf %373 : vector<2x32xf32>
    %375 = math.exp %374 : vector<2x32xf32>
    %cst_171 = arith.constant 1.000000e+00 : f32
    %376 = vector.broadcast %cst_171 : f32 to vector<2x32xf32>
    %377 = arith.addf %376, %375 : vector<2x32xf32>
    %378 = arith.divf %376, %377 : vector<2x32xf32>
    %379 = vector.extract_strided_slice %366 {offsets = [0, 64], sizes = [2, 32], strides = [1, 1]} : vector<2x128xf32> to vector<2x32xf32>
    %380 = math.tanh %379 : vector<2x32xf32>
    %381 = vector.extract_strided_slice %366 {offsets = [0, 96], sizes = [2, 32], strides = [1, 1]} : vector<2x128xf32> to vector<2x32xf32>
    %382 = arith.negf %381 : vector<2x32xf32>
    %383 = math.exp %382 : vector<2x32xf32>
    %cst_172 = arith.constant 1.000000e+00 : f32
    %384 = vector.broadcast %cst_172 : f32 to vector<2x32xf32>
    %385 = arith.addf %384, %383 : vector<2x32xf32>
    %386 = arith.divf %384, %385 : vector<2x32xf32>
    %387 = arith.mulf %378, %331 : vector<2x32xf32>
    %388 = arith.mulf %372, %380 : vector<2x32xf32>
    %389 = arith.addf %387, %388 : vector<2x32xf32>
    %390 = math.tanh %389 : vector<2x32xf32>
    %391 = arith.mulf %386, %390 : vector<2x32xf32>
    %cst_173 = arith.constant dense<0.000000e+00> : vector<2x128xf32>
    %392 = tpu.matmul %333, %145, %cst_173 {dimension_numbers = #tpu.dot_dimension_numbers<[1], [0], [0], [1], [0, 0, 1, 1], [], []>} : vector<2x32xf32>, vector<32x128xf32>, vector<2x128xf32> -> vector<2x128xf32>
    %393 = vector.broadcast %149 : vector<1x128xf32> to vector<2x128xf32>
    %394 = arith.addf %392, %393 : vector<2x128xf32>
    %cst_174 = arith.constant dense<0.000000e+00> : vector<2x128xf32>
    %395 = tpu.matmul %363, %147, %cst_174 {dimension_numbers = #tpu.dot_dimension_numbers<[1], [0], [0], [1], [0, 0, 1, 1], [], []>} : vector<2x32xf32>, vector<32x128xf32>, vector<2x128xf32> -> vector<2x128xf32>
    %396 = arith.addf %394, %395 : vector<2x128xf32>
    %397 = vector.extract_strided_slice %396 {offsets = [0, 0], sizes = [2, 32], strides = [1, 1]} : vector<2x128xf32> to vector<2x32xf32>
    %398 = arith.negf %397 : vector<2x32xf32>
    %399 = math.exp %398 : vector<2x32xf32>
    %cst_175 = arith.constant 1.000000e+00 : f32
    %400 = vector.broadcast %cst_175 : f32 to vector<2x32xf32>
    %401 = arith.addf %400, %399 : vector<2x32xf32>
    %402 = arith.divf %400, %401 : vector<2x32xf32>
    %403 = vector.extract_strided_slice %396 {offsets = [0, 32], sizes = [2, 32], strides = [1, 1]} : vector<2x128xf32> to vector<2x32xf32>
    %404 = arith.negf %403 : vector<2x32xf32>
    %405 = math.exp %404 : vector<2x32xf32>
    %cst_176 = arith.constant 1.000000e+00 : f32
    %406 = vector.broadcast %cst_176 : f32 to vector<2x32xf32>
    %407 = arith.addf %406, %405 : vector<2x32xf32>
    %408 = arith.divf %406, %407 : vector<2x32xf32>
    %409 = vector.extract_strided_slice %396 {offsets = [0, 64], sizes = [2, 32], strides = [1, 1]} : vector<2x128xf32> to vector<2x32xf32>
    %410 = math.tanh %409 : vector<2x32xf32>
    %411 = vector.extract_strided_slice %396 {offsets = [0, 96], sizes = [2, 32], strides = [1, 1]} : vector<2x128xf32> to vector<2x32xf32>
    %412 = arith.negf %411 : vector<2x32xf32>
    %413 = math.exp %412 : vector<2x32xf32>
    %cst_177 = arith.constant 1.000000e+00 : f32
    %414 = vector.broadcast %cst_177 : f32 to vector<2x32xf32>
    %415 = arith.addf %414, %413 : vector<2x32xf32>
    %416 = arith.divf %414, %415 : vector<2x32xf32>
    %417 = arith.mulf %408, %361 : vector<2x32xf32>
    %418 = arith.mulf %402, %410 : vector<2x32xf32>
    %419 = arith.addf %417, %418 : vector<2x32xf32>
    %420 = math.tanh %419 : vector<2x32xf32>
    %421 = arith.mulf %416, %420 : vector<2x32xf32>
    %422 = vector.extract_strided_slice %153 {offsets = [10, 0], sizes = [2, 128], strides = [1, 1]} : vector<16x128xf32> to vector<2x128xf32>
    %cst_178 = arith.constant dense<0.000000e+00> : vector<2x128xf32>
    %423 = tpu.matmul %391, %146, %cst_178 {dimension_numbers = #tpu.dot_dimension_numbers<[1], [0], [0], [1], [0, 0, 1, 1], [], []>} : vector<2x32xf32>, vector<32x128xf32>, vector<2x128xf32> -> vector<2x128xf32>
    %424 = arith.addf %422, %423 : vector<2x128xf32>
    %425 = vector.extract_strided_slice %424 {offsets = [0, 0], sizes = [2, 32], strides = [1, 1]} : vector<2x128xf32> to vector<2x32xf32>
    %426 = arith.negf %425 : vector<2x32xf32>
    %427 = math.exp %426 : vector<2x32xf32>
    %cst_179 = arith.constant 1.000000e+00 : f32
    %428 = vector.broadcast %cst_179 : f32 to vector<2x32xf32>
    %429 = arith.addf %428, %427 : vector<2x32xf32>
    %430 = arith.divf %428, %429 : vector<2x32xf32>
    %431 = vector.extract_strided_slice %424 {offsets = [0, 32], sizes = [2, 32], strides = [1, 1]} : vector<2x128xf32> to vector<2x32xf32>
    %432 = arith.negf %431 : vector<2x32xf32>
    %433 = math.exp %432 : vector<2x32xf32>
    %cst_180 = arith.constant 1.000000e+00 : f32
    %434 = vector.broadcast %cst_180 : f32 to vector<2x32xf32>
    %435 = arith.addf %434, %433 : vector<2x32xf32>
    %436 = arith.divf %434, %435 : vector<2x32xf32>
    %437 = vector.extract_strided_slice %424 {offsets = [0, 64], sizes = [2, 32], strides = [1, 1]} : vector<2x128xf32> to vector<2x32xf32>
    %438 = math.tanh %437 : vector<2x32xf32>
    %439 = vector.extract_strided_slice %424 {offsets = [0, 96], sizes = [2, 32], strides = [1, 1]} : vector<2x128xf32> to vector<2x32xf32>
    %440 = arith.negf %439 : vector<2x32xf32>
    %441 = math.exp %440 : vector<2x32xf32>
    %cst_181 = arith.constant 1.000000e+00 : f32
    %442 = vector.broadcast %cst_181 : f32 to vector<2x32xf32>
    %443 = arith.addf %442, %441 : vector<2x32xf32>
    %444 = arith.divf %442, %443 : vector<2x32xf32>
    %445 = arith.mulf %436, %389 : vector<2x32xf32>
    %446 = arith.mulf %430, %438 : vector<2x32xf32>
    %447 = arith.addf %445, %446 : vector<2x32xf32>
    %448 = math.tanh %447 : vector<2x32xf32>
    %449 = arith.mulf %444, %448 : vector<2x32xf32>
    %cst_182 = arith.constant dense<0.000000e+00> : vector<2x128xf32>
    %450 = tpu.matmul %391, %145, %cst_182 {dimension_numbers = #tpu.dot_dimension_numbers<[1], [0], [0], [1], [0, 0, 1, 1], [], []>} : vector<2x32xf32>, vector<32x128xf32>, vector<2x128xf32> -> vector<2x128xf32>
    %451 = vector.broadcast %149 : vector<1x128xf32> to vector<2x128xf32>
    %452 = arith.addf %450, %451 : vector<2x128xf32>
    %cst_183 = arith.constant dense<0.000000e+00> : vector<2x128xf32>
    %453 = tpu.matmul %421, %147, %cst_183 {dimension_numbers = #tpu.dot_dimension_numbers<[1], [0], [0], [1], [0, 0, 1, 1], [], []>} : vector<2x32xf32>, vector<32x128xf32>, vector<2x128xf32> -> vector<2x128xf32>
    %454 = arith.addf %452, %453 : vector<2x128xf32>
    %455 = vector.extract_strided_slice %454 {offsets = [0, 0], sizes = [2, 32], strides = [1, 1]} : vector<2x128xf32> to vector<2x32xf32>
    %456 = arith.negf %455 : vector<2x32xf32>
    %457 = math.exp %456 : vector<2x32xf32>
    %cst_184 = arith.constant 1.000000e+00 : f32
    %458 = vector.broadcast %cst_184 : f32 to vector<2x32xf32>
    %459 = arith.addf %458, %457 : vector<2x32xf32>
    %460 = arith.divf %458, %459 : vector<2x32xf32>
    %461 = vector.extract_strided_slice %454 {offsets = [0, 32], sizes = [2, 32], strides = [1, 1]} : vector<2x128xf32> to vector<2x32xf32>
    %462 = arith.negf %461 : vector<2x32xf32>
    %463 = math.exp %462 : vector<2x32xf32>
    %cst_185 = arith.constant 1.000000e+00 : f32
    %464 = vector.broadcast %cst_185 : f32 to vector<2x32xf32>
    %465 = arith.addf %464, %463 : vector<2x32xf32>
    %466 = arith.divf %464, %465 : vector<2x32xf32>
    %467 = vector.extract_strided_slice %454 {offsets = [0, 64], sizes = [2, 32], strides = [1, 1]} : vector<2x128xf32> to vector<2x32xf32>
    %468 = math.tanh %467 : vector<2x32xf32>
    %469 = vector.extract_strided_slice %454 {offsets = [0, 96], sizes = [2, 32], strides = [1, 1]} : vector<2x128xf32> to vector<2x32xf32>
    %470 = arith.negf %469 : vector<2x32xf32>
    %471 = math.exp %470 : vector<2x32xf32>
    %cst_186 = arith.constant 1.000000e+00 : f32
    %472 = vector.broadcast %cst_186 : f32 to vector<2x32xf32>
    %473 = arith.addf %472, %471 : vector<2x32xf32>
    %474 = arith.divf %472, %473 : vector<2x32xf32>
    %475 = arith.mulf %466, %419 : vector<2x32xf32>
    %476 = arith.mulf %460, %468 : vector<2x32xf32>
    %477 = arith.addf %475, %476 : vector<2x32xf32>
    %478 = math.tanh %477 : vector<2x32xf32>
    %479 = arith.mulf %474, %478 : vector<2x32xf32>
    %480 = vector.extract_strided_slice %153 {offsets = [12, 0], sizes = [2, 128], strides = [1, 1]} : vector<16x128xf32> to vector<2x128xf32>
    %cst_187 = arith.constant dense<0.000000e+00> : vector<2x128xf32>
    %481 = tpu.matmul %449, %146, %cst_187 {dimension_numbers = #tpu.dot_dimension_numbers<[1], [0], [0], [1], [0, 0, 1, 1], [], []>} : vector<2x32xf32>, vector<32x128xf32>, vector<2x128xf32> -> vector<2x128xf32>
    %482 = arith.addf %480, %481 : vector<2x128xf32>
    %483 = vector.extract_strided_slice %482 {offsets = [0, 0], sizes = [2, 32], strides = [1, 1]} : vector<2x128xf32> to vector<2x32xf32>
    %484 = arith.negf %483 : vector<2x32xf32>
    %485 = math.exp %484 : vector<2x32xf32>
    %cst_188 = arith.constant 1.000000e+00 : f32
    %486 = vector.broadcast %cst_188 : f32 to vector<2x32xf32>
    %487 = arith.addf %486, %485 : vector<2x32xf32>
    %488 = arith.divf %486, %487 : vector<2x32xf32>
    %489 = vector.extract_strided_slice %482 {offsets = [0, 32], sizes = [2, 32], strides = [1, 1]} : vector<2x128xf32> to vector<2x32xf32>
    %490 = arith.negf %489 : vector<2x32xf32>
    %491 = math.exp %490 : vector<2x32xf32>
    %cst_189 = arith.constant 1.000000e+00 : f32
    %492 = vector.broadcast %cst_189 : f32 to vector<2x32xf32>
    %493 = arith.addf %492, %491 : vector<2x32xf32>
    %494 = arith.divf %492, %493 : vector<2x32xf32>
    %495 = vector.extract_strided_slice %482 {offsets = [0, 64], sizes = [2, 32], strides = [1, 1]} : vector<2x128xf32> to vector<2x32xf32>
    %496 = math.tanh %495 : vector<2x32xf32>
    %497 = vector.extract_strided_slice %482 {offsets = [0, 96], sizes = [2, 32], strides = [1, 1]} : vector<2x128xf32> to vector<2x32xf32>
    %498 = arith.negf %497 : vector<2x32xf32>
    %499 = math.exp %498 : vector<2x32xf32>
    %cst_190 = arith.constant 1.000000e+00 : f32
    %500 = vector.broadcast %cst_190 : f32 to vector<2x32xf32>
    %501 = arith.addf %500, %499 : vector<2x32xf32>
    %502 = arith.divf %500, %501 : vector<2x32xf32>
    %503 = arith.mulf %494, %447 : vector<2x32xf32>
    %504 = arith.mulf %488, %496 : vector<2x32xf32>
    %505 = arith.addf %503, %504 : vector<2x32xf32>
    %506 = math.tanh %505 : vector<2x32xf32>
    %507 = arith.mulf %502, %506 : vector<2x32xf32>
    %cst_191 = arith.constant dense<0.000000e+00> : vector<2x128xf32>
    %508 = tpu.matmul %449, %145, %cst_191 {dimension_numbers = #tpu.dot_dimension_numbers<[1], [0], [0], [1], [0, 0, 1, 1], [], []>} : vector<2x32xf32>, vector<32x128xf32>, vector<2x128xf32> -> vector<2x128xf32>
    %509 = vector.broadcast %149 : vector<1x128xf32> to vector<2x128xf32>
    %510 = arith.addf %508, %509 : vector<2x128xf32>
    %cst_192 = arith.constant dense<0.000000e+00> : vector<2x128xf32>
    %511 = tpu.matmul %479, %147, %cst_192 {dimension_numbers = #tpu.dot_dimension_numbers<[1], [0], [0], [1], [0, 0, 1, 1], [], []>} : vector<2x32xf32>, vector<32x128xf32>, vector<2x128xf32> -> vector<2x128xf32>
    %512 = arith.addf %510, %511 : vector<2x128xf32>
    %513 = vector.extract_strided_slice %512 {offsets = [0, 0], sizes = [2, 32], strides = [1, 1]} : vector<2x128xf32> to vector<2x32xf32>
    %514 = arith.negf %513 : vector<2x32xf32>
    %515 = math.exp %514 : vector<2x32xf32>
    %cst_193 = arith.constant 1.000000e+00 : f32
    %516 = vector.broadcast %cst_193 : f32 to vector<2x32xf32>
    %517 = arith.addf %516, %515 : vector<2x32xf32>
    %518 = arith.divf %516, %517 : vector<2x32xf32>
    %519 = vector.extract_strided_slice %512 {offsets = [0, 32], sizes = [2, 32], strides = [1, 1]} : vector<2x128xf32> to vector<2x32xf32>
    %520 = arith.negf %519 : vector<2x32xf32>
    %521 = math.exp %520 : vector<2x32xf32>
    %cst_194 = arith.constant 1.000000e+00 : f32
    %522 = vector.broadcast %cst_194 : f32 to vector<2x32xf32>
    %523 = arith.addf %522, %521 : vector<2x32xf32>
    %524 = arith.divf %522, %523 : vector<2x32xf32>
    %525 = vector.extract_strided_slice %512 {offsets = [0, 64], sizes = [2, 32], strides = [1, 1]} : vector<2x128xf32> to vector<2x32xf32>
    %526 = math.tanh %525 : vector<2x32xf32>
    %527 = vector.extract_strided_slice %512 {offsets = [0, 96], sizes = [2, 32], strides = [1, 1]} : vector<2x128xf32> to vector<2x32xf32>
    %528 = arith.negf %527 : vector<2x32xf32>
    %529 = math.exp %528 : vector<2x32xf32>
    %cst_195 = arith.constant 1.000000e+00 : f32
    %530 = vector.broadcast %cst_195 : f32 to vector<2x32xf32>
    %531 = arith.addf %530, %529 : vector<2x32xf32>
    %532 = arith.divf %530, %531 : vector<2x32xf32>
    %533 = arith.mulf %524, %477 : vector<2x32xf32>
    %534 = arith.mulf %518, %526 : vector<2x32xf32>
    %535 = arith.addf %533, %534 : vector<2x32xf32>
    %536 = math.tanh %535 : vector<2x32xf32>
    %537 = arith.mulf %532, %536 : vector<2x32xf32>
    %538 = vector.extract_strided_slice %153 {offsets = [14, 0], sizes = [2, 128], strides = [1, 1]} : vector<16x128xf32> to vector<2x128xf32>
    %cst_196 = arith.constant dense<0.000000e+00> : vector<2x128xf32>
    %539 = tpu.matmul %507, %146, %cst_196 {dimension_numbers = #tpu.dot_dimension_numbers<[1], [0], [0], [1], [0, 0, 1, 1], [], []>} : vector<2x32xf32>, vector<32x128xf32>, vector<2x128xf32> -> vector<2x128xf32>
    %540 = arith.addf %538, %539 : vector<2x128xf32>
    %541 = vector.extract_strided_slice %540 {offsets = [0, 0], sizes = [2, 32], strides = [1, 1]} : vector<2x128xf32> to vector<2x32xf32>
    %542 = arith.negf %541 : vector<2x32xf32>
    %543 = math.exp %542 : vector<2x32xf32>
    %cst_197 = arith.constant 1.000000e+00 : f32
    %544 = vector.broadcast %cst_197 : f32 to vector<2x32xf32>
    %545 = arith.addf %544, %543 : vector<2x32xf32>
    %546 = arith.divf %544, %545 : vector<2x32xf32>
    %547 = vector.extract_strided_slice %540 {offsets = [0, 32], sizes = [2, 32], strides = [1, 1]} : vector<2x128xf32> to vector<2x32xf32>
    %548 = arith.negf %547 : vector<2x32xf32>
    %549 = math.exp %548 : vector<2x32xf32>
    %cst_198 = arith.constant 1.000000e+00 : f32
    %550 = vector.broadcast %cst_198 : f32 to vector<2x32xf32>
    %551 = arith.addf %550, %549 : vector<2x32xf32>
    %552 = arith.divf %550, %551 : vector<2x32xf32>
    %553 = vector.extract_strided_slice %540 {offsets = [0, 64], sizes = [2, 32], strides = [1, 1]} : vector<2x128xf32> to vector<2x32xf32>
    %554 = math.tanh %553 : vector<2x32xf32>
    %555 = vector.extract_strided_slice %540 {offsets = [0, 96], sizes = [2, 32], strides = [1, 1]} : vector<2x128xf32> to vector<2x32xf32>
    %556 = arith.negf %555 : vector<2x32xf32>
    %557 = math.exp %556 : vector<2x32xf32>
    %cst_199 = arith.constant 1.000000e+00 : f32
    %558 = vector.broadcast %cst_199 : f32 to vector<2x32xf32>
    %559 = arith.addf %558, %557 : vector<2x32xf32>
    %560 = arith.divf %558, %559 : vector<2x32xf32>
    %561 = arith.mulf %552, %505 : vector<2x32xf32>
    %562 = arith.mulf %546, %554 : vector<2x32xf32>
    %563 = arith.addf %561, %562 : vector<2x32xf32>
    %564 = math.tanh %563 : vector<2x32xf32>
    %565 = arith.mulf %560, %564 : vector<2x32xf32>
    %cst_200 = arith.constant dense<0.000000e+00> : vector<2x128xf32>
    %566 = tpu.matmul %507, %145, %cst_200 {dimension_numbers = #tpu.dot_dimension_numbers<[1], [0], [0], [1], [0, 0, 1, 1], [], []>} : vector<2x32xf32>, vector<32x128xf32>, vector<2x128xf32> -> vector<2x128xf32>
    %567 = vector.broadcast %149 : vector<1x128xf32> to vector<2x128xf32>
    %568 = arith.addf %566, %567 : vector<2x128xf32>
    %cst_201 = arith.constant dense<0.000000e+00> : vector<2x128xf32>
    %569 = tpu.matmul %537, %147, %cst_201 {dimension_numbers = #tpu.dot_dimension_numbers<[1], [0], [0], [1], [0, 0, 1, 1], [], []>} : vector<2x32xf32>, vector<32x128xf32>, vector<2x128xf32> -> vector<2x128xf32>
    %570 = arith.addf %568, %569 : vector<2x128xf32>
    %571 = vector.extract_strided_slice %570 {offsets = [0, 0], sizes = [2, 32], strides = [1, 1]} : vector<2x128xf32> to vector<2x32xf32>
    %572 = arith.negf %571 : vector<2x32xf32>
    %573 = math.exp %572 : vector<2x32xf32>
    %cst_202 = arith.constant 1.000000e+00 : f32
    %574 = vector.broadcast %cst_202 : f32 to vector<2x32xf32>
    %575 = arith.addf %574, %573 : vector<2x32xf32>
    %576 = arith.divf %574, %575 : vector<2x32xf32>
    %577 = vector.extract_strided_slice %570 {offsets = [0, 32], sizes = [2, 32], strides = [1, 1]} : vector<2x128xf32> to vector<2x32xf32>
    %578 = arith.negf %577 : vector<2x32xf32>
    %579 = math.exp %578 : vector<2x32xf32>
    %cst_203 = arith.constant 1.000000e+00 : f32
    %580 = vector.broadcast %cst_203 : f32 to vector<2x32xf32>
    %581 = arith.addf %580, %579 : vector<2x32xf32>
    %582 = arith.divf %580, %581 : vector<2x32xf32>
    %583 = vector.extract_strided_slice %570 {offsets = [0, 64], sizes = [2, 32], strides = [1, 1]} : vector<2x128xf32> to vector<2x32xf32>
    %584 = math.tanh %583 : vector<2x32xf32>
    %585 = vector.extract_strided_slice %570 {offsets = [0, 96], sizes = [2, 32], strides = [1, 1]} : vector<2x128xf32> to vector<2x32xf32>
    %586 = arith.negf %585 : vector<2x32xf32>
    %587 = math.exp %586 : vector<2x32xf32>
    %cst_204 = arith.constant 1.000000e+00 : f32
    %588 = vector.broadcast %cst_204 : f32 to vector<2x32xf32>
    %589 = arith.addf %588, %587 : vector<2x32xf32>
    %590 = arith.divf %588, %589 : vector<2x32xf32>
    %591 = arith.mulf %582, %535 : vector<2x32xf32>
    %592 = arith.mulf %576, %584 : vector<2x32xf32>
    %593 = arith.addf %591, %592 : vector<2x32xf32>
    %594 = math.tanh %593 : vector<2x32xf32>
    %595 = arith.mulf %590, %594 : vector<2x32xf32>
    %cst_205 = arith.constant dense<0.000000e+00> : vector<2x128xf32>
    %596 = tpu.matmul %565, %145, %cst_205 {dimension_numbers = #tpu.dot_dimension_numbers<[1], [0], [0], [1], [0, 0, 1, 1], [], []>} : vector<2x32xf32>, vector<32x128xf32>, vector<2x128xf32> -> vector<2x128xf32>
    %597 = vector.broadcast %149 : vector<1x128xf32> to vector<2x128xf32>
    %598 = arith.addf %596, %597 : vector<2x128xf32>
    %cst_206 = arith.constant dense<0.000000e+00> : vector<2x128xf32>
    %599 = tpu.matmul %595, %147, %cst_206 {dimension_numbers = #tpu.dot_dimension_numbers<[1], [0], [0], [1], [0, 0, 1, 1], [], []>} : vector<2x32xf32>, vector<32x128xf32>, vector<2x128xf32> -> vector<2x128xf32>
    %600 = arith.addf %598, %599 : vector<2x128xf32>
    %601 = vector.extract_strided_slice %600 {offsets = [0, 0], sizes = [2, 32], strides = [1, 1]} : vector<2x128xf32> to vector<2x32xf32>
    %602 = arith.negf %601 : vector<2x32xf32>
    %603 = math.exp %602 : vector<2x32xf32>
    %cst_207 = arith.constant 1.000000e+00 : f32
    %604 = vector.broadcast %cst_207 : f32 to vector<2x32xf32>
    %605 = arith.addf %604, %603 : vector<2x32xf32>
    %606 = arith.divf %604, %605 : vector<2x32xf32>
    %607 = vector.extract_strided_slice %600 {offsets = [0, 32], sizes = [2, 32], strides = [1, 1]} : vector<2x128xf32> to vector<2x32xf32>
    %608 = arith.negf %607 : vector<2x32xf32>
    %609 = math.exp %608 : vector<2x32xf32>
    %cst_208 = arith.constant 1.000000e+00 : f32
    %610 = vector.broadcast %cst_208 : f32 to vector<2x32xf32>
    %611 = arith.addf %610, %609 : vector<2x32xf32>
    %612 = arith.divf %610, %611 : vector<2x32xf32>
    %613 = vector.extract_strided_slice %600 {offsets = [0, 64], sizes = [2, 32], strides = [1, 1]} : vector<2x128xf32> to vector<2x32xf32>
    %614 = math.tanh %613 : vector<2x32xf32>
    %615 = vector.extract_strided_slice %600 {offsets = [0, 96], sizes = [2, 32], strides = [1, 1]} : vector<2x128xf32> to vector<2x32xf32>
    %616 = arith.negf %615 : vector<2x32xf32>
    %617 = math.exp %616 : vector<2x32xf32>
    %cst_209 = arith.constant 1.000000e+00 : f32
    %618 = vector.broadcast %cst_209 : f32 to vector<2x32xf32>
    %619 = arith.addf %618, %617 : vector<2x32xf32>
    %620 = arith.divf %618, %619 : vector<2x32xf32>
    %621 = arith.mulf %612, %593 : vector<2x32xf32>
    %622 = arith.mulf %606, %614 : vector<2x32xf32>
    %623 = arith.addf %621, %622 : vector<2x32xf32>
    %624 = math.tanh %623 : vector<2x32xf32>
    %625 = arith.mulf %620, %624 : vector<2x32xf32>
    %c0_210 = arith.constant 0 : index
    %c0_211 = arith.constant 0 : index
    %c0_212 = arith.constant 0 : index
    %626 = vector.load %arg13[%c0_210, %c0_211, %c0_212] : memref<2x2x32xf32, #tpu.memory_space<vmem>>, vector<1x2x32xf32>
    %627 = vector.shape_cast %626 : vector<1x2x32xf32> to vector<2x32xf32>
    %628 = vector.shape_cast %565 : vector<2x32xf32> to vector<1x2x32xf32>
    tpu.vector_store %arg13[%c0_210, %c0_211, %c0_212], %628 {strides = array<i32>} : memref<2x2x32xf32, #tpu.memory_space<vmem>>, vector<1x2x32xf32>,
    %c0_213 = arith.constant 0 : index
    %c0_214 = arith.constant 0 : index
    %c0_215 = arith.constant 0 : index
    %629 = vector.load %arg14[%c0_213, %c0_214, %c0_215] : memref<2x2x32xf32, #tpu.memory_space<vmem>>, vector<1x2x32xf32>
    %630 = vector.shape_cast %629 : vector<1x2x32xf32> to vector<2x32xf32>
    %631 = vector.shape_cast %563 : vector<2x32xf32> to vector<1x2x32xf32>
    tpu.vector_store %arg14[%c0_213, %c0_214, %c0_215], %631 {strides = array<i32>} : memref<2x2x32xf32, #tpu.memory_space<vmem>>, vector<1x2x32xf32>,
    %c1_216 = arith.constant 1 : index
    %c0_217 = arith.constant 0 : index
    %c0_218 = arith.constant 0 : index
    %632 = vector.load %arg13[%c1_216, %c0_217, %c0_218] : memref<2x2x32xf32, #tpu.memory_space<vmem>>, vector<1x2x32xf32>
    %633 = vector.shape_cast %632 : vector<1x2x32xf32> to vector<2x32xf32>
    %634 = vector.shape_cast %625 : vector<2x32xf32> to vector<1x2x32xf32>
    tpu.vector_store %arg13[%c1_216, %c0_217, %c0_218], %634 {strides = array<i32>} : memref<2x2x32xf32, #tpu.memory_space<vmem>>, vector<1x2x32xf32>,
    %c1_219 = arith.constant 1 : index
    %c0_220 = arith.constant 0 : index
    %c0_221 = arith.constant 0 : index
    %635 = vector.load %arg14[%c1_219, %c0_220, %c0_221] : memref<2x2x32xf32, #tpu.memory_space<vmem>>, vector<1x2x32xf32>
    %636 = vector.shape_cast %635 : vector<1x2x32xf32> to vector<2x32xf32>
    %637 = vector.shape_cast %623 : vector<2x32xf32> to vector<1x2x32xf32>
    tpu.vector_store %arg14[%c1_219, %c0_220, %c0_221], %637 {strides = array<i32>} : memref<2x2x32xf32, #tpu.memory_space<vmem>>, vector<1x2x32xf32>,
    %638 = vector.shape_cast %247 : vector<2x32xf32> to vector<2x1x32xf32>
    %639 = vector.shape_cast %305 : vector<2x32xf32> to vector<2x1x32xf32>
    %640 = vector.shape_cast %363 : vector<2x32xf32> to vector<2x1x32xf32>
    %641 = vector.shape_cast %421 : vector<2x32xf32> to vector<2x1x32xf32>
    %642 = vector.shape_cast %479 : vector<2x32xf32> to vector<2x1x32xf32>
    %643 = vector.shape_cast %537 : vector<2x32xf32> to vector<2x1x32xf32>
    %644 = vector.shape_cast %595 : vector<2x32xf32> to vector<2x1x32xf32>
    %645 = vector.shape_cast %625 : vector<2x32xf32> to vector<2x1x32xf32>
    %646 = tpu.concatenate %638, %639, %640, %641, %642, %643, %644, %645 in 1 : vector<2x1x32xf32>, vector<2x1x32xf32>, vector<2x1x32xf32>, vector<2x1x32xf32>, vector<2x1x32xf32>, vector<2x1x32xf32>, vector<2x1x32xf32>, vector<2x1x32xf32> -> vector<2x8x32xf32>
    %647 = vector.shape_cast %646 : vector<2x8x32xf32> to vector<16x32xf32>
    %c0_222 = arith.constant 0 : index
    %c0_223 = arith.constant 0 : index
    %648 = vector.load %arg4[%c0_222, %c0_223] : memref<32x64xf32, #tpu.memory_space<vmem>>, vector<32x64xf32>
    %cst_224 = arith.constant dense<0.000000e+00> : vector<16x64xf32>
    %649 = tpu.matmul %647, %648, %cst_224 {dimension_numbers = #tpu.dot_dimension_numbers<[1], [0], [0], [1], [0, 0, 1, 1], [], []>} : vector<16x32xf32>, vector<32x64xf32>, vector<16x64xf32> -> vector<16x64xf32>
    %c0_225 = arith.constant 0 : index
    %c0_226 = arith.constant 0 : index
    %650 = vector.load %arg5[%c0_225, %c0_226] : memref<1x64xf32, #tpu.memory_space<vmem>>, vector<1x64xf32>
    %651 = vector.broadcast %650 : vector<1x64xf32> to vector<16x64xf32>
    %652 = arith.addf %649, %651 : vector<16x64xf32>
    %653 = vector.shape_cast %652 : vector<16x64xf32> to vector<2x8x64xf32>
    %c0_227 = arith.constant 0 : index
    %c0_228 = arith.constant 0 : index
    %c0_229 = arith.constant 0 : index
    %654 = vector.load %arg12[%c0_227, %c0_228, %c0_229] : memref<2x8x64xf32, #tpu.memory_space<vmem>>, vector<2x8x64xf32>
    tpu.vector_store %arg12[%c0_227, %c0_228, %c0_229], %653 {strides = array<i32>} : memref<2x8x64xf32, #tpu.memory_space<vmem>>, vector<2x8x64xf32>,
    return
  }
}

</mosaic_0001>

<bundles_post_ra>
// kernel: tpu_custom_call.1
= control target key start
LH: loop header
LB: loop body
LE: loop exit
PB: predicated region body
PF: predicated region fallthrough
CT: control target
= control target key end

     0   :  { %20 = vsyncpa [#allocation7], 0  ;;  %s5585_s0 = inlined_call_operand.hbm [shape: s32[16], index: 0, kind: input, shape index: {}]   ;;  %s5586_s1 = inlined_call_operand.vmem [shape: f32[64,32], index: 1, kind: input, shape index: {}]   ;;  %s5587_s2 = inlined_call_operand.hbm [shape: f32[2,2,32], index: 2, kind: input, shape index: {}]   ;;  %s5588_s3 = inlined_call_operand.vmem [shape: f32[2,2,32], index: 3, kind: input, shape index: {}]   ;;  %s5589_s4 = inlined_call_operand.vmem [shape: f32[32,64], index: 4, kind: input, shape index: {}]   ;;  %s5590_s5 = inlined_call_operand.vmem [shape: f32[1,64], index: 5, kind: input, shape index: {}]   ;;  %s5591_s6 = inlined_call_operand.vmem [shape: f32[32,128], index: 6, kind: input, shape index: {}]   ;;  %s5592_s7 = inlined_call_operand.vmem [shape: f32[32,128], index: 7, kind: input, shape index: {}]   ;;  %s5593_s8 = inlined_call_operand.vmem [shape: f32[1,128], index: 8, kind: input, shape index: {}]   ;;  %s5594_s9 = inlined_call_operand.hbm [shape: f32[32,128], index: 9, kind: input, shape index: {}]   ;;  %s5595_s10 = inlined_call_operand.hbm [shape: f32[32,128], index: 10, kind: input, shape index: {}]   ;;  %s5596_s11 = inlined_call_operand.vmem [shape: f32[1,128], index: 11, kind: input, shape index: {}]   ;;  %s5597_s12 = inlined_call_operand.hbm [shape: f32[2,8,64], index: 12, kind: output, shape index: {0}]   ;;  %s5598_s13 = inlined_call_operand.hbm [shape: f32[2,2,32], index: 13, kind: output, shape index: {1}]   ;;  %s5599_s14 = inlined_call_operand.hbm [shape: f32[2,2,32], index: 14, kind: output, shape index: {2}]  }
   0x1   :  { %21 = vsyncpa [#allocation5], 0 }
   0x2   :  { %22 = vsyncpa [#allocation10], 0 }
   0x3   :  { %23 = vsyncpa [#allocation6], 0 }
   0x4   :  { %24 = vsyncpa [#allocation14], 0  ;;  %s4828_s29 = smov [#allocation9]  }
   0x5   :  { %s62_s30 = sshll.u32 %s4828_s29, 4  ;;  %s63_s30 = int_to_ptr.vmem [resolvable:$true] %s62_s30 }
   0x6   :  { %s4666_s15 = scalar_lea.vmem %s63_s30, 512  ;;  %p4671_p1 = scmp.lt.s32.totalorder %s63_s30, %s63_s30 }
   0x7   :  { %p4667_p0 = scmp.ne.s32.totalorder %s63_s30, %s4666_s15  ;;  %p4672_p2 = scmp.lt.s32.totalorder %s4666_s15, %s4666_s15 }
   0x9   :  { %p4673_p3 = por %p4672_p2, %p4671_p1 }
   0xb   :  { %p4674_p4 = pnand %p4673_p3, %p4667_p0 }
   0xd   :  { %4677 = shalt.err (!%p4674_p4)
}
   0xe   :  { %s4829_s16 = smov 128   ;;  %s4830_s17 = smov 8  }
   0xf   :  { %68 = dma.hbm_to_vmem [thread:$0]  %s5594_s9, 512, %s63_s30, [#allocation10], %s4829_s16, %s4829_s16, %s4830_s17  }
  0x10   :  { %s4831_s20 = smov [#allocation4]   ;;  %s4832_s23 = smov [#allocation8]  }
  0x11   :  { %32 = dma.hbm_to_smem %s5585_s0, 16, %s4831_s20, [#allocation7]  }
  0x12   :  { %s38_s24 = sshll.u32 %s4832_s23, 4  ;;  %s39_s24 = int_to_ptr.vmem [resolvable:$true] %s38_s24 }
  0x13   :  { %s4694_s25 = scalar_lea.vmem %s39_s24, 64  ;;  %p4699_p6 = scmp.lt.s32.totalorder %s39_s24, %s39_s24 }
  0x14   :  { %p4695_p5 = scmp.ne.s32.totalorder %s39_s24, %s4694_s25  ;;  %p4700_p7 = scmp.lt.s32.totalorder %s4694_s25, %s4694_s25 }
  0x16   :  { %p4701_p8 = por %p4700_p7, %p4699_p6 }
  0x18   :  { %p4702_p9 = pnand %p4701_p8, %p4695_p5 }
  0x1a   :  { %4705 = shalt.err (!%p4702_p9)
}
  0x1b   :  { %s4833_s26 = smov 32   ;;  %s4834_s27 = smov 2  }
  0x1c   :  { %44 = dma.hbm_to_vmem [thread:$0]  %s5587_s2, 64, %s39_s24, [#allocation5], %s4833_s26, %s4833_s26, %s4834_s27  }
  0x1d   :  { %s4835_s0 = smov [#allocation11]  }
  0x1e   :  { %s74_s29 = sshll.u32 %s4835_s0, 4  ;;  %s75_s29 = int_to_ptr.vmem [resolvable:$true] %s74_s29 }
  0x1f   :  { %s4714_s30 = scalar_lea.vmem %s75_s29, 512  ;;  %p4719_p11 = scmp.lt.s32.totalorder %s75_s29, %s75_s29 }
  0x20   :  { %p4715_p10 = scmp.ne.s32.totalorder %s75_s29, %s4714_s30  ;;  %p4720_p12 = scmp.lt.s32.totalorder %s4714_s30, %s4714_s30 }
  0x22   :  { %p4721_p13 = por %p4720_p12, %p4719_p11 }
  0x24   :  { %p4722_p0 = pnand %p4721_p13, %p4715_p10 }
  0x26   :  { %4725 = shalt.err (!%p4722_p0)
}
  0x27   :  { %80 = dma.hbm_to_vmem [thread:$0]  %s5595_s10, 512, %s75_s29, [#allocation10], %s4829_s16, %s4829_s16, %s4830_s17  }
  0x28   :  { %4786 = dma.done.wait [#allocation7], 16  }
  0x29   :  { %4787 = vsyncadd [#allocation7], 4294967280 }
  0x2a   :  { %4788 = dma.done.wait [#allocation5], 64  }
  0x2b   :  { %4789 = vsyncadd [#allocation5], 4294967232 }
  0x2c   :  { %4790 = dma.done.wait [#allocation10], 1024  }
  0x2d   :  { %4791 = vsyncadd [#allocation10], 4294966272 }
  0x2e   :  { %95 = sfence }
  0x2f   :  { %s96_s2 = sld [smem:[#allocation4]] }
  0x35   :  { %s97_s21 = scalar_lea.vmem %s5586_s1, %s96_s2 }
  0x36   :  { %v116_v0 = vld [vmem:[%s97_s21] sm:$0x1] }
  0x37   :  { %117 = vst [vmem:[#allocation2] sm:$0x1] %v116_v0 }
  0x38   :  { %143 = vsyncadd [#allocation3], 16  ;;  %s4004_s22 = sld [smem:[#allocation4 + $0x1]] }
  0x3e   :  { %s145_s10 = scalar_lea.vmem %s5586_s1, %s4004_s22 }
  0x3f   :  { %v166_v1 = vld [vmem:[%s145_s10] sm:$0x1] }
  0x40   :  { %167 = vst [vmem:[#allocation2 + $0x1] sm:$0x1] %v166_v1 }
  0x41   :  { %193 = vsyncadd [#allocation3 + $0x1], 16  ;;  %s4005_s25 = sld [smem:[#allocation4 + $0x2]] }
  0x47   :  { %s195_s0 = scalar_lea.vmem %s5586_s1, %s4005_s25 }
  0x48   :  { %v216_v2 = vld [vmem:[%s195_s0] sm:$0x1] }
  0x49   :  { %217 = vst [vmem:[#allocation2 + $0x2] sm:$0x1] %v216_v2 }
  0x4a   :  { %243 = vsyncadd [#allocation3 + $0x2], 16  ;;  %s4006_s29 = sld [smem:[#allocation4 + $0x3]] }
  0x50   :  { %s245_s18 = scalar_lea.vmem %s5586_s1, %s4006_s29 }
  0x51   :  { %v266_v3 = vld [vmem:[%s245_s18] sm:$0x1] }
  0x52   :  { %267 = vst [vmem:[#allocation2 + $0x3] sm:$0x1] %v266_v3 }
  0x53   :  { %293 = vsyncadd [#allocation3 + $0x3], 16  ;;  %s4007_s2 = sld [smem:[#allocation4 + $0x4]] }
  0x59   :  { %s295_s21 = scalar_lea.vmem %s5586_s1, %s4007_s2 }
  0x5a   :  { %v316_v4 = vld [vmem:[%s295_s21] sm:$0x1] }
  0x5b   :  { %317 = vst [vmem:[#allocation2 + $0x4] sm:$0x1] %v316_v4 }
  0x5c   :  { %343 = vsyncadd [#allocation3 + $0x4], 16  ;;  %s4008_s22 = sld [smem:[#allocation4 + $0x5]] }
  0x62   :  { %s345_s10 = scalar_lea.vmem %s5586_s1, %s4008_s22 }
  0x63   :  { %v366_v5 = vld [vmem:[%s345_s10] sm:$0x1] }
  0x64   :  { %367 = vst [vmem:[#allocation2 + $0x5] sm:$0x1] %v366_v5 }
  0x65   :  { %393 = vsyncadd [#allocation3 + $0x5], 16  ;;  %s4009_s25 = sld [smem:[#allocation4 + $0x6]] }
  0x6b   :  { %s395_s0 = scalar_lea.vmem %s5586_s1, %s4009_s25 }
  0x6c   :  { %v416_v6 = vld [vmem:[%s395_s0] sm:$0x1] }
  0x6d   :  { %417 = vst [vmem:[#allocation2 + $0x6] sm:$0x1] %v416_v6 }
  0x6e   :  { %443 = vsyncadd [#allocation3 + $0x6], 16  ;;  %s4010_s29 = sld [smem:[#allocation4 + $0x7]] }
  0x74   :  { %s445_s18 = scalar_lea.vmem %s5586_s1, %s4010_s29 }
  0x75   :  { %v466_v7 = vld [vmem:[%s445_s18] sm:$0x1] }
  0x76   :  { %467 = vst [vmem:[#allocation2 + $0x7] sm:$0x1] %v466_v7 }
  0x77   :  { %493 = vsyncadd [#allocation3 + $0x7], 16  ;;  %s4011_s2 = sld [smem:[#allocation4 + $0x8]] }
  0x7d   :  { %s495_s21 = scalar_lea.vmem %s5586_s1, %s4011_s2 }
  0x7e   :  { %v516_v8 = vld [vmem:[%s495_s21] sm:$0x1] }
  0x7f   :  { %517 = vst [vmem:[#allocation2 + $0x8] sm:$0x1] %v516_v8 }
  0x80   :  { %543 = vsyncadd [#allocation3 + $0x8], 16  ;;  %s4012_s22 = sld [smem:[#allocation4 + $0x9]] }
  0x86   :  { %s545_s10 = scalar_lea.vmem %s5586_s1, %s4012_s22 }
  0x87   :  { %v566_v9 = vld [vmem:[%s545_s10] sm:$0x1] }
  0x88   :  { %567 = vst [vmem:[#allocation2 + $0x9] sm:$0x1] %v566_v9 }
  0x89   :  { %593 = vsyncadd [#allocation3 + $0x9], 16  ;;  %s4013_s25 = sld [smem:[#allocation4 + $0xa]] }
  0x8f   :  { %s595_s0 = scalar_lea.vmem %s5586_s1, %s4013_s25 }
  0x90   :  { %v616_v10 = vld [vmem:[%s595_s0] sm:$0x1] }
  0x91   :  { %617 = vst [vmem:[#allocation2 + $0xa] sm:$0x1] %v616_v10 }
  0x92   :  { %643 = vsyncadd [#allocation3 + $0xa], 16  ;;  %s4014_s29 = sld [smem:[#allocation4 + $0xb]] }
  0x98   :  { %s645_s18 = scalar_lea.vmem %s5586_s1, %s4014_s29 }
  0x99   :  { %v666_v11 = vld [vmem:[%s645_s18] sm:$0x1] }
  0x9a   :  { %667 = vst [vmem:[#allocation2 + $0xb] sm:$0x1] %v666_v11 }
  0x9b   :  { %693 = vsyncadd [#allocation3 + $0xb], 16  ;;  %s4015_s2 = sld [smem:[#allocation4 + $0xc]] }
  0xa1   :  { %s695_s21 = scalar_lea.vmem %s5586_s1, %s4015_s2 }
  0xa2   :  { %v716_v12 = vld [vmem:[%s695_s21] sm:$0x1] }
  0xa3   :  { %717 = vst [vmem:[#allocation2 + $0xc] sm:$0x1] %v716_v12 }
  0xa4   :  { %743 = vsyncadd [#allocation3 + $0xc], 16  ;;  %s4016_s22 = sld [smem:[#allocation4 + $0xd]] }
  0xaa   :  { %s745_s10 = scalar_lea.vmem %s5586_s1, %s4016_s22 }
  0xab   :  { %v766_v13 = vld [vmem:[%s745_s10] sm:$0x1] }
  0xac   :  { %767 = vst [vmem:[#allocation2 + $0xd] sm:$0x1] %v766_v13 }
  0xad   :  { %793 = vsyncadd [#allocation3 + $0xd], 16  ;;  %s4017_s25 = sld [smem:[#allocation4 + $0xe]] }
  0xb3   :  { %s795_s0 = scalar_lea.vmem %s5586_s1, %s4017_s25 }
  0xb4   :  { %v816_v14 = vld [vmem:[%s795_s0] sm:$0x1] }
  0xb5   :  { %817 = vst [vmem:[#allocation2 + $0xe] sm:$0x1] %v816_v14 }
  0xb6   :  { %843 = vsyncadd [#allocation3 + $0xe], 16  ;;  %s4018_s29 = sld [smem:[#allocation4 + $0xf]] }
  0xbc   :  { %s845_s18 = scalar_lea.vmem %s5586_s1, %s4018_s29 }
  0xbd   :  { %v866_v15 = vld [vmem:[%s845_s18] sm:$0x1] }
  0xbe   :  { %867 = vst [vmem:[#allocation2 + $0xf] sm:$0x1] %v866_v15 }
  0xbf   :  { %893 = vsyncadd [#allocation3 + $0xf], 16 }
  0xc0   :  { %4792 = dma.done.wait [#allocation3], 16 }
  0xc1   :  { %4793 = vsyncadd [#allocation3], 4294967280 }
  0xc2   :  { %4794 = dma.done.wait [#allocation3 + $0x1], 16 }
  0xc3   :  { %4795 = vsyncadd [#allocation3 + $0x1], 4294967280 }
  0xc4   :  { %4796 = dma.done.wait [#allocation3 + $0x2], 16 }
  0xc5   :  { %4797 = vsyncadd [#allocation3 + $0x2], 4294967280 }
  0xc6   :  { %4798 = dma.done.wait [#allocation3 + $0x3], 16 }
  0xc7   :  { %4799 = vsyncadd [#allocation3 + $0x3], 4294967280 }
  0xc8   :  { %4800 = dma.done.wait [#allocation3 + $0x4], 16 }
  0xc9   :  { %4801 = vsyncadd [#allocation3 + $0x4], 4294967280 }
  0xca   :  { %4802 = dma.done.wait [#allocation3 + $0x5], 16 }
  0xcb   :  { %4803 = vsyncadd [#allocation3 + $0x5], 4294967280 }
  0xcc   :  { %4804 = dma.done.wait [#allocation3 + $0x6], 16 }
  0xcd   :  { %4805 = vsyncadd [#allocation3 + $0x6], 4294967280 }
  0xce   :  { %4806 = dma.done.wait [#allocation3 + $0x7], 16 }
  0xcf   :  { %4807 = vsyncadd [#allocation3 + $0x7], 4294967280 }
  0xd0   :  { %4808 = dma.done.wait [#allocation3 + $0x8], 16 }
  0xd1   :  { %4809 = vsyncadd [#allocation3 + $0x8], 4294967280 }
  0xd2   :  { %4810 = dma.done.wait [#allocation3 + $0x9], 16 }
  0xd3   :  { %4811 = vsyncadd [#allocation3 + $0x9], 4294967280 }
  0xd4   :  { %4812 = dma.done.wait [#allocation3 + $0xa], 16 }
  0xd5   :  { %4813 = vsyncadd [#allocation3 + $0xa], 4294967280 }
  0xd6   :  { %4814 = dma.done.wait [#allocation3 + $0xb], 16 }
  0xd7   :  { %4815 = vsyncadd [#allocation3 + $0xb], 4294967280 }
  0xd8   :  { %4816 = dma.done.wait [#allocation3 + $0xc], 16 }
  0xd9   :  { %4817 = vsyncadd [#allocation3 + $0xc], 4294967280 }
  0xda   :  { %4818 = dma.done.wait [#allocation3 + $0xd], 16 }
  0xdb   :  { %4819 = vsyncadd [#allocation3 + $0xd], 4294967280 }
  0xdc   :  { %4820 = dma.done.wait [#allocation3 + $0xe], 16 }
  0xdd   :  { %4821 = vsyncadd [#allocation3 + $0xe], 4294967280 }
  0xde   :  { %4822 = dma.done.wait [#allocation3 + $0xf], 16 }
  0xdf   :  { %4823 = vsyncadd [#allocation3 + $0xf], 4294967280  ;;  %v4836_v16 = vmov 0.0   ;;  %vm4837_vm0 = vmmov 0   ;;  %v930_v17 = vld [vmem:[%s5591_s6 + $0x18] sm:$0xff]  ;;  %v929_v18 = vld [vmem:[%s5591_s6 + $0x10] sm:$0xff] }
  0xe0   :  { %4226 = vmatprep.subr.mxu1 %v4836_v16  ;;  %4234 = vmatprep.mubr.msk.f32.mxu1 %vm4837_vm0, %v4836_v16  ;;  %v5000_v19 = vld [vmem:[%s5592_s7 + $0x18] sm:$0xff]  ;;  %v5006_v20 = vld [vmem:[%s5592_s7 + $0x10] sm:$0xff]  ;;  %v928_v21 = vld [vmem:[%s5591_s6 + $0x8] sm:$0xff]  ;;  %vm953_vm1 = vcmask 261120   ;;  %s4838_s1 = smov 64   ;;  %vm3532_vm2 = vcmask 1040384  }
  0xe1   :  { %4215 = vmatprep.subr.mxu0 %v930_v17  ;;  %4227 = vmatpush3.msra.mxu1 %v5000_v19  ;;  %v945_v22 = vld [vmem:[#allocation2] sm:$0xff]  ;;  %v5016_v23 = vld [vmem:[%s5592_s7 + $0x8] sm:$0xff]  ;;  %v1035_v27 = vld [vmem:[#allocation8] sm:$0x3]  ;;  %vm3535_vm3 = vcmask 1041408   ;;  %vm3538_vm4 = vcmask 1042432  }
  0xe2   :  { %4216 = vmatpush3.msra.mxu0 %v930_v17  ;;  %4228 = vmatprep.subr.mxu1 %v4836_v16  ;;  %v927_v24 = vld [vmem:[%s5591_s6] sm:$0xff]  ;;  %v946_v26 = vld [vmem:[#allocation2 + $0x8] sm:$0xff]  ;;  %v5074_v51 = vld [vmem:[#allocation9] sm:$0xff]  ;;  %vm3541_vm5 = vcmask 1043456   ;;  %vm3544_vm6 = vcmask 1044480   ;;  %vm3547_vm7 = vcmask 1045504  }
  0xe3   :  { %4217 = vmatprep.subr.mxu0 %v929_v18  ;;  %4229 = vmatpush3.msra.mxu1 %v5006_v20  ;;  %v5026_v25 = vld [vmem:[%s5592_s7] sm:$0xff]  ;;  %v5064_v48 = vld [vmem:[#allocation9 + $0x18] sm:$0xff]  ;;  %v5098_v59 = vld [vmem:[#allocation11] sm:$0xff]  ;;  %vm3550_vm8 = vcmask 1046528   ;;  %vm3264_vm9 = vcmask 261126   ;;  %vm3276_vm10 = vcmask 254976  }
  0xe4   :  { %4218 = vmatpush3.msra.mxu0 %v929_v18  ;;  %4230 = vmatprep.subr.mxu1 %v4836_v16  ;;  %v4019_v28 = vld [vmem:[%s5593_s8] ss:$0 sm:$0xff]  ;;  %v5066_v49 = vld [vmem:[#allocation9 + $0x10] sm:$0xff]  ;;  %v5082_v55 = vld [vmem:[#allocation11 + $0x18] sm:$0xff]  ;;  %s4841_s8 = smov [#allocation13]  }
  0xe5   :  { %4219 = vmatprep.subr.mxu0 %v928_v21  ;;  %4223 = vmatprep.mubr.msk.f32.mxu0 %vm953_vm1, %v945_v22  ;;  %v1038_v37 = vld [vmem:[%s5588_s3] sm:$0x3]  ;;  %v5086_v57 = vld [vmem:[#allocation11 + $0x10] sm:$0xff]  ;;  %v1037_v60 = vld [vmem:[#allocation8 + $0x2] sm:$0x3]  ;;  %s3669_s20 = sshll.u32 %s4841_s8, 4  ;;  %s3670_s20 = int_to_ptr.vmem [resolvable:$true] %s3669_s20 }
  0xe6   :  { %4220 = vmatpush3.msra.mxu0 %v928_v21  ;;  %4231 = vmatpush3.msra.mxu1 %v5016_v23  ;;  %v5070_v50 = vld [vmem:[#allocation9 + $0x8] sm:$0xff]  ;;  %s4726_s21 = scalar_lea.vmem %s3670_s20, 64  ;;  %p4731_p2 = scmp.lt.s32.totalorder %s3670_s20, %s3670_s20 }
  0xe7   :  { %4221 = vmatprep.subr.mxu0 %v927_v24  ;;  %4232 = vmatprep.subr.mxu1 %v4836_v16  ;;  %v5092_v58 = vld [vmem:[#allocation11 + $0x8] sm:$0xff]  ;;  %p4727_p1 = scmp.ne.s32.totalorder %s3670_s20, %s4726_s21  ;;  %p4732_p3 = scmp.lt.s32.totalorder %s4726_s21, %s4726_s21 }
  0xe8   :  { %4222 = vmatpush3.msra.mxu0 %v927_v24  ;;  %4233 = vmatpush3.msra.mxu1 %v5026_v25  ;;  %v5127_v3 = vld [vmem:[%s5596_s11] ss:$0 sm:$0xff]  ;;  %v4022_v10 = vld [vmem:[%s5588_s3 + $0x2] sm:$0x3] }
  0xe9   :  { %4224 = vmatmul.mubr.msk.f32.vlgmr.msra.gmra.mxu0 %vm953_vm1, %v946_v26  ;;  %4235 = vmatmul.mubr.msk.f32.vlgmr.msra.gmra.mxu1 %vm953_vm1, %v1035_v27  ;;  %p4733_p4 = por %p4732_p3, %p4731_p2 }
  0xea   :  { %4237 = vmatprep.subr.mxu0 %v4836_v16  ;;  %4248 = vmatprep.subr.mxu1 %v4836_v16 }
  0xeb   :  { %4238 = vmatpush3.msra.mxu0 %v5000_v19  ;;  %4245 = vmatprep.mubr.msk.f32.mxu0 %vm4837_vm0, %v4836_v16  ;;  %p4734_p5 = pnand %p4733_p4, %p4727_p1 }
  0xec   :  { %4239 = vmatprep.subr.mxu0 %v4836_v16  ;;  %4256 = vmatprep.mubr.msk.f32.mxu1 %vm4837_vm0, %v4836_v16 }
  0xed   :  { %4240 = vmatpush3.msra.mxu0 %v5006_v20  ;;  %4249 = vmatpush3.msra.mxu1 %v5064_v48 }
  0xee   :  { %4241 = vmatprep.subr.mxu0 %v4836_v16  ;;  %4250 = vmatprep.subr.mxu1 %v4836_v16 }
  0xef   :  { %4242 = vmatpush3.msra.mxu0 %v5016_v23  ;;  %4251 = vmatpush3.msra.mxu1 %v5066_v49 }
  0xf0   :  { %4243 = vmatprep.subr.mxu0 %v4836_v16  ;;  %4252 = vmatprep.subr.mxu1 %v4836_v16 }
  0xf1   :  { %4244 = vmatpush3.msra.mxu0 %v5026_v25  ;;  %4253 = vmatpush3.msra.mxu1 %v5070_v50 }
  0xf2   :  { %4259 = vmatprep.subr.mxu0 %v4836_v16  ;;  %4254 = vmatprep.subr.mxu1 %v4836_v16 }
  0xf3   :  { %4255 = vmatpush3.msra.mxu1 %v5074_v51 }
  0xf4   :  { %4270 = vmatprep.subr.mxu1 %v4836_v16 }
 0x1a9   :  { %v4225_v29 = vpop.f32.mrf.mxu0  ;;  %v1110_v30 = vpop.f32.mrf.mxu1 }
 0x1aa   :  { %v5050_v31 = vadd.f32 %v4225_v29, %v4019_v28 }
 0x1ab   :  { %v1026_v32 = vpop.f32.mrf.mxu0  ;;  %v4236_v33 = vpop.f32.mrf.mxu1 }
 0x1ac   :  { %v5052_v34 = vadd.f32 %v4019_v28, %v1026_v32 }
 0x1ae   :  { %v1114_v35 = vadd.f32 %v1110_v30, %v5052_v34 }
 0x1b0   :  { %4517 = vtanh.f32 %v1114_v35  ;;  %v4024_v38 = vmul.f32 -1.442695, %v1114_v35 }
 0x1b2   :  { %4519 = vpow2.f32 %v4024_v38 }
 0x1bd   :  { %v4518_v36 = vpop.eup %4517 }
 0x1be   :  { %1128 = vrot.lane.b32.xlu0 %v4518_v36, %s4838_s1 }
 0x1bf   :  { %v4520_v39 = vpop.eup %4519 }
 0x1c0   :  { %v1118_v40 = vadd.f32 1.0, %v4520_v39 }
 0x1c2   :  { %1123 = vrot.lane.b32.xlu0 %v1038_v37, %s4833_s26  ;;  %4521 = vrcp.f32 %v1118_v40 }
 0x1cf   :  { %v4522_v41 = vpop.eup %4521 }
 0x230   :  { %v1129_v42 = vpop.permute.xlu0 %1128 }
 0x231   :  { %v1131_v43 = vmul.f32 %v4522_v41, %v1129_v42 }
 0x233   :  { %1133 = vrot.lane.b32.xlu1 %v1131_v43, %s4833_s26 }
 0x234   :  { %v1124_v44 = vpop.permute.xlu0 %1123 }
 0x235   :  { %v1126_v45 = vmul.f32 %v4522_v41, %v1124_v44 }
 0x2a5   :  { %v1134_v46 = vpop.permute.xlu1 %1133 }
 0x2a6   :  { %v5061_v47 = vadd.f32 %v1134_v46, %v1126_v45 }
 0x2a8   :  { %4523 = vtanh.f32 %v5061_v47  ;;  %v1230_v28 = vrot.slane %v5061_v47, 6 }
 0x2b5   :  { %v4524_v52 = vpop.eup %4523 }
 0x2b6   :  { %1139 = vrot.lane.b32.xlu1 %v4524_v52, %s4838_s1 }
 0x328   :  { %v1140_v53 = vpop.permute.xlu1 %1139 }
 0x329   :  { %v1142_v54 = vmul.f32 %v4522_v41, %v1140_v53 }
 0x32b   :  { %1144 = vrot.lane.b32.xlu0 %v1142_v54, %s4833_s26 }
 0x39d   :  { %v1145_v56 = vpop.permute.xlu0 %1144 }
 0x39e   :  { %4246 = vmatmul.mubr.msk.f32.vlgmr.msra.gmra.mxu0 %vm953_vm1, %v1145_v56  ;;  %4257 = vmatmul.mubr.msk.f32.vlgmr.msra.gmra.mxu1 %vm953_vm1, %v1145_v56 }
 0x39f   :  { %4260 = vmatpush3.msra.mxu0 %v5082_v55  ;;  %4267 = vmatprep.mubr.msk.f32.mxu0 %vm4837_vm0, %v4836_v16 }
 0x3a0   :  { %4261 = vmatprep.subr.mxu0 %v4836_v16  ;;  %4271 = vmatpush3.msra.mxu1 %v5000_v19 }
 0x3a1   :  { %4262 = vmatpush3.msra.mxu0 %v5086_v57  ;;  %4272 = vmatprep.subr.mxu1 %v4836_v16 }
 0x3a2   :  { %4263 = vmatprep.subr.mxu0 %v4836_v16  ;;  %4273 = vmatpush3.msra.mxu1 %v5006_v20 }
 0x3a3   :  { %4264 = vmatpush3.msra.mxu0 %v5092_v58  ;;  %4274 = vmatprep.subr.mxu1 %v4836_v16 }
 0x3a4   :  { %4265 = vmatprep.subr.mxu0 %v4836_v16  ;;  %4275 = vmatpush3.msra.mxu1 %v5016_v23 }
 0x3a5   :  { %4266 = vmatpush3.msra.mxu0 %v5098_v59  ;;  %4276 = vmatprep.subr.mxu1 %v4836_v16 }
 0x3a6   :  { %4268 = vmatmul.mubr.msk.f32.vlgmr.msra.gmra.mxu0 %vm953_vm1, %v1037_v60  ;;  %4281 = vmatprep.subr.mxu0 %v4836_v16 }
 0x3a7   :  { %4282 = vmatpush3.msra.mxu0 %v5064_v48  ;;  %4277 = vmatpush3.msra.mxu1 %v5026_v25 }
 0x3a8   :  { %4283 = vmatprep.subr.mxu0 %v4836_v16  ;;  %4278 = vmatprep.mubr.msk.f32.mxu1 %vm4837_vm0, %v4836_v16 }
 0x3a9   :  { %4284 = vmatpush3.msra.mxu0 %v5066_v49  ;;  %4289 = vmatprep.mubr.msk.f32.mxu0 %vm4837_vm0, %v4836_v16 }
 0x3aa   :  { %4285 = vmatprep.subr.mxu0 %v4836_v16  ;;  %4292 = vmatprep.subr.mxu1 %v4836_v16 }
 0x3ab   :  { %4286 = vmatpush3.msra.mxu0 %v5070_v50 }
 0x3ac   :  { %4287 = vmatprep.subr.mxu0 %v4836_v16 }
 0x3ad   :  { %4288 = vmatpush3.msra.mxu0 %v5074_v51 }
 0x3ae   :  { %4303 = vmatprep.subr.mxu0 %v4836_v16 }
 0x45e   :  { %v1214_v61 = vpop.f32.mrf.mxu0  ;;  %v1321_v62 = vpop.f32.mrf.mxu1 }
 0x45f   :  { %v1219_v63 = vrot.slane %v1214_v61, 6  ;;  %v1322_v4 = vadd.f32 %v5127_v3, %v1321_v62 }
 0x460   :  { %v4247_v0 = vpop.f32.mrf.mxu0  ;;  %v4258_v1 = vpop.f32.mrf.mxu1 }
 0x461   :  { %v1221_v2 = vadd.f32 %v1219_v63, %v5052_v34 }
 0x463   :  { %4525 = vtanh.f32 %v1221_v2  ;;  %v4026_v11 = vmul.f32 -1.442695, %v1221_v2 }
 0x466   :  { %v1394_v5 = vpop.f32.mrf.mxu0 }
 0x467   :  { %v1398_v6 = vadd.f32 %v1394_v5, %v1322_v4 }
 0x468   :  { %v4269_v7 = vpop.f32.mrf.mxu0 }
 0x469   :  { %4527 = vtanh.f32 %v1398_v6  ;;  %v4030_v12 = vmul.f32 -1.442695, %v1398_v6 }
 0x46a   :  { %4529 = vpow2.f32 %v4026_v11 }
 0x46b   :  { %4531 = vpow2.f32 %v4030_v12 }
 0x470   :  { %v4526_v8 = vpop.eup %4525 }
 0x471   :  { %1234 = vrot.lane.b32.xlu1 %v4526_v8, %s4838_s1 }
 0x476   :  { %v4528_v9 = vpop.eup %4527 }
 0x477   :  { %1412 = vrot.lane.b32.xlu0 %v4528_v9, %s4838_s1  ;;  %v4530_v13 = vpop.eup %4529 }
 0x478   :  { %v1225_v14 = vadd.f32 1.0, %v4530_v13  ;;  %v4532_v15 = vpop.eup %4531 }
 0x479   :  { %v1402_v17 = vadd.f32 1.0, %v4532_v15 }
 0x47a   :  { %4533 = vrcp.f32 %v1225_v14 }
 0x47b   :  { %1407 = vrot.lane.b32.xlu0 %v4022_v10, %s4833_s26  ;;  %4535 = vrcp.f32 %v1402_v17 }
 0x487   :  { %v4534_v18 = vpop.eup %4533 }
 0x488   :  { %v4536_v24 = vpop.eup %4535  ;;  %v1232_v29 = vmul.f32 %v4534_v18, %v1230_v28 }
 0x4e3   :  { %v1235_v21 = vpop.permute.xlu1 %1234 }
 0x4e4   :  { %v1237_v22 = vmul.f32 %v4534_v18, %v1235_v21 }
 0x4e6   :  { %1239 = vrot.lane.b32.xlu1 %v1237_v22, %s4833_s26 }
 0x4e9   :  { %v1413_v26 = vpop.permute.xlu0 %1412 }
 0x4ea   :  { %v1415_v27 = vmul.f32 %v4536_v24, %v1413_v26 }
 0x4ec   :  { %1417 = vrot.lane.b32.xlu1 %v1415_v27, %s4833_s26 }
 0x4ed   :  { %v1408_v33 = vpop.permute.xlu0 %1407 }
 0x4ee   :  { %v1410_v35 = vmul.f32 %v4536_v24, %v1408_v33  ;;  %v3287_v33 = vlaneseq }
 0x558   :  { %v1240_v30 = vpop.permute.xlu1 %1239 }
 0x559   :  { %v5139_v32 = vadd.f32 %v1240_v30, %v1232_v29  ;;  %v4839_v30 = vmov 1966171168  }
 0x55b   :  { %4537 = vtanh.f32 %v5139_v32  ;;  %v1515_v17 = vrot.slane %v5139_v32, 6  ;;  %v3285_v32 = vunpack.c.l.s4 %v4839_v30 }
 0x55e   :  { %v1418_v36 = vpop.permute.xlu1 %1417 }
 0x55f   :  { %v5142_v37 = vadd.f32 %v1418_v36, %v1410_v35  ;;  %v3286_v35 = vunpack.c.0.s8 %v3285_v32  ;;  %v3288_v36 = vshrl.u32 %v3287_v33, 7 }
 0x561   :  { %4539 = vtanh.f32 %v5142_v37 }
 0x568   :  { %v4538_v38 = vpop.eup %4537 }
 0x569   :  { %1245 = vrot.lane.b32.xlu0 %v4538_v38, %s4838_s1 }
 0x56e   :  { %v4540_v39 = vpop.eup %4539 }
 0x56f   :  { %1423 = vrot.lane.b32.xlu1 %v4540_v39, %s4838_s1 }
 0x5db   :  { %v1246_v40 = vpop.permute.xlu0 %1245 }
 0x5dc   :  { %v1248_v41 = vmul.f32 %v4534_v18, %v1246_v40  ;;  %v5201_v40 = vsub.s32 %v3286_v35, %v3288_v36 }
 0x5de   :  { %v1428_v42 = vrot.slane %v1248_v41, 2 }
 0x5e0   :  { %1429 = vrot.lane.b32.xlu0 %v1428_v42, %s4833_s26 }
 0x5e1   :  { %v1424_v43 = vpop.permute.xlu1 %1423 }
 0x5e2   :  { %v5148_v44 = vmul.f32 %v4536_v24, %v1424_v43 }
 0x5e4   :  { %1605 = vrot.lane.b32.xlu1 %v5148_v44, %s4833_s26  ;;  %v3290_v42 = vrot.slane %v5148_v44, %v5201_v40 }
 0x652   :  { %v1430_v45 = vpop.permute.xlu0 %1429 }
 0x653   :  { %4279 = vmatmul.mubr.msk.f32.vlgmr.msra.gmra.mxu1 %vm953_vm1, %v1430_v45  ;;  %4290 = vmatmul.mubr.msk.f32.vlgmr.msra.gmra.mxu0 %vm953_vm1, %v1430_v45  ;;  %v5206_v45 = vsub.s32 0, %v3288_v36 }
 0x654   :  { %4293 = vmatpush3.msra.mxu1 %v5082_v55  ;;  %4300 = vmatprep.mubr.msk.f32.mxu1 %vm4837_vm0, %v4836_v16 }
 0x655   :  { %4294 = vmatprep.subr.mxu1 %v4836_v16  ;;  %4304 = vmatpush3.msra.mxu0 %v5000_v19 }
 0x656   :  { %4295 = vmatpush3.msra.mxu1 %v5086_v57  ;;  %4305 = vmatprep.subr.mxu0 %v4836_v16  ;;  %v1606_v46 = vpop.permute.xlu1 %1605 }
 0x657   :  { %4296 = vmatprep.subr.mxu1 %v4836_v16  ;;  %4306 = vmatpush3.msra.mxu0 %v5006_v20 }
 0x658   :  { %4297 = vmatpush3.msra.mxu1 %v5092_v58  ;;  %4307 = vmatprep.subr.mxu0 %v4836_v16 }
 0x659   :  { %4298 = vmatprep.subr.mxu1 %v4836_v16  ;;  %4308 = vmatpush3.msra.mxu0 %v5016_v23 }
 0x65a   :  { %4299 = vmatpush3.msra.mxu1 %v5098_v59  ;;  %4309 = vmatprep.subr.mxu0 %v4836_v16 }
 0x65b   :  { %4301 = vmatmul.mubr.msk.f32.vlgmr.msra.gmra.mxu1 %vm953_vm1, %v1606_v46  ;;  %4314 = vmatprep.subr.mxu1 %v4836_v16 }
 0x65c   :  { %4315 = vmatpush3.msra.mxu1 %v5064_v48  ;;  %4310 = vmatpush3.msra.mxu0 %v5026_v25 }
 0x65d   :  { %4316 = vmatprep.subr.mxu1 %v4836_v16  ;;  %4311 = vmatprep.mubr.msk.f32.mxu0 %vm4837_vm0, %v4836_v16 }
 0x65e   :  { %4317 = vmatpush3.msra.mxu1 %v5066_v49  ;;  %4325 = vmatprep.subr.mxu0 %v4836_v16 }
 0x65f   :  { %4318 = vmatprep.subr.mxu1 %v4836_v16  ;;  %4322 = vmatprep.mubr.msk.f32.mxu1 %vm4837_vm0, %v4836_v16 }
 0x660   :  { %4319 = vmatpush3.msra.mxu1 %v5070_v50 }
 0x661   :  { %4320 = vmatprep.subr.mxu1 %v4836_v16 }
 0x662   :  { %4321 = vmatpush3.msra.mxu1 %v5074_v51 }
 0x663   :  { %4336 = vmatprep.subr.mxu1 %v4836_v16 }
 0x713   :  { %v1499_v47 = vpop.f32.mrf.mxu1  ;;  %v1600_v52 = vpop.f32.mrf.mxu0 }
 0x714   :  { %v1504_v53 = vrot.slane %v1499_v47, 4  ;;  %v1601_v61 = vadd.f32 %v5127_v3, %v1600_v52  ;;  %v3291_v47 = vcombine.high %v3290_v42, %v3290_v42 }
 0x715   :  { %v4280_v54 = vpop.f32.mrf.mxu1  ;;  %v4291_v56 = vpop.f32.mrf.mxu0 }
 0x716   :  { %v1506_v60 = vadd.f32 %v1504_v53, %v5052_v34  ;;  %v3298_v54 = vrot.slane %v3290_v42, %v5201_v40  ;;  %v3305_v44 = vrot.slane %v3291_v47, %v5201_v40 }
 0x718   :  { %4541 = vtanh.f32 %v1506_v60  ;;  %v4032_v4 = vmul.f32 -1.442695, %v1506_v60 }
 0x71b   :  { %v1675_v62 = vpop.f32.mrf.mxu1 }
 0x71c   :  { %v1679_v63 = vadd.f32 %v1675_v62, %v1601_v61 }
 0x71d   :  { %v4302_v0 = vpop.f32.mrf.mxu1 }
 0x71e   :  { %4543 = vtanh.f32 %v1679_v63  ;;  %v4035_v5 = vmul.f32 -1.442695, %v1679_v63 }
 0x71f   :  { %4545 = vpow2.f32 %v4032_v4 }
 0x720   :  { %4547 = vpow2.f32 %v4035_v5 }
 0x725   :  { %v4542_v1 = vpop.eup %4541 }
 0x726   :  { %1519 = vrot.lane.b32.xlu0 %v4542_v1, %s4838_s1 }
 0x72b   :  { %v4544_v2 = vpop.eup %4543 }
 0x72c   :  { %1689 = vrot.lane.b32.xlu1 %v4544_v2, %s4838_s1  ;;  %v4546_v6 = vpop.eup %4545 }
 0x72d   :  { %v1510_v7 = vadd.f32 1.0, %v4546_v6  ;;  %v4548_v8 = vpop.eup %4547 }
 0x72e   :  { %v1683_v9 = vadd.f32 1.0, %v4548_v8 }
 0x72f   :  { %4549 = vrcp.f32 %v1510_v7 }
 0x730   :  { %4551 = vrcp.f32 %v1683_v9 }
 0x73c   :  { %v4550_v10 = vpop.eup %4549 }
 0x73d   :  { %v4552_v13 = vpop.eup %4551  ;;  %v1517_v18 = vmul.f32 %v4550_v10, %v1515_v17 }
 0x73e   :  { %v1687_v24 = vmul.f32 %v4552_v13, %v5142_v37 }
 0x798   :  { %v1520_v11 = vpop.permute.xlu0 %1519 }
 0x799   :  { %v1522_v12 = vmul.f32 %v4550_v10, %v1520_v11 }
 0x79b   :  { %1524 = vrot.lane.b32.xlu0 %v1522_v12, %s4833_s26 }
 0x79e   :  { %v1690_v14 = vpop.permute.xlu1 %1689 }
 0x79f   :  { %v1692_v15 = vmul.f32 %v4552_v13, %v1690_v14 }
 0x7a1   :  { %1694 = vrot.lane.b32.xlu1 %v1692_v15, %s4833_s26 }
 0x80d   :  { %v1525_v21 = vpop.permute.xlu0 %1524 }
 0x80e   :  { %v5192_v22 = vadd.f32 %v1525_v21, %v1517_v18 }
 0x810   :  { %4553 = vtanh.f32 %v5192_v22  ;;  %v1792_v35 = vrot.slane %v5192_v22, 6 }
 0x813   :  { %v1695_v26 = vpop.permute.xlu1 %1694 }
 0x814   :  { %v5196_v27 = vadd.f32 %v1695_v26, %v1687_v24 }
 0x816   :  { %4555 = vtanh.f32 %v5196_v27 }
 0x81d   :  { %v4554_v28 = vpop.eup %4553 }
 0x81e   :  { %1530 = vrot.lane.b32.xlu0 %v4554_v28, %s4838_s1 }
 0x823   :  { %v4556_v29 = vpop.eup %4555 }
 0x824   :  { %1700 = vrot.lane.b32.xlu1 %v4556_v29, %s4838_s1 }
 0x890   :  { %v1531_v38 = vpop.permute.xlu0 %1530 }
 0x891   :  { %v1533_v39 = vmul.f32 %v4550_v10, %v1531_v38 }
 0x893   :  { %v1705_v37 = vrot.slane %v1533_v39, 4 }
 0x895   :  { %1706 = vrot.lane.b32.xlu0 %v1705_v37, %s4833_s26 }
 0x896   :  { %v1701_v41 = vpop.permute.xlu1 %1700 }
 0x897   :  { %v1703_v43 = vmul.f32 %v4552_v13, %v1701_v41 }
 0x899   :  { %v3314_v46 = vrot.slane %v1703_v43, %v5201_v40  ;;  %1882 = vrot.lane.b32.xlu1 %v1703_v43, %s4833_s26 }
 0x89b   :  { %v3315_v52 = vcombine.high %v3314_v46, %v3314_v46  ;;  %v3322_v53 = vrot.slane %v3314_v46, %v5201_v40 }
 0x89d   :  { %v3329_v56 = vrot.slane %v3315_v52, %v5201_v40  ;;  %v3465_v60 = vrot.slane %v3322_v53, %v5206_v45 }
 0x89f   :  { %v3469_v61 = vrot.slane %v3329_v56, %v5206_v45  ;;  %v5216_v62 = vsel %vm3532_vm2, %v3298_v54, %v3465_v60 }
 0x8a1   :  { %v5218_v63 = vsel %vm3532_vm2, %v3305_v44, %v3469_v61 }
 0x907   :  { %v1707_v0 = vpop.permute.xlu0 %1706 }
 0x908   :  { %4312 = vmatmul.mubr.msk.f32.vlgmr.msra.gmra.mxu0 %vm953_vm1, %v1707_v0  ;;  %4323 = vmatmul.mubr.msk.f32.vlgmr.msra.gmra.mxu1 %vm953_vm1, %v1707_v0 }
 0x909   :  { %4326 = vmatpush3.msra.mxu0 %v5082_v55  ;;  %4333 = vmatprep.mubr.msk.f32.mxu0 %vm4837_vm0, %v4836_v16 }
 0x90a   :  { %4327 = vmatprep.subr.mxu0 %v4836_v16  ;;  %4337 = vmatpush3.msra.mxu1 %v5000_v19 }
 0x90b   :  { %4328 = vmatpush3.msra.mxu0 %v5086_v57  ;;  %4338 = vmatprep.subr.mxu1 %v4836_v16  ;;  %v1883_v1 = vpop.permute.xlu1 %1882 }
 0x90c   :  { %4329 = vmatprep.subr.mxu0 %v4836_v16  ;;  %4339 = vmatpush3.msra.mxu1 %v5006_v20 }
 0x90d   :  { %4330 = vmatpush3.msra.mxu0 %v5092_v58  ;;  %4340 = vmatprep.subr.mxu1 %v4836_v16 }
 0x90e   :  { %4331 = vmatprep.subr.mxu0 %v4836_v16  ;;  %4341 = vmatpush3.msra.mxu1 %v5016_v23 }
 0x90f   :  { %4332 = vmatpush3.msra.mxu0 %v5098_v59  ;;  %4342 = vmatprep.subr.mxu1 %v4836_v16 }
 0x910   :  { %4334 = vmatmul.mubr.msk.f32.vlgmr.msra.gmra.mxu0 %vm953_vm1, %v1883_v1  ;;  %4347 = vmatprep.subr.mxu0 %v4836_v16 }
 0x911   :  { %4348 = vmatpush3.msra.mxu0 %v5064_v48  ;;  %4343 = vmatpush3.msra.mxu1 %v5026_v25 }
 0x912   :  { %4349 = vmatprep.subr.mxu0 %v4836_v16  ;;  %4344 = vmatprep.mubr.msk.f32.mxu1 %vm4837_vm0, %v4836_v16 }
 0x913   :  { %4350 = vmatpush3.msra.mxu0 %v5066_v49  ;;  %4355 = vmatprep.mubr.msk.f32.mxu0 %vm4837_vm0, %v4836_v16 }
 0x914   :  { %4351 = vmatprep.subr.mxu0 %v4836_v16  ;;  %4358 = vmatprep.subr.mxu1 %v4836_v16 }
 0x915   :  { %4352 = vmatpush3.msra.mxu0 %v5070_v50 }
 0x916   :  { %4353 = vmatprep.subr.mxu0 %v4836_v16 }
 0x917   :  { %4354 = vmatpush3.msra.mxu0 %v5074_v51 }
 0x918   :  { %4369 = vmatprep.subr.mxu0 %v4836_v16 }
 0x9c8   :  { %v1776_v2 = vpop.f32.mrf.mxu0  ;;  %v1877_v4 = vpop.f32.mrf.mxu1 }
 0x9c9   :  { %v1781_v5 = vrot.slane %v1776_v2, 2  ;;  %v1878_v9 = vadd.f32 %v5127_v3, %v1877_v4 }
 0x9ca   :  { %v4313_v6 = vpop.f32.mrf.mxu0  ;;  %v4324_v7 = vpop.f32.mrf.mxu1 }
 0x9cb   :  { %v1783_v8 = vadd.f32 %v1781_v5, %v5052_v34 }
 0x9cd   :  { %4557 = vtanh.f32 %v1783_v8  ;;  %v4037_v15 = vmul.f32 -1.442695, %v1783_v8 }
 0x9d0   :  { %v1952_v10 = vpop.f32.mrf.mxu0 }
 0x9d1   :  { %v1956_v11 = vadd.f32 %v1952_v10, %v1878_v9 }
 0x9d2   :  { %v4335_v12 = vpop.f32.mrf.mxu0 }
 0x9d3   :  { %4559 = vtanh.f32 %v1956_v11  ;;  %v4040_v17 = vmul.f32 -1.442695, %v1956_v11 }
 0x9d4   :  { %4561 = vpow2.f32 %v4037_v15 }
 0x9d5   :  { %4563 = vpow2.f32 %v4040_v17 }
 0x9da   :  { %v4558_v13 = vpop.eup %4557 }
 0x9db   :  { %1796 = vrot.lane.b32.xlu0 %v4558_v13, %s4838_s1 }
 0x9e0   :  { %v4560_v14 = vpop.eup %4559 }
 0x9e1   :  { %1966 = vrot.lane.b32.xlu1 %v4560_v14, %s4838_s1  ;;  %v4562_v18 = vpop.eup %4561 }
 0x9e2   :  { %v1787_v21 = vadd.f32 1.0, %v4562_v18  ;;  %v4564_v34 = vpop.eup %4563 }
 0x9e3   :  { %v1960_v24 = vadd.f32 1.0, %v4564_v34 }
 0x9e4   :  { %4565 = vrcp.f32 %v1787_v21 }
 0x9e5   :  { %4567 = vrcp.f32 %v1960_v24 }
 0x9f1   :  { %v4566_v26 = vpop.eup %4565 }
 0x9f2   :  { %v4568_v30 = vpop.eup %4567  ;;  %v1794_v36 = vmul.f32 %v4566_v26, %v1792_v35 }
 0x9f3   :  { %v1964_v37 = vmul.f32 %v4568_v30, %v5196_v27 }
 0xa4d   :  { %v1797_v28 = vpop.permute.xlu0 %1796 }
 0xa4e   :  { %v1799_v29 = vmul.f32 %v4566_v26, %v1797_v28 }
 0xa50   :  { %1801 = vrot.lane.b32.xlu0 %v1799_v29, %s4833_s26 }
 0xa53   :  { %v1967_v32 = vpop.permute.xlu1 %1966 }
 0xa54   :  { %v1969_v33 = vmul.f32 %v4568_v30, %v1967_v32 }
 0xa56   :  { %1971 = vrot.lane.b32.xlu1 %v1969_v33, %s4833_s26 }
 0xac2   :  { %v1802_v38 = vpop.permute.xlu0 %1801 }
 0xac3   :  { %v5260_v39 = vadd.f32 %v1802_v38, %v1794_v36 }
 0xac5   :  { %4569 = vtanh.f32 %v5260_v39  ;;  %v2066_v35 = vrot.slane %v5260_v39, 6 }
 0xac8   :  { %v1972_v41 = vpop.permute.xlu1 %1971 }
 0xac9   :  { %v5264_v42 = vadd.f32 %v1972_v41, %v1964_v37 }
 0xacb   :  { %4571 = vtanh.f32 %v5264_v42 }
 0xad2   :  { %v4570_v43 = vpop.eup %4569 }
 0xad3   :  { %1807 = vrot.lane.b32.xlu0 %v4570_v43, %s4838_s1 }
 0xad8   :  { %v4572_v46 = vpop.eup %4571 }
 0xad9   :  { %1977 = vrot.lane.b32.xlu1 %v4572_v46, %s4838_s1 }
 0xb45   :  { %v1808_v22 = vpop.permute.xlu0 %1807 }
 0xb46   :  { %v1810_v47 = vmul.f32 %v4566_v26, %v1808_v22 }
 0xb48   :  { %v1982_v52 = vrot.slane %v1810_v47, 6 }
 0xb4a   :  { %1983 = vrot.lane.b32.xlu0 %v1982_v52, %s4833_s26 }
 0xb4b   :  { %v1978_v53 = vpop.permute.xlu1 %1977 }
 0xb4c   :  { %v1980_v54 = vmul.f32 %v4568_v30, %v1978_v53 }
 0xb4e   :  { %v3336_v27 = vrot.slane %v1980_v54, %v5201_v40  ;;  %2156 = vrot.lane.b32.xlu1 %v1980_v54, %s4833_s26 }
 0xb50   :  { %v3337_v56 = vcombine.high %v3336_v27, %v3336_v27  ;;  %v3344_v60 = vrot.slane %v3336_v27, %v5201_v40 }
 0xb52   :  { %v3351_v44 = vrot.slane %v3337_v56, %v5201_v40  ;;  %v3475_v61 = vrot.slane %v3344_v60, %v5206_v45 }
 0xb54   :  { %v3479_v0 = vrot.slane %v3351_v44, %v5206_v45  ;;  %v5277_v1 = vsel %vm3535_vm3, %v5216_v62, %v3475_v61 }
 0xb56   :  { %v5280_v2 = vsel %vm3535_vm3, %v5218_v63, %v3479_v0 }
 0xbbc   :  { %v1984_v4 = vpop.permute.xlu0 %1983 }
 0xbbd   :  { %4345 = vmatmul.mubr.msk.f32.vlgmr.msra.gmra.mxu1 %vm953_vm1, %v1984_v4  ;;  %4356 = vmatmul.mubr.msk.f32.vlgmr.msra.gmra.mxu0 %vm953_vm1, %v1984_v4 }
 0xbbe   :  { %4359 = vmatpush3.msra.mxu1 %v5082_v55  ;;  %4366 = vmatprep.mubr.msk.f32.mxu1 %vm4837_vm0, %v4836_v16 }
 0xbbf   :  { %4360 = vmatprep.subr.mxu1 %v4836_v16  ;;  %4370 = vmatpush3.msra.mxu0 %v5000_v19 }
 0xbc0   :  { %4361 = vmatpush3.msra.mxu1 %v5086_v57  ;;  %4371 = vmatprep.subr.mxu0 %v4836_v16  ;;  %v2157_v62 = vpop.permute.xlu1 %2156 }
 0xbc1   :  { %4362 = vmatprep.subr.mxu1 %v4836_v16  ;;  %4372 = vmatpush3.msra.mxu0 %v5006_v20 }
 0xbc2   :  { %4363 = vmatpush3.msra.mxu1 %v5092_v58  ;;  %4373 = vmatprep.subr.mxu0 %v4836_v16 }
 0xbc3   :  { %4364 = vmatprep.subr.mxu1 %v4836_v16  ;;  %4374 = vmatpush3.msra.mxu0 %v5016_v23 }
 0xbc4   :  { %4365 = vmatpush3.msra.mxu1 %v5098_v59  ;;  %4375 = vmatprep.subr.mxu0 %v4836_v16 }
 0xbc5   :  { %4367 = vmatmul.mubr.msk.f32.vlgmr.msra.gmra.mxu1 %vm953_vm1, %v2157_v62  ;;  %4380 = vmatprep.subr.mxu1 %v4836_v16 }
 0xbc6   :  { %4381 = vmatpush3.msra.mxu1 %v5064_v48  ;;  %4376 = vmatpush3.msra.mxu0 %v5026_v25 }
 0xbc7   :  { %4382 = vmatprep.subr.mxu1 %v4836_v16  ;;  %4377 = vmatprep.mubr.msk.f32.mxu0 %vm4837_vm0, %v4836_v16 }
 0xbc8   :  { %4383 = vmatpush3.msra.mxu1 %v5066_v49  ;;  %4391 = vmatprep.subr.mxu0 %v4836_v16 }
 0xbc9   :  { %4384 = vmatprep.subr.mxu1 %v4836_v16  ;;  %4388 = vmatprep.mubr.msk.f32.mxu1 %vm4837_vm0, %v4836_v16 }
 0xbca   :  { %4385 = vmatpush3.msra.mxu1 %v5070_v50 }
 0xbcb   :  { %4386 = vmatprep.subr.mxu1 %v4836_v16 }
 0xbcc   :  { %4387 = vmatpush3.msra.mxu1 %v5074_v51 }
 0xbcd   :  { %4402 = vmatprep.subr.mxu1 %v4836_v16 }
 0xc7d   :  { %v2053_v63 = vpop.f32.mrf.mxu1  ;;  %v2151_v5 = vpop.f32.mrf.mxu0 }
 0xc7e   :  { %v2057_v6 = vadd.f32 %v2053_v63, %v5050_v31  ;;  %v2152_v9 = vadd.f32 %v5127_v3, %v2151_v5 }
 0xc7f   :  { %v4346_v7 = vpop.f32.mrf.mxu1  ;;  %v4357_v8 = vpop.f32.mrf.mxu0 }
 0xc80   :  { %4573 = vtanh.f32 %v2057_v6  ;;  %v4042_v15 = vmul.f32 -1.442695, %v2057_v6 }
 0xc85   :  { %v2226_v10 = vpop.f32.mrf.mxu1 }
 0xc86   :  { %v2230_v11 = vadd.f32 %v2226_v10, %v2152_v9 }
 0xc87   :  { %v4368_v12 = vpop.f32.mrf.mxu1 }
 0xc88   :  { %4575 = vtanh.f32 %v2230_v11  ;;  %v4045_v17 = vmul.f32 -1.442695, %v2230_v11 }
 0xc89   :  { %4577 = vpow2.f32 %v4042_v15 }
 0xc8a   :  { %4579 = vpow2.f32 %v4045_v17 }
 0xc8d   :  { %v4574_v13 = vpop.eup %4573 }
 0xc8e   :  { %2070 = vrot.lane.b32.xlu0 %v4574_v13, %s4838_s1 }
 0xc95   :  { %v4576_v14 = vpop.eup %4575 }
 0xc96   :  { %2240 = vrot.lane.b32.xlu1 %v4576_v14, %s4838_s1  ;;  %v4578_v18 = vpop.eup %4577 }
 0xc97   :  { %v2061_v21 = vadd.f32 1.0, %v4578_v18  ;;  %v4580_v34 = vpop.eup %4579 }
 0xc98   :  { %v2234_v24 = vadd.f32 1.0, %v4580_v34 }
 0xc99   :  { %4581 = vrcp.f32 %v2061_v21 }
 0xc9a   :  { %4583 = vrcp.f32 %v2234_v24 }
 0xca6   :  { %v4582_v26 = vpop.eup %4581 }
 0xca7   :  { %v4584_v30 = vpop.eup %4583  ;;  %v2068_v36 = vmul.f32 %v4582_v26, %v2066_v35 }
 0xca8   :  { %v2238_v41 = vmul.f32 %v4584_v30, %v5264_v42 }
 0xd00   :  { %v2071_v28 = vpop.permute.xlu0 %2070 }
 0xd01   :  { %v2073_v29 = vmul.f32 %v4582_v26, %v2071_v28 }
 0xd03   :  { %2075 = vrot.lane.b32.xlu0 %v2073_v29, %s4833_s26 }
 0xd08   :  { %v2241_v32 = vpop.permute.xlu1 %2240 }
 0xd09   :  { %v2243_v33 = vmul.f32 %v4584_v30, %v2241_v32 }
 0xd0b   :  { %2245 = vrot.lane.b32.xlu1 %v2243_v33, %s4833_s26 }
 0xd75   :  { %v2076_v38 = vpop.permute.xlu0 %2075 }
 0xd76   :  { %v5322_v37 = vadd.f32 %v2076_v38, %v2068_v36 }
 0xd78   :  { %4585 = vtanh.f32 %v5322_v37  ;;  %v2342_v34 = vrot.slane %v5322_v37, 6 }
 0xd7d   :  { %v2246_v43 = vpop.permute.xlu1 %2245 }
 0xd7e   :  { %v5326_v46 = vadd.f32 %v2246_v43, %v2238_v41 }
 0xd80   :  { %4587 = vtanh.f32 %v5326_v46 }
 0xd85   :  { %v4586_v22 = vpop.eup %4585 }
 0xd86   :  { %2081 = vrot.lane.b32.xlu0 %v4586_v22, %s4838_s1 }
 0xd8d   :  { %v4588_v47 = vpop.eup %4587 }
 0xd8e   :  { %2251 = vrot.lane.b32.xlu1 %v4588_v47, %s4838_s1 }
 0xdf8   :  { %v2082_v39 = vpop.permute.xlu0 %2081 }
 0xdf9   :  { %v2084_v52 = vmul.f32 %v4582_v26, %v2082_v39 }
 0xdfb   :  { %2256 = vrot.lane.b32.xlu0 %v2084_v52, %s4833_s26 }
 0xe00   :  { %v2252_v53 = vpop.permute.xlu1 %2251 }
 0xe01   :  { %v2254_v54 = vmul.f32 %v4584_v30, %v2252_v53 }
 0xe03   :  { %v3358_v27 = vrot.slane %v2254_v54, %v5201_v40  ;;  %2432 = vrot.lane.b32.xlu1 %v2254_v54, %s4833_s26 }
 0xe05   :  { %v3359_v42 = vcombine.high %v3358_v27, %v3358_v27  ;;  %v3366_v56 = vrot.slane %v3358_v27, %v5201_v40 }
 0xe07   :  { %v3373_v60 = vrot.slane %v3359_v42, %v5201_v40  ;;  %v3485_v44 = vrot.slane %v3366_v56, %v5206_v45  ;;  %v4645_v56 = vld [vmem:[%s5592_s7 + $0x18] sm:$0xff] }
 0xe09   :  { %v3489_v61 = vrot.slane %v3373_v60, %v5206_v45  ;;  %v5339_v0 = vsel %vm3538_vm4, %v5277_v1, %v3485_v44  ;;  %v4647_v60 = vld [vmem:[%s5592_s7 + $0x8] sm:$0xff] }
 0xe0a   :  { %v5431_v44 = vld [vmem:[#allocation9 + $0x18] sm:$0xff] }
 0xe0b   :  { %v5342_v4 = vsel %vm3538_vm4, %v5280_v2, %v3489_v61  ;;  %v5447_v61 = vld [vmem:[#allocation9 + $0x8] sm:$0xff] }
 0xe6d   :  { %v2257_v62 = vpop.permute.xlu0 %2256 }
 0xe6e   :  { %4378 = vmatmul.mubr.msk.f32.vlgmr.msra.gmra.mxu0 %vm953_vm1, %v2257_v62  ;;  %4389 = vmatmul.mubr.msk.f32.vlgmr.msra.gmra.mxu1 %vm953_vm1, %v2257_v62 }
 0xe6f   :  { %4392 = vmatpush3.msra.mxu0 %v5082_v55  ;;  %4399 = vmatprep.mubr.msk.f32.mxu0 %vm4837_vm0, %v4836_v16 }
 0xe70   :  { %4393 = vmatprep.subr.mxu0 %v4836_v16  ;;  %4403 = vmatpush3.msra.mxu1 %v5000_v19 }
 0xe71   :  { %4394 = vmatpush3.msra.mxu0 %v5086_v57  ;;  %4404 = vmatprep.subr.mxu1 %v4836_v16 }
 0xe72   :  { %4395 = vmatprep.subr.mxu0 %v4836_v16  ;;  %4405 = vmatpush3.msra.mxu1 %v5006_v20 }
 0xe73   :  { %4396 = vmatpush3.msra.mxu0 %v5092_v58  ;;  %4406 = vmatprep.subr.mxu1 %v4836_v16 }
 0xe74   :  { %4397 = vmatprep.subr.mxu0 %v4836_v16  ;;  %4407 = vmatpush3.msra.mxu1 %v5016_v23 }
 0xe75   :  { %4398 = vmatpush3.msra.mxu0 %v5098_v59  ;;  %v2433_v1 = vpop.permute.xlu1 %2432  ;;  %4408 = vmatprep.subr.mxu1 %v4836_v16 }
 0xe76   :  { %4400 = vmatmul.mubr.msk.f32.vlgmr.msra.gmra.mxu0 %vm953_vm1, %v2433_v1  ;;  %4413 = vmatprep.subr.mxu0 %v4836_v16 }
 0xe77   :  { %4414 = vmatpush3.msra.mxu0 %v5064_v48  ;;  %4409 = vmatpush3.msra.mxu1 %v5026_v25 }
 0xe78   :  { %4415 = vmatprep.subr.mxu0 %v4836_v16  ;;  %4410 = vmatprep.mubr.msk.f32.mxu1 %vm4837_vm0, %v4836_v16 }
 0xe79   :  { %4416 = vmatpush3.msra.mxu0 %v5066_v49  ;;  %4421 = vmatprep.mubr.msk.f32.mxu0 %vm4837_vm0, %v4836_v16 }
 0xe7a   :  { %4417 = vmatprep.subr.mxu0 %v4836_v16  ;;  %4424 = vmatprep.subr.mxu1 %v4836_v16 }
 0xe7b   :  { %4418 = vmatpush3.msra.mxu0 %v5070_v50 }
 0xe7c   :  { %4419 = vmatprep.subr.mxu0 %v4836_v16 }
 0xe7d   :  { %4420 = vmatpush3.msra.mxu0 %v5074_v51 }
 0xe7e   :  { %4435 = vmatprep.subr.mxu0 %v4836_v16 }
 0xf2e   :  { %v2326_v19 = vpop.f32.mrf.mxu0  ;;  %v2427_v20 = vpop.f32.mrf.mxu1 }
 0xf2f   :  { %v2331_v23 = vrot.slane %v2326_v19, 6  ;;  %v2428_v2 = vadd.f32 %v5127_v3, %v2427_v20 }
 0xf30   :  { %v4379_v25 = vpop.f32.mrf.mxu0  ;;  %v4390_v48 = vpop.f32.mrf.mxu1 }
 0xf31   :  { %v2333_v49 = vadd.f32 %v2331_v23, %v5050_v31 }
 0xf33   :  { %4589 = vtanh.f32 %v2333_v49  ;;  %v4047_v7 = vmul.f32 -1.442695, %v2333_v49 }
 0xf36   :  { %v2502_v63 = vpop.f32.mrf.mxu0 }
 0xf37   :  { %v2506_v5 = vadd.f32 %v2502_v63, %v2428_v2 }
 0xf38   :  { %v4401_v6 = vpop.f32.mrf.mxu0 }
 0xf39   :  { %4591 = vtanh.f32 %v2506_v5  ;;  %v4050_v8 = vmul.f32 -1.442695, %v2506_v5 }
 0xf3a   :  { %4593 = vpow2.f32 %v4047_v7 }
 0xf3b   :  { %4595 = vpow2.f32 %v4050_v8 }
 0xf40   :  { %v4590_v50 = vpop.eup %4589 }
 0xf41   :  { %2346 = vrot.lane.b32.xlu0 %v4590_v50, %s4838_s1 }
 0xf46   :  { %v4592_v51 = vpop.eup %4591 }
 0xf47   :  { %2516 = vrot.lane.b32.xlu1 %v4592_v51, %s4838_s1  ;;  %v4594_v9 = vpop.eup %4593 }
 0xf48   :  { %v2337_v10 = vadd.f32 1.0, %v4594_v9  ;;  %v4596_v11 = vpop.eup %4595 }
 0xf49   :  { %v2510_v12 = vadd.f32 1.0, %v4596_v11 }
 0xf4a   :  { %4597 = vrcp.f32 %v2337_v10 }
 0xf4b   :  { %4599 = vrcp.f32 %v2510_v12 }
 0xf57   :  { %v4598_v13 = vpop.eup %4597 }
 0xf58   :  { %v4600_v17 = vpop.eup %4599  ;;  %v2344_v24 = vmul.f32 %v4598_v13, %v2342_v34 }
 0xf59   :  { %v2514_v29 = vmul.f32 %v4600_v17, %v5326_v46 }
 0xfb3   :  { %v2347_v14 = vpop.permute.xlu0 %2346 }
 0xfb4   :  { %v2349_v15 = vmul.f32 %v4598_v13, %v2347_v14 }
 0xfb6   :  { %2351 = vrot.lane.b32.xlu0 %v2349_v15, %s4833_s26 }
 0xfb9   :  { %v2517_v18 = vpop.permute.xlu1 %2516 }
 0xfba   :  { %v2519_v21 = vmul.f32 %v4600_v17, %v2517_v18 }
 0xfbc   :  { %2521 = vrot.lane.b32.xlu1 %v2519_v21, %s4833_s26 }
0x1028   :  { %v2352_v26 = vpop.permute.xlu0 %2351 }
0x1029   :  { %v5384_v28 = vadd.f32 %v2352_v26, %v2344_v24 }
0x102b   :  { %4601 = vtanh.f32 %v5384_v28  ;;  %v2619_v15 = vrot.slane %v5384_v28, 6 }
0x102e   :  { %v2522_v30 = vpop.permute.xlu1 %2521 }
0x102f   :  { %v5388_v32 = vadd.f32 %v2522_v30, %v2514_v29 }
0x1031   :  { %4603 = vtanh.f32 %v5388_v32 }
0x1038   :  { %v4602_v33 = vpop.eup %4601 }
0x1039   :  { %2357 = vrot.lane.b32.xlu0 %v4602_v33, %s4838_s1 }
0x103e   :  { %v4604_v35 = vpop.eup %4603 }
0x103f   :  { %2527 = vrot.lane.b32.xlu1 %v4604_v35, %s4838_s1 }
0x10ab   :  { %v2358_v36 = vpop.permute.xlu0 %2357 }
0x10ac   :  { %v2360_v38 = vmul.f32 %v4598_v13, %v2358_v36 }
0x10ae   :  { %v2532_v37 = vrot.slane %v2360_v38, 2 }
0x10b0   :  { %2533 = vrot.lane.b32.xlu0 %v2532_v37, %s4833_s26 }
0x10b1   :  { %v2528_v41 = vpop.permute.xlu1 %2527 }
0x10b2   :  { %v2530_v43 = vmul.f32 %v4600_v17, %v2528_v41 }
0x10b4   :  { %v3380_v46 = vrot.slane %v2530_v43, %v5201_v40  ;;  %2709 = vrot.lane.b32.xlu1 %v2530_v43, %s4833_s26 }
0x10b6   :  { %v3381_v22 = vcombine.high %v3380_v46, %v3380_v46  ;;  %v3388_v47 = vrot.slane %v3380_v46, %v5201_v40 }
0x10b8   :  { %v3395_v39 = vrot.slane %v3381_v22, %v5201_v40  ;;  %v3495_v52 = vrot.slane %v3388_v47, %v5206_v45 }
0x10ba   :  { %v3499_v53 = vrot.slane %v3395_v39, %v5206_v45  ;;  %v5401_v54 = vsel %vm3541_vm5, %v5339_v0, %v3495_v52  ;;  %v5451_v0 = vld [vmem:[#allocation9] sm:$0xff] }
0x10bc   :  { %v5404_v27 = vsel %vm3541_vm5, %v5342_v4, %v3499_v53  ;;  %v4653_v53 = vld [vmem:[#allocation11 + $0x18] sm:$0xff] }
0x1122   :  { %v2534_v42 = vpop.permute.xlu0 %2533 }
0x1123   :  { %4411 = vmatmul.mubr.msk.f32.vlgmr.msra.gmra.mxu1 %vm953_vm1, %v2534_v42  ;;  %4422 = vmatmul.mubr.msk.f32.vlgmr.msra.gmra.mxu0 %vm953_vm1, %v2534_v42  ;;  %v4654_v42 = vld [vmem:[#allocation11 + $0x10] sm:$0xff] }
0x1124   :  { %4425 = vmatpush3.msra.mxu1 %v5082_v55  ;;  %4432 = vmatprep.mubr.msk.f32.mxu1 %vm4837_vm0, %v4836_v16  ;;  %v4646_v55 = vld [vmem:[%s5592_s7 + $0x10] sm:$0xff] }
0x1125   :  { %4426 = vmatprep.subr.mxu1 %v4836_v16  ;;  %4436 = vmatpush3.msra.mxu0 %v4645_v56  ;;  %v4656_v56 = vld [vmem:[#allocation11] sm:$0xff] }
0x1126   :  { %4427 = vmatpush3.msra.mxu1 %v5086_v57  ;;  %4437 = vmatprep.subr.mxu0 %v4836_v16  ;;  %v2710_v57 = vpop.permute.xlu1 %2709 }
0x1127   :  { %4428 = vmatprep.subr.mxu1 %v4836_v16  ;;  %4438 = vmatpush3.msra.mxu0 %v4646_v55 }
0x1128   :  { %4429 = vmatpush3.msra.mxu1 %v5092_v58  ;;  %4439 = vmatprep.subr.mxu0 %v4836_v16  ;;  %v4649_v58 = vld [vmem:[%s5592_s7] sm:$0xff] }
0x1129   :  { %4430 = vmatprep.subr.mxu1 %v4836_v16  ;;  %4440 = vmatpush3.msra.mxu0 %v4647_v60 }
0x112a   :  { %4431 = vmatpush3.msra.mxu1 %v5098_v59  ;;  %4441 = vmatprep.subr.mxu0 %v4836_v16  ;;  %v5440_v59 = vld [vmem:[#allocation9 + $0x10] sm:$0xff] }
0x112b   :  { %4433 = vmatmul.mubr.msk.f32.vlgmr.msra.gmra.mxu1 %vm953_vm1, %v2710_v57  ;;  %4446 = vmatprep.subr.mxu1 %v4836_v16 }
0x112c   :  { %4447 = vmatpush3.msra.mxu1 %v5431_v44  ;;  %4442 = vmatpush3.msra.mxu0 %v4649_v58 }
0x112d   :  { %4448 = vmatprep.subr.mxu1 %v4836_v16  ;;  %4443 = vmatprep.mubr.msk.f32.mxu0 %vm4837_vm0, %v4836_v16 }
0x112e   :  { %4449 = vmatpush3.msra.mxu1 %v5440_v59  ;;  %4457 = vmatprep.subr.mxu0 %v4836_v16 }
0x112f   :  { %4450 = vmatprep.subr.mxu1 %v4836_v16  ;;  %4454 = vmatprep.mubr.msk.f32.mxu1 %vm4837_vm0, %v4836_v16 }
0x1130   :  { %4451 = vmatpush3.msra.mxu1 %v5447_v61 }
0x1131   :  { %4452 = vmatprep.subr.mxu1 %v4836_v16 }
0x1132   :  { %4453 = vmatpush3.msra.mxu1 %v5451_v0 }
0x1133   :  { %4468 = vmatprep.subr.mxu1 %v4836_v16 }
0x11e3   :  { %v2603_v4 = vpop.f32.mrf.mxu1  ;;  %v2704_v62 = vpop.f32.mrf.mxu0 }
0x11e4   :  { %v2608_v1 = vrot.slane %v2603_v4, 4  ;;  %v2705_v25 = vadd.f32 %v5127_v3, %v2704_v62 }
0x11e5   :  { %v4412_v19 = vpop.f32.mrf.mxu1  ;;  %v4423_v20 = vpop.f32.mrf.mxu0 }
0x11e6   :  { %v2610_v23 = vadd.f32 %v2608_v1, %v5050_v31 }
0x11e8   :  { %4605 = vtanh.f32 %v2610_v23  ;;  %v4052_v6 = vmul.f32 -1.442695, %v2610_v23 }
0x11eb   :  { %v2779_v48 = vpop.f32.mrf.mxu1 }
0x11ec   :  { %v2783_v49 = vadd.f32 %v2779_v48, %v2705_v25 }
0x11ed   :  { %v4434_v2 = vpop.f32.mrf.mxu1 }
0x11ee   :  { %4607 = vtanh.f32 %v2783_v49  ;;  %v4055_v50 = vmul.f32 -1.442695, %v2783_v49 }
0x11ef   :  { %4609 = vpow2.f32 %v4052_v6 }
0x11f0   :  { %4611 = vpow2.f32 %v4055_v50 }
0x11f5   :  { %v4606_v63 = vpop.eup %4605 }
0x11f6   :  { %2623 = vrot.lane.b32.xlu0 %v4606_v63, %s4838_s1 }
0x11fb   :  { %v4608_v5 = vpop.eup %4607 }
0x11fc   :  { %2793 = vrot.lane.b32.xlu1 %v4608_v5, %s4838_s1  ;;  %v4610_v51 = vpop.eup %4609 }
0x11fd   :  { %v2614_v7 = vadd.f32 1.0, %v4610_v51  ;;  %v4612_v8 = vpop.eup %4611 }
0x11fe   :  { %v2787_v9 = vadd.f32 1.0, %v4612_v8 }
0x11ff   :  { %4613 = vrcp.f32 %v2614_v7 }
0x1200   :  { %4615 = vrcp.f32 %v2787_v9 }
0x120c   :  { %v4614_v3 = vpop.eup %4613 }
0x120d   :  { %v4616_v12 = vpop.eup %4615  ;;  %v2621_v17 = vmul.f32 %v4614_v3, %v2619_v15 }
0x120e   :  { %v2791_v34 = vmul.f32 %v4616_v12, %v5388_v32 }
0x1268   :  { %v2624_v10 = vpop.permute.xlu0 %2623 }
0x1269   :  { %v2626_v11 = vmul.f32 %v4614_v3, %v2624_v10 }
0x126b   :  { %2628 = vrot.lane.b32.xlu0 %v2626_v11, %s4833_s26 }
0x126e   :  { %v2794_v13 = vpop.permute.xlu1 %2793 }
0x126f   :  { %v2796_v14 = vmul.f32 %v4616_v12, %v2794_v13 }
0x1271   :  { %2798 = vrot.lane.b32.xlu1 %v2796_v14, %s4833_s26 }
0x12dd   :  { %v2629_v18 = vpop.permute.xlu0 %2628 }
0x12de   :  { %v5462_v21 = vadd.f32 %v2629_v18, %v2621_v17 }
0x12e0   :  { %4617 = vtanh.f32 %v5462_v21  ;;  %v2896_v7 = vrot.slane %v5462_v21, 6 }
0x12e3   :  { %v2799_v24 = vpop.permute.xlu1 %2798 }
0x12e4   :  { %v5466_v26 = vadd.f32 %v2799_v24, %v2791_v34 }
0x12e6   :  { %4619 = vtanh.f32 %v5466_v26 }
0x12ed   :  { %v4618_v29 = vpop.eup %4617 }
0x12ee   :  { %2634 = vrot.lane.b32.xlu0 %v4618_v29, %s4838_s1 }
0x12f3   :  { %v4620_v30 = vpop.eup %4619 }
0x12f4   :  { %2804 = vrot.lane.b32.xlu1 %v4620_v30, %s4838_s1 }
0x1360   :  { %v2635_v28 = vpop.permute.xlu0 %2634 }
0x1361   :  { %v2637_v33 = vmul.f32 %v4614_v3, %v2635_v28 }
0x1363   :  { %v2809_v35 = vrot.slane %v2637_v33, 4 }
0x1365   :  { %2810 = vrot.lane.b32.xlu0 %v2809_v35, %s4833_s26 }
0x1366   :  { %v2805_v36 = vpop.permute.xlu1 %2804 }
0x1367   :  { %v2807_v38 = vmul.f32 %v4616_v12, %v2805_v36 }
0x1369   :  { %v3402_v32 = vrot.slane %v2807_v38, %v5201_v40  ;;  %2986 = vrot.lane.b32.xlu1 %v2807_v38, %s4833_s26 }
0x136b   :  { %v3403_v37 = vcombine.high %v3402_v32, %v3402_v32  ;;  %v3410_v41 = vrot.slane %v3402_v32, %v5201_v40 }
0x136d   :  { %v3417_v43 = vrot.slane %v3403_v37, %v5201_v40  ;;  %v3505_v46 = vrot.slane %v3410_v41, %v5206_v45 }
0x136f   :  { %v3509_v22 = vrot.slane %v3417_v43, %v5206_v45  ;;  %v5479_v47 = vsel %vm3544_vm6, %v5401_v54, %v3505_v46  ;;  %v4655_v54 = vld [vmem:[#allocation11 + $0x8] sm:$0xff] }
0x1371   :  { %v5482_v39 = vsel %vm3544_vm6, %v5404_v27, %v3509_v22 }
0x13d7   :  { %v2811_v52 = vpop.permute.xlu0 %2810 }
0x13d8   :  { %4444 = vmatmul.mubr.msk.f32.vlgmr.msra.gmra.mxu0 %vm953_vm1, %v2811_v52  ;;  %4455 = vmatmul.mubr.msk.f32.vlgmr.msra.gmra.mxu1 %vm953_vm1, %v2811_v52 }
0x13d9   :  { %4458 = vmatpush3.msra.mxu0 %v4653_v53  ;;  %4465 = vmatprep.mubr.msk.f32.mxu0 %vm4837_vm0, %v4836_v16 }
0x13da   :  { %4459 = vmatprep.subr.mxu0 %v4836_v16  ;;  %4469 = vmatpush3.msra.mxu1 %v5431_v44 }
0x13db   :  { %4460 = vmatpush3.msra.mxu0 %v4654_v42  ;;  %4470 = vmatprep.subr.mxu1 %v4836_v16  ;;  %v2987_v27 = vpop.permute.xlu1 %2986 }
0x13dc   :  { %4461 = vmatprep.subr.mxu0 %v4836_v16  ;;  %4471 = vmatpush3.msra.mxu1 %v5440_v59 }
0x13dd   :  { %4462 = vmatpush3.msra.mxu0 %v4655_v54  ;;  %4472 = vmatprep.subr.mxu1 %v4836_v16 }
0x13de   :  { %4463 = vmatprep.subr.mxu0 %v4836_v16  ;;  %4473 = vmatpush3.msra.mxu1 %v5447_v61  ;;  %v4657_v61 = vld [vmem:[%s5596_s11] ss:$0 sm:$0xff] }
0x13df   :  { %4464 = vmatpush3.msra.mxu0 %v4656_v56  ;;  %4474 = vmatprep.subr.mxu1 %v4836_v16 }
0x13e0   :  { %4466 = vmatmul.mubr.msk.f32.vlgmr.msra.gmra.mxu0 %vm953_vm1, %v2987_v27  ;;  %4479 = vmatprep.subr.mxu0 %v4836_v16 }
0x13e1   :  { %4480 = vmatpush3.msra.mxu0 %v4653_v53  ;;  %4475 = vmatpush3.msra.mxu1 %v5451_v0 }
0x13e2   :  { %4481 = vmatprep.subr.mxu0 %v4836_v16  ;;  %4476 = vmatprep.mubr.msk.f32.mxu1 %vm4837_vm0, %v4836_v16 }
0x13e3   :  { %4482 = vmatpush3.msra.mxu0 %v4654_v42  ;;  %4487 = vmatprep.mubr.msk.f32.mxu0 %vm4837_vm0, %v4836_v16 }
0x13e4   :  { %4483 = vmatprep.subr.mxu0 %v4836_v16 }
0x13e5   :  { %4484 = vmatpush3.msra.mxu0 %v4655_v54 }
0x13e6   :  { %4485 = vmatprep.subr.mxu0 %v4836_v16 }
0x13e7   :  { %4486 = vmatpush3.msra.mxu0 %v4656_v56 }
0x1498   :  { %v2880_v55 = vpop.f32.mrf.mxu0  ;;  %v2981_v60 = vpop.f32.mrf.mxu1 }
0x1499   :  { %v2885_v57 = vrot.slane %v2880_v55, 2  ;;  %v2982_v0 = vadd.f32 %v4657_v61, %v2981_v60 }
0x149a   :  { %v4445_v44 = vpop.f32.mrf.mxu0  ;;  %v4456_v58 = vpop.f32.mrf.mxu1 }
0x149b   :  { %v2887_v59 = vadd.f32 %v2885_v57, %v5050_v31  ;;  %v3556_v58 = vld [vmem:[%s5589_s4 + $0x18] sm:$0xff] }
0x149c   :  { %4490 = vmatprep.subr.mxu1 %v3556_v58 }
0x149d   :  { %4621 = vtanh.f32 %v2887_v59  ;;  %v4057_v20 = vmul.f32 -1.442695, %v2887_v59  ;;  %v3555_v59 = vld [vmem:[%s5589_s4 + $0x10] sm:$0xff] }
0x14a0   :  { %v3056_v4 = vpop.f32.mrf.mxu0 }
0x14a1   :  { %v3060_v62 = vadd.f32 %v3056_v4, %v2982_v0  ;;  %v3553_v0 = vld [vmem:[%s5589_s4] sm:$0xff] }
0x14a2   :  { %v4467_v1 = vpop.f32.mrf.mxu0 }
0x14a3   :  { %4623 = vtanh.f32 %v3060_v62  ;;  %v4060_v23 = vmul.f32 -1.442695, %v3060_v62 }
0x14a4   :  { %4625 = vpow2.f32 %v4057_v20 }
0x14a5   :  { %4627 = vpow2.f32 %v4060_v23 }
0x14aa   :  { %v4622_v19 = vpop.eup %4621 }
0x14ab   :  { %2900 = vrot.lane.b32.xlu0 %v4622_v19, %s4838_s1 }
0x14b0   :  { %v4624_v16 = vpop.eup %4623 }
0x14b1   :  { %3070 = vrot.lane.b32.xlu1 %v4624_v16, %s4838_s1  ;;  %v4626_v31 = vpop.eup %4625 }
0x14b2   :  { %v2891_v25 = vadd.f32 1.0, %v4626_v31  ;;  %v4628_v48 = vpop.eup %4627 }
0x14b3   :  { %v3064_v49 = vadd.f32 1.0, %v4628_v48 }
0x14b4   :  { %4629 = vrcp.f32 %v2891_v25 }
0x14b5   :  { %4631 = vrcp.f32 %v3064_v49 }
0x14c1   :  { %v4630_v2 = vpop.eup %4629 }
0x14c2   :  { %v4632_v6 = vpop.eup %4631  ;;  %v2898_v8 = vmul.f32 %v4630_v2, %v2896_v7 }
0x14c3   :  { %v3068_v10 = vmul.f32 %v4632_v6, %v5466_v26 }
0x151d   :  { %v2901_v63 = vpop.permute.xlu0 %2900 }
0x151e   :  { %v2903_v5 = vmul.f32 %v4630_v2, %v2901_v63 }
0x1520   :  { %2905 = vrot.lane.b32.xlu0 %v2903_v5, %s4833_s26 }
0x1523   :  { %v3071_v50 = vpop.permute.xlu1 %3070 }
0x1524   :  { %v3073_v51 = vmul.f32 %v4632_v6, %v3071_v50 }
0x1526   :  { %3075 = vrot.lane.b32.xlu1 %v3073_v51, %s4833_s26 }
0x1592   :  { %v2906_v9 = vpop.permute.xlu0 %2905 }
0x1593   :  { %v5516_v3 = vadd.f32 %v2906_v9, %v2898_v8 }
0x1595   :  { %4633 = vtanh.f32 %v5516_v3 }
0x1598   :  { %v3076_v11 = vpop.permute.xlu1 %3075 }
0x1599   :  { %v3078_v12 = vadd.f32 %v3076_v11, %v3068_v10 }
0x159b   :  { %4635 = vtanh.f32 %v3078_v12 }
0x15a2   :  { %v4634_v13 = vpop.eup %4633 }
0x15a3   :  { %2911 = vrot.lane.b32.xlu0 %v4634_v13, %s4838_s1 }
0x15a8   :  { %v4636_v14 = vpop.eup %4635 }
0x15a9   :  { %3081 = vrot.lane.b32.xlu1 %v4636_v14, %s4838_s1 }
0x1615   :  { %v2912_v15 = vpop.permute.xlu0 %2911 }
0x1616   :  { %v5522_v17 = vmul.f32 %v4630_v2, %v2912_v15 }
0x1618   :  { %v3086_v18 = vrot.slane %v5522_v17, 6 }
0x161a   :  { %3087 = vrot.lane.b32.xlu0 %v3086_v18, %s4833_s26 }
0x161b   :  { %v3082_v21 = vpop.permute.xlu1 %3081 }
0x161c   :  { %v3084_v34 = vmul.f32 %v4632_v6, %v3082_v21 }
0x161e   :  { %v3424_v24 = vrot.slane %v3084_v34, %v5201_v40  ;;  %3162 = vrot.lane.b32.xlu1 %v3084_v34, %s4833_s26 }
0x1620   :  { %v3425_v26 = vcombine.high %v3424_v24, %v3424_v24  ;;  %v3432_v29 = vrot.slane %v3424_v24, %v5201_v40 }
0x1622   :  { %v3439_v30 = vrot.slane %v3425_v26, %v5201_v40  ;;  %v3515_v28 = vrot.slane %v3432_v29, %v5206_v45 }
0x1624   :  { %v3548_v33 = vsel %vm3547_vm7, %v5479_v47, %v3515_v28  ;;  %v3519_v35 = vrot.slane %v3439_v30, %v5206_v45 }
0x1626   :  { %v3549_v36 = vsel %vm3547_vm7, %v5482_v39, %v3519_v35 }
0x168c   :  { %v3088_v38 = vpop.permute.xlu0 %3087 }
0x168d   :  { %4477 = vmatmul.mubr.msk.f32.vlgmr.msra.gmra.mxu1 %vm953_vm1, %v3088_v38 }
0x168e   :  { %4491 = vmatpush3.msra.mxu1 %v3556_v58 }
0x168f   :  { %4492 = vmatprep.subr.mxu1 %v3555_v59 }
0x1690   :  { %v3163_v32 = vpop.permute.xlu1 %3162  ;;  %4493 = vmatpush3.msra.mxu1 %v3555_v59 }
0x1691   :  { %4488 = vmatmul.mubr.msk.f32.vlgmr.msra.gmra.mxu0 %vm953_vm1, %v3163_v32 }
0x174d   :  { %v3157_v37 = vpop.f32.mrf.mxu1 }
0x174e   :  { %v3158_v41 = vadd.f32 %v4657_v61, %v3157_v37  ;;  %v3554_v61 = vld [vmem:[%s5589_s4 + $0x8] sm:$0xff]  ;;  %s4840_s4 = smov 96  }
0x174f   :  { %v4478_v43 = vpop.f32.mrf.mxu1  ;;  %4494 = vmatprep.subr.mxu1 %v3554_v61 }
0x1750   :  { %4495 = vmatpush3.msra.mxu1 %v3554_v61 }
0x1751   :  { %v3232_v46 = vpop.f32.mrf.mxu0  ;;  %4496 = vmatprep.subr.mxu1 %v3553_v0 }
0x1752   :  { %v3236_v22 = vadd.f32 %v3232_v46, %v3158_v41  ;;  %4497 = vmatpush3.msra.mxu1 %v3553_v0 }
0x1753   :  { %v4489_v52 = vpop.f32.mrf.mxu0 }
0x1754   :  { %4637 = vtanh.f32 %v3236_v22  ;;  %v4063_v47 = vmul.f32 -1.442695, %v3236_v22 }
0x1756   :  { %4639 = vpow2.f32 %v4063_v47 }
0x1761   :  { %v4638_v53 = vpop.eup %4637 }
0x1762   :  { %3246 = vrot.lane.b32.xlu0 %v4638_v53, %s4838_s1 }
0x1763   :  { %v4640_v42 = vpop.eup %4639 }
0x1764   :  { %v3240_v39 = vadd.f32 1.0, %v4640_v42 }
0x1766   :  { %4641 = vrcp.f32 %v3240_v39 }
0x1773   :  { %v4642_v54 = vpop.eup %4641 }
0x1774   :  { %v3244_v55 = vmul.f32 %v4642_v54, %v3078_v12 }
0x17d4   :  { %v3247_v27 = vpop.permute.xlu0 %3246 }
0x17d5   :  { %v3249_v56 = vmul.f32 %v4642_v54, %v3247_v27 }
0x17d7   :  { %3251 = vrot.lane.b32.xlu1 %v3249_v56, %s4833_s26 }
0x1849   :  { %v3252_v60 = vpop.permute.xlu1 %3251 }
0x184a   :  { %v3254_v57 = vadd.f32 %v3252_v60, %v3244_v55 }
0x184c   :  { %4643 = vtanh.f32 %v3254_v57 }
0x1859   :  { %v4644_v44 = vpop.eup %4643 }
0x185a   :  { %3257 = vrot.lane.b32.xlu0 %v4644_v44, %s4838_s1 }
0x18cc   :  { %v3258_v4 = vpop.permute.xlu0 %3257 }
0x18cd   :  { %v3260_v62 = vmul.f32 %v4642_v54, %v3258_v4 }
0x18cf   :  { %v3446_v1 = vrot.slane %v3260_v62, %v5201_v40 }
0x18d1   :  { %v3447_v19 = vcombine.high %v3446_v1, %v3446_v1  ;;  %v3454_v16 = vrot.slane %v3446_v1, %v5201_v40 }
0x18d3   :  { %v3461_v20 = vrot.slane %v3447_v19, %v5201_v40  ;;  %v3525_v23 = vrot.slane %v3454_v16, %v5206_v45 }
0x18d5   :  { %v3551_v31 = vsel %vm3550_vm8, %v3548_v33, %v3525_v23  ;;  %v3529_v25 = vrot.slane %v3461_v20, %v5206_v45 }
0x18d6   :  { %3566 = vrot.lane.b32.xlu1 %v3551_v31, %s4833_s26 }
0x18d7   :  { %v3552_v48 = vsel %vm3550_vm8, %v3549_v36, %v3529_v25 }
0x18d8   :  { %3568 = vrot.lane.b32.xlu0 %v3552_v48, %s4833_s26 }
0x18da   :  { %3261 = vrot.lane.b32.xlu1 %v5522_v17, %s4833_s26 }
0x18dc   :  { %3272 = vrot.lane.b32.xlu0 %v3260_v62, %s4833_s26 }
0x18de   :  { %3267 = vrot.lane.b32.xlu1 %v5516_v3, %s4840_s4 }
0x18e0   :  { %3279 = vrot.lane.b32.xlu0 %v3254_v57, %s4840_s4 }
0x1948   :  { %v3567_v40 = vpop.permute.xlu1 %3566 }
0x1949   :  { %4498 = vmatprep.mubr.msk.f32.mxu1 %vm953_vm1, %v3567_v40 }
0x194a   :  { %v3569_v49 = vpop.permute.xlu0 %3568 }
0x194b   :  { %4499 = vmatmul.mubr.msk.f32.vlgmr.msra.gmra.mxu1 %vm953_vm1, %v3569_v49 }
0x194c   :  { %v3262_v45 = vpop.permute.xlu1 %3261 }
0x194d   :  { %3265 = vst.msk [vmem:[#allocation13 - $0x6] sm:$0xc0] %vm3264_vm9, %v3262_v45 }
0x194e   :  { %v3273_v2 = vpop.permute.xlu0 %3272 }
0x194f   :  { %3277 = vst.msk [vmem:[#allocation13 + $0x2] sm:$0x3] %vm3276_vm10, %v3273_v2 }
0x1950   :  { %v3268_v63 = vpop.permute.xlu1 %3267 }
0x1951   :  { %3270 = vst.msk [vmem:[#allocation15 - $0x6] sm:$0xc0] %vm3264_vm9, %v3268_v63 }
0x1952   :  { %v3280_v5 = vpop.permute.xlu0 %3279 }
0x1953   :  { %3283 = vst.msk [vmem:[#allocation15 + $0x2] sm:$0x3] %vm3276_vm10, %v3280_v5 }
0x1954   :  { %4737 = shalt.err (!%p4734_p5)
}
0x1955   :  { %3675 = dma.vmem_to_hbm [thread:$0]  %s3670_s20, 64, %s5598_s13, [#allocation14], %s4833_s26, %s4833_s26, %s4834_s27  }
0x1956   :  { %s4842_s23 = smov [#allocation15]  }
0x1957   :  { %s3681_s24 = sshll.u32 %s4842_s23, 4  ;;  %s3682_s24 = int_to_ptr.vmem [resolvable:$true] %s3681_s24 }
0x1958   :  { %s4746_s10 = scalar_lea.vmem %s3682_s24, 64  ;;  %p4751_p7 = scmp.lt.s32.totalorder %s3682_s24, %s3682_s24 }
0x1959   :  { %p4747_p6 = scmp.ne.s32.totalorder %s3682_s24, %s4746_s10  ;;  %p4752_p8 = scmp.lt.s32.totalorder %s4746_s10, %s4746_s10 }
0x195b   :  { %p4753_p9 = por %p4752_p8, %p4751_p7 }
0x195d   :  { %p4754_p10 = pnand %p4753_p9, %p4747_p6 }
0x195f   :  { %4757 = shalt.err (!%p4754_p10)
}
0x1960   :  { %3687 = dma.vmem_to_hbm [thread:$0]  %s3682_s24, 64, %s5599_s14, [#allocation14], %s4833_s26, %s4833_s26, %s4834_s27   ;;  %vm3649_vm11 = vcmask 523264  }
0x1961   :  { %v4064_v6 = vld [vmem:[%s5590_s5] ss:$0 sm:$0xff]  ;;  %s4843_s13 = smov [#allocation12]  }
0x1962   :  { %s3657_s7 = sshll.u32 %s4843_s13, 4  ;;  %s3658_s7 = int_to_ptr.vmem [resolvable:$true] %s3657_s7 }
0x1963   :  { %s4766_s29 = scalar_lea.vmem %s3658_s7, 256  ;;  %p4771_p12 = scmp.lt.s32.totalorder %s3658_s7, %s3658_s7 }
0x1964   :  { %p4767_p11 = scmp.ne.s32.totalorder %s3658_s7, %s4766_s29  ;;  %p4772_p13 = scmp.lt.s32.totalorder %s4766_s29, %s4766_s29 }
0x1966   :  { %p4773_p0 = por %p4772_p13, %p4771_p12 }
0x1968   :  { %p4774_p1 = pnand %p4773_p0, %p4767_p11 }
0x1a0b   :  { %v4500_v50 = vpop.f32.mrf.mxu1 }
0x1a0c   :  { %v3646_v51 = vadd.f32 %v4500_v50, %v4064_v6 }
0x1a0d   :  { %v3640_v7 = vpop.f32.mrf.mxu1 }
0x1a0e   :  { %v3641_v8 = vadd.f32 %v4064_v6, %v3640_v7  ;;  %3651 = vst.msk [vmem:[#allocation12 + $0x8] sm:$0xff] %vm3649_vm11, %v3646_v51 }
0x1a10   :  { %3650 = vst.msk [vmem:[#allocation12] sm:$0xff] %vm3649_vm11, %v3641_v8 }
0x1a11   :  { %4777 = shalt.err (!%p4774_p1)
}
0x1a12   :  { %3663 = dma.vmem_to_hbm [thread:$0]  %s3658_s7, 256, %s5597_s12, [#allocation6], %s4829_s16, %s4829_s16, %s4830_s17  }
0x1a13   :  { %4824 = dma.done.wait [#allocation6], 256  }
0x1a14   :  { %4825 = vsyncadd [#allocation6], 4294967040 }
0x1a15   :  { %4826 = dma.done.wait [#allocation14], 128  }
0x1a16   :  { %4827 = vsyncadd [#allocation14], 4294967168 }
0x1a17   :  { %3697 = vsyncpa [#allocation5], 1 }
0x1a18   :  { %3698 = vsyncpa [#allocation10], 1 }
0x1a19   :  { %3699 = vsyncpa [#allocation6], 1 }
0x1a1a   :  { %3700 = vsyncpa [#allocation14], 1 }
0x1a1b   :  { %3701 = vsyncpa [#allocation7], 1 }
0x1a1c   :  { %3702 = vsyncmov [#allocation3] }
0x1a1f   :  { %s3703_s26 = vpop.sfrf %3702 }
0x1a20   :  { %p4067_p2 = scmp.ne.s32.totalorder %s3703_s26, 0 }
0x1a22   :  { %3707 = shalt.err (%p4067_p2)  }
0x1a23   :  { %3709 = vsyncmov [#allocation3 + $0x1] }
0x1a26   :  { %s3710_s27 = vpop.sfrf %3709 }
0x1a27   :  { %p4068_p3 = scmp.ne.s32.totalorder %s3710_s27, 0 }
0x1a29   :  { %3714 = shalt.err (%p4068_p3)  }
0x1a2a   :  { %3716 = vsyncmov [#allocation3 + $0x2] }
0x1a2d   :  { %s3717_s11 = vpop.sfrf %3716 }
0x1a2e   :  { %p4069_p4 = scmp.ne.s32.totalorder %s3717_s11, 0 }
0x1a30   :  { %3721 = shalt.err (%p4069_p4)  }
0x1a31   :  { %3723 = vsyncmov [#allocation3 + $0x3] }
0x1a34   :  { %s3724_s12 = vpop.sfrf %3723 }
0x1a35   :  { %p4070_p5 = scmp.ne.s32.totalorder %s3724_s12, 0 }
0x1a37   :  { %3728 = shalt.err (%p4070_p5)  }
0x1a38   :  { %3730 = vsyncmov [#allocation3 + $0x4] }
0x1a3b   :  { %s3731_s16 = vpop.sfrf %3730 }
0x1a3c   :  { %p4071_p6 = scmp.ne.s32.totalorder %s3731_s16, 0 }
0x1a3e   :  { %3735 = shalt.err (%p4071_p6)  }
0x1a3f   :  { %3737 = vsyncmov [#allocation3 + $0x5] }
0x1a42   :  { %s3738_s17 = vpop.sfrf %3737 }
0x1a43   :  { %p4072_p7 = scmp.ne.s32.totalorder %s3738_s17, 0 }
0x1a45   :  { %3742 = shalt.err (%p4072_p7)  }
0x1a46   :  { %3744 = vsyncmov [#allocation3 + $0x6] }
0x1a49   :  { %s3745_s30 = vpop.sfrf %3744 }
0x1a4a   :  { %p4073_p8 = scmp.ne.s32.totalorder %s3745_s30, 0 }
0x1a4c   :  { %3749 = shalt.err (%p4073_p8)  }
0x1a4d   :  { %3751 = vsyncmov [#allocation3 + $0x7] }
0x1a50   :  { %s3752_s15 = vpop.sfrf %3751 }
0x1a51   :  { %p4074_p9 = scmp.ne.s32.totalorder %s3752_s15, 0 }
0x1a53   :  { %3756 = shalt.err (%p4074_p9)  }
0x1a54   :  { %3758 = vsyncmov [#allocation3 + $0x8] }
0x1a57   :  { %s3759_s6 = vpop.sfrf %3758 }
0x1a58   :  { %p4075_p10 = scmp.ne.s32.totalorder %s3759_s6, 0 }
0x1a5a   :  { %3763 = shalt.err (%p4075_p10)  }
0x1a5b   :  { %3765 = vsyncmov [#allocation3 + $0x9] }
0x1a5e   :  { %s3766_s18 = vpop.sfrf %3765 }
0x1a5f   :  { %p4076_p11 = scmp.ne.s32.totalorder %s3766_s18, 0 }
0x1a61   :  { %3770 = shalt.err (%p4076_p11)  }
0x1a62   :  { %3772 = vsyncmov [#allocation3 + $0xa] }
0x1a65   :  { %s3773_s2 = vpop.sfrf %3772 }
0x1a66   :  { %p4077_p12 = scmp.ne.s32.totalorder %s3773_s2, 0 }
0x1a68   :  { %3777 = shalt.err (%p4077_p12)  }
0x1a69   :  { %3779 = vsyncmov [#allocation3 + $0xb] }
0x1a6c   :  { %s3780_s19 = vpop.sfrf %3779 }
0x1a6d   :  { %p4078_p13 = scmp.ne.s32.totalorder %s3780_s19, 0 }
0x1a6f   :  { %3784 = shalt.err (%p4078_p13)  }
0x1a70   :  { %3786 = vsyncmov [#allocation3 + $0xc] }
0x1a73   :  { %s3787_s1 = vpop.sfrf %3786 }
0x1a74   :  { %p4079_p0 = scmp.ne.s32.totalorder %s3787_s1, 0 }
0x1a76   :  { %3791 = shalt.err (%p4079_p0)  }
0x1a77   :  { %3793 = vsyncmov [#allocation3 + $0xd] }
0x1a7a   :  { %s3794_s4 = vpop.sfrf %3793 }
0x1a7b   :  { %p4080_p1 = scmp.ne.s32.totalorder %s3794_s4, 0 }
0x1a7d   :  { %3798 = shalt.err (%p4080_p1)  }
0x1a7e   :  { %3800 = vsyncmov [#allocation3 + $0xe] }
0x1a81   :  { %s3801_s8 = vpop.sfrf %3800 }
0x1a82   :  { %p4081_p2 = scmp.ne.s32.totalorder %s3801_s8, 0 }
0x1a84   :  { %3805 = shalt.err (%p4081_p2)  }
0x1a85   :  { %3807 = vsyncmov [#allocation3 + $0xf] }
0x1a88   :  { %s3808_s20 = vpop.sfrf %3807 }
0x1a89   :  { %p4082_p3 = scmp.ne.s32.totalorder %s3808_s20, 0 }
0x1a8b   :  { %3812 = shalt.err (%p4082_p3)  }

</bundles_post_ra>
